<compile_context>
chip_gen: v6e
topology: v6e:2x2x1
jax: 0.10.0
libtpu: 0.0.40
codegen_flags: <defaults>
</compile_context>

<pallas_src>
import jax
import jax.numpy as jnp
from jax import lax
from jax.experimental import pallas as pl
from jax.experimental.pallas import tpu as pltpu


def _sigmoid(x):
    return 1.0 / (1.0 + jnp.exp(-x))


def _softplus(x):
    # matches torch.nn.Softplus(beta=1, threshold=20)
    return jnp.where(x > 20.0, x, jnp.log1p(jnp.exp(jnp.minimum(x, 20.0))))


def _lstm_cell(inp, h, c, w_ih, w_hh, b, H):
    # Reference-only helper (plain sigmoid/tanh formulation).
    gates = (jnp.dot(inp, w_ih, preferred_element_type=jnp.float32)
             + jnp.dot(h, w_hh, preferred_element_type=jnp.float32)
             + b)
    i = _sigmoid(gates[:, 0:H])
    f = _sigmoid(gates[:, H:2 * H])
    g = jnp.tanh(gates[:, 2 * H:3 * H])
    o = _sigmoid(gates[:, 3 * H:4 * H])
    c_new = f * c + i * g
    h_new = o * jnp.tanh(c_new)
    return h_new, c_new


def deepar_kernel(mask_ref, p0_ref, w_row0_ref, w_rec_ref, w_ih1h_ref,
                  b1_ref, w_head1_ref, b_head_ref, out_ref):
    Tp1, B, _ = out_ref.shape
    T = Tp1 - 1
    H = w_ih1h_ref.shape[0]
    G = 4 * H

    # Loop-invariant weight loads hoisted out of the time recurrence.
    w_row0 = w_row0_ref[...]        # (1, 4H)
    w_rec = w_rec_ref[...]          # (2H, 8H+2)  block-diag w_hh + h1-head cols
    w_ih1h = w_ih1h_ref[...]        # (H, 4H+2)   w_ih1 + h0-head cols
    b1 = b1_ref[...]                # (1, 4H)
    w_head1 = w_head1_ref[...]      # (H, 2)
    b_head = b_head_ref[...]        # (1, 2)

    def gate_act(z, c_prev):
        # i/f/o gate columns were pre-scaled by 0.5 wrapper-side, so a single
        # full-width tanh yields all four gates: sigmoid(a) = 0.5*(1+tanh(a/2)).
        t = jnp.tanh(z)
        u = 0.5 * (1.0 + t)
        i = u[:, 0:H]
        f = u[:, H:2 * H]
        g = t[:, 2 * H:3 * H]
        o = u[:, 3 * H:4 * H]
        c_new = f * c_prev + i * g
        h_new = o * jnp.tanh(c_new)
        return h_new, c_new

    def step(t, carry):
        hcat, c0, c1, zhead = carry

        # One MXU push for both recurrent gate contributions AND the deferred
        # h1-head columns of the previous step.
        rec = jnp.dot(hcat, w_rec, preferred_element_type=jnp.float32)

        # Finish the PREVIOUS step's head pre-activation (mu | presigma) and
        # store it with a single store; row t of the slab holds step t-1.
        pre_prev = zhead + rec[:, 2 * G:2 * G + 2] + b_head
        out_ref[t] = pre_prev
        mu_prev = pre_prev[:, 0:1]

        # Layer 0: hoisted projection (bias + observed target folded in) +
        # masked autoregressive mu term + recurrent contribution.
        gates0 = p0_ref[t] + (mask_ref[t] * mu_prev) * w_row0 + rec[:, 0:G]
        h0n, c0n = gate_act(gates0, c0)

        # Layer 1: input projection fused with the h0-head columns.
        z1 = jnp.dot(h0n, w_ih1h, preferred_element_type=jnp.float32)
        gates1 = z1[:, 0:G] + rec[:, G:2 * G] + b1
        h1n, c1n = gate_act(gates1, c1)

        hcat_n = jnp.concatenate([h0n, h1n], axis=-1)
        return (hcat_n, c0n, c1n, z1[:, G:G + 2])

    init = (jnp.zeros((B, 2 * H), jnp.float32),
            jnp.zeros((B, H), jnp.float32),
            jnp.zeros((B, H), jnp.float32),
            jnp.zeros((B, 2), jnp.float32))
    unroll = True if T <= 16 else 8
    hcat, _c0, _c1, zhead = lax.fori_loop(0, T, step, init, unroll=unroll)

    # Final step's head completion (off the recurrent chain).
    pre_last = (zhead
                + jnp.dot(hcat[:, H:2 * H], w_head1,
                          preferred_element_type=jnp.float32)
                + b_head)
    out_ref[T] = pre_last

    # One vectorized softplus pass over the presigma column of the whole slab.
    pre_all = out_ref[...]
    out_ref[...] = jnp.concatenate(
        [pre_all[:, :, 0:1], _softplus(pre_all[:, :, 1:2])], axis=-1)


def deepar_forward_pallas(x_btf, params, num_batch_blocks=None):
    """x_btf: (B, T, F) assembled features. Returns (B, T, 2) = (mu, sigma)."""
    B, T, F = x_btf.shape
    H = params['w_hh0'].shape[0]
    G = 4 * H

    # Fold the 0.5 of sigmoid(a) = 0.5*(1+tanh(a/2)) into the i/f/o gate
    # columns (PyTorch gate order i, f, g, o); g columns stay unscaled.
    gate_scale = jnp.concatenate([
        jnp.full((2 * H,), 0.5, jnp.float32),
        jnp.ones((H,), jnp.float32),
        jnp.full((H,), 0.5, jnp.float32)])
    w_ih0_s = params['w_ih0'] * gate_scale
    w_hh0_s = params['w_hh0'] * gate_scale
    b0_s = params['b0'] * gate_scale
    w_ih1_s = params['w_ih1'] * gate_scale
    w_hh1_s = params['w_hh1'] * gate_scale
    b1_s = params['b1'] * gate_scale

    w_head0 = params['w_head'][:H, :]                               # (H, 2)
    w_head1 = params['w_head'][H:, :]                               # (H, 2)
    b_head = params['b_head']                                       # (1, 2)

    # Time-major layout; hoist the layer-0 projection with bias AND the
    # observed (rolled) target term folded in.
    x_tbf = jnp.transpose(x_btf, (1, 0, 2)).astype(jnp.float32)     # (T, B, F)
    tgt = x_tbf[:, :, 0:1]                                          # (T, B, 1)
    w_row0 = w_ih0_s[0:1, :]                                        # (1, 4H)
    p0 = (jnp.einsum('tbf,fg->tbg', x_tbf[:, :, 1:], w_ih0_s[1:, :])
          + b0_s + tgt * w_row0)                                    # (T, B, 4H)

    # Autoregressive mask: exact-zero compare as in the module, t=0 excluded.
    t_idx = jnp.arange(T, dtype=jnp.float32)[:, None, None]
    ar_mask = ((tgt == 0.0) & (t_idx > 0)).astype(jnp.float32)      # (T, B, 1)

    # Block-diagonal recurrent weight + appended h1-head columns (2H, 8H+2).
    zg = jnp.zeros((H, G), jnp.float32)
    z2 = jnp.zeros((H, 2), jnp.float32)
    w_rec = jnp.concatenate([
        jnp.concatenate([w_hh0_s, zg, z2], axis=1),
        jnp.concatenate([zg, w_hh1_s, w_head1], axis=1)], axis=0)

    # Layer-1 input weight fused with the h0-head columns (H, 4H+2).
    w_ih1_head = jnp.concatenate([w_ih1_s, w_head0], axis=1)

    # Batch-block 'parallel' grid axis (2nd TensorCore on v7x). Blocks must be
    # a multiple of 8 rows for the (8,128) tiling constraint.
    if num_batch_blocks is None:
        num_batch_blocks = 2 if B % 16 == 0 else 1
    nb = num_batch_blocks
    assert B % nb == 0 and (nb == 1 or (B // nb) % 8 == 0)
    Bb = B // nb

    inputs = (ar_mask, p0, w_row0, w_rec, w_ih1_head, b1_s, w_head1, b_head)

    def rep_spec(arr):
        nd = arr.ndim
        return pl.BlockSpec(arr.shape, lambda b, _nd=nd: (0,) * _nd)

    in_specs = [
        pl.BlockSpec((T, Bb, 1), lambda b: (0, b, 0)),       # ar_mask
        pl.BlockSpec((T, Bb, G), lambda b: (0, b, 0)),       # p0
        rep_spec(w_row0), rep_spec(w_rec), rep_spec(w_ih1_head),
        rep_spec(b1_s), rep_spec(w_head1), rep_spec(b_head),
    ]
    out_spec = pl.BlockSpec((T + 1, Bb, 2), lambda b: (0, b, 0))

    # Explicit VMEM budget (v7x-safe cap of 64 MiB).
    resident_bytes = sum(int(a.size) * a.dtype.itemsize for a in inputs)
    resident_bytes += (T + 1) * B * 2 * 4
    vmem_limit = int(min(64 * 2**20, max(32 * 2**20, 4 * resident_bytes)))

    out = pl.pallas_call(
        deepar_kernel,
        out_shape=jax.ShapeDtypeStruct((T + 1, B, 2), jnp.float32),
        grid_spec=pltpu.PrefetchScalarGridSpec(
            num_scalar_prefetch=0,
            grid=(nb,),
            in_specs=in_specs,
            out_specs=out_spec),
        compiler_params=pltpu.CompilerParams(
            dimension_semantics=("parallel",),
            vmem_limit_bytes=vmem_limit),
    )(*inputs)

    # Drop the dummy first row (deferred-store scheme), back to (B, T, 2).
    return jnp.transpose(out[1:], (1, 0, 2))


def deepar_forward_reference(x_btf, params):
    """Pure-JAX reference with original (sigmoid/concat) formulation."""
    B, T, F = x_btf.shape
    H = params['w_hh0'].shape[0]
    h = [jnp.zeros((B, H), jnp.float32) for _ in range(2)]
    c = [jnp.zeros((B, H), jnp.float32) for _ in range(2)]
    mu_prev = jnp.zeros((B, 1), jnp.float32)
    outs = []
    for t in range(T):
        xt = x_btf[:, t]
        tgt = xt[:, 0:1]
        if t > 0:
            tgt = jnp.where(tgt == 0.0, mu_prev, tgt)
        xt = jnp.concatenate([tgt, xt[:, 1:]], axis=-1)
        h[0], c[0] = _lstm_cell(xt, h[0], c[0], params['w_ih0'],
                                params['w_hh0'], params['b0'], H)
        h[1], c[1] = _lstm_cell(h[0], h[1], c[1], params['w_ih1'],
                                params['w_hh1'], params['b1'], H)
        hidden = jnp.concatenate([h[0], h[1]], axis=-1)
        pre = jnp.dot(hidden, params['w_head']) + params['b_head']
        mu = pre[:, 0:1]
        sigma = _softplus(pre[:, 1:2])
        mu_prev = mu
        outs.append(jnp.concatenate([mu, sigma], axis=-1))
    return jnp.stack(outs, axis=1)


if __name__ == "__main__":
    # Small DeepAR config (v1 path). B=16 so the 'parallel' batch-block axis
    # (2 blocks of 8) is exercised.
    B, T = 16, 8
    H, L, E = 32, 2, 4
    encoder_length = 4
    static_cat_lens = [5, 7]
    known_cat_lens = [3]
    k_cont_size = 2
    F = 1 + k_cont_size + (len(static_cat_lens) + len(known_cat_lens)) * E  # 15

    key = jax.random.PRNGKey(0)
    keys = jax.random.split(key, 20)

    # ---- inputs (batch dict à la v1 path) ----
    s_cat0 = jax.random.randint(keys[0], (B, 1), 0, static_cat_lens[0])
    s_cat1 = jax.random.randint(keys[1], (B, 1), 0, static_cat_lens[1])
    s_cat = jnp.broadcast_to(
        jnp.concatenate([s_cat0, s_cat1], axis=-1)[:, None, :], (B, T, 2))
    k_cat = jax.random.randint(keys[2], (B, T, 1), 0, known_cat_lens[0])
    k_cont = jax.random.normal(keys[3], (B, T, k_cont_size), jnp.float32)
    target = jnp.abs(jax.random.normal(keys[4], (B, T, 1), jnp.float32)) + 0.1
    # zero out the "future" targets so the autoregressive branch is exercised
    target = target.at[:, encoder_length:, :].set(0.0)

    # ---- embedding tables (nn.Embedding equivalents) ----
    emb_tables = [
        0.5 * jax.random.normal(keys[5], (static_cat_lens[0], E), jnp.float32),
        0.5 * jax.random.normal(keys[6], (static_cat_lens[1], E), jnp.float32),
        0.5 * jax.random.normal(keys[7], (known_cat_lens[0], E), jnp.float32),
    ]
    cat_all = jnp.concatenate([s_cat, k_cat], axis=-1)        # (B, T, 3)
    emb = jnp.concatenate(
        [emb_tables[i][cat_all[..., i]] for i in range(3)], axis=-1)  # (B,T,12)

    # torch.roll(target, 1, 1); target[:, 0] = 0
    target_rolled = jnp.roll(target, 1, axis=1).at[:, 0, :].set(0.0)
    x_btf = jnp.concatenate([target_rolled, k_cont, emb], axis=-1)    # (B,T,F)

    # ---- LSTM + head parameters (deterministic synthetic init) ----
    def lstm_layer_params(kw, kr, kb1, kb2, in_size):
        w_ih = 0.1 * jax.random.normal(kw, (in_size, 4 * H), jnp.float32)
        w_hh = 0.1 * jax.random.normal(kr, (H, 4 * H), jnp.float32)
        b_ih = 0.1 * jax.random.normal(kb1, (4 * H,), jnp.float32)
        b_hh = 0.1 * jax.random.normal(kb2, (4 * H,), jnp.float32)
        # forget-gate bias filled with 1.0 (matches the __init__ loop)
        b_ih = b_ih.at[H:2 * H].set(1.0)
        b_hh = b_hh.at[H:2 * H].set(1.0)
        return w_ih, w_hh, (b_ih + b_hh)[None, :]

    w_ih0, w_hh0, b0 = lstm_layer_params(keys[8], keys[9], keys[10], keys[11], F)
    w_ih1, w_hh1, b1 = lstm_layer_params(keys[12], keys[13], keys[14], keys[15], H)

    # heads: column 0 -> distribution_mu, column 1 -> distribution_presigma
    w_head = 0.1 * jax.random.normal(keys[16], (L * H, 2), jnp.float32)
    b_head = 0.1 * jax.random.normal(keys[17], (1, 2), jnp.float32)

    params = dict(w_ih0=w_ih0, w_hh0=w_hh0, b0=b0,
                  w_ih1=w_ih1, w_hh1=w_hh1, b1=b1,
                  w_head=w_head, b_head=b_head)

    out = deepar_forward_pallas(x_btf, params)
    out = jax.block_until_ready(out)

    ref = deepar_forward_reference(x_btf, params)
    ref = jax.block_until_ready(ref)

    assert out.shape == (B, T, 2), out.shape
    assert jnp.allclose(out, ref, atol=1e-4, rtol=1e-4), (
        float(jnp.max(jnp.abs(out - ref))))
    print("KERNEL_OK")
</pallas_src>

<mosaic_0001>
module attributes {stable_mosaic.version = 11 : i64} {
  func.func @deepar_kernel(%arg0: i32, %arg1: memref<8x8x1xf32, #tpu.memory_space<vmem>>, %arg2: memref<8x8x128xf32, #tpu.memory_space<vmem>>, %arg3: memref<1x128xf32, #tpu.memory_space<vmem>>, %arg4: memref<64x258xf32, #tpu.memory_space<vmem>>, %arg5: memref<32x130xf32, #tpu.memory_space<vmem>>, %arg6: memref<1x128xf32, #tpu.memory_space<vmem>>, %arg7: memref<32x2xf32, #tpu.memory_space<vmem>>, %arg8: memref<1x2xf32, #tpu.memory_space<vmem>>, %arg9: memref<9x8x2xf32, #tpu.memory_space<vmem>>) attributes {dimension_semantics = [#tpu.dimension_semantics<parallel>], iteration_bounds = array<i64: 2>, scalar_prefetch = 0 : i64, scratch_operands = 0 : i64, tpu.core_type = #tpu.core_type<tc>, window_params = [{transform_indices = @transform_0, window_bounds = array<i64: 8, 8, 1>}, {transform_indices = @transform_1, window_bounds = array<i64: 8, 8, 128>}, {pipeline_mode = #tpu.pipeline_mode<synchronous>, transform_indices = @transform_2, window_bounds = array<i64: 1, 128>}, {pipeline_mode = #tpu.pipeline_mode<synchronous>, transform_indices = @transform_3, window_bounds = array<i64: 64, 258>}, {pipeline_mode = #tpu.pipeline_mode<synchronous>, transform_indices = @transform_4, window_bounds = array<i64: 32, 130>}, {pipeline_mode = #tpu.pipeline_mode<synchronous>, transform_indices = @transform_5, window_bounds = array<i64: 1, 128>}, {pipeline_mode = #tpu.pipeline_mode<synchronous>, transform_indices = @transform_6, window_bounds = array<i64: 32, 2>}, {pipeline_mode = #tpu.pipeline_mode<synchronous>, transform_indices = @transform_7, window_bounds = array<i64: 1, 2>}, {transform_indices = @transform_8, window_bounds = array<i64: 9, 8, 2>}]} {
    %c0 = arith.constant 0 : index
    %c0_0 = arith.constant 0 : index
    %0 = vector.load %arg3[%c0, %c0_0] : memref<1x128xf32, #tpu.memory_space<vmem>>, vector<1x128xf32>
    %c0_1 = arith.constant 0 : index
    %c0_2 = arith.constant 0 : index
    %1 = vector.load %arg4[%c0_1, %c0_2] : memref<64x258xf32, #tpu.memory_space<vmem>>, vector<64x258xf32>
    %c0_3 = arith.constant 0 : index
    %c0_4 = arith.constant 0 : index
    %2 = vector.load %arg5[%c0_3, %c0_4] : memref<32x130xf32, #tpu.memory_space<vmem>>, vector<32x130xf32>
    %c0_5 = arith.constant 0 : index
    %c0_6 = arith.constant 0 : index
    %3 = vector.load %arg6[%c0_5, %c0_6] : memref<1x128xf32, #tpu.memory_space<vmem>>, vector<1x128xf32>
    %c0_7 = arith.constant 0 : index
    %c0_8 = arith.constant 0 : index
    %4 = vector.load %arg7[%c0_7, %c0_8] : memref<32x2xf32, #tpu.memory_space<vmem>>, vector<32x2xf32>
    %c0_9 = arith.constant 0 : index
    %c0_10 = arith.constant 0 : index
    %5 = vector.load %arg8[%c0_9, %c0_10] : memref<1x2xf32, #tpu.memory_space<vmem>>, vector<1x2xf32>
    %cst = arith.constant 0.000000e+00 : f32
    %6 = vector.broadcast %cst : f32 to vector<8x64xf32>
    %cst_11 = arith.constant 0.000000e+00 : f32
    %7 = vector.broadcast %cst_11 : f32 to vector<8x32xf32>
    %cst_12 = arith.constant 0.000000e+00 : f32
    %8 = vector.broadcast %cst_12 : f32 to vector<8x32xf32>
    %cst_13 = arith.constant 0.000000e+00 : f32
    %9 = vector.broadcast %cst_13 : f32 to vector<8x2xf32>
    %c0_i32 = arith.constant 0 : i32
    %cst_14 = arith.constant dense<0.000000e+00> : vector<8x258xf32>
    %10 = tpu.matmul %6, %1, %cst_14 {dimension_numbers = #tpu.dot_dimension_numbers<[1], [0], [0], [1], [0, 0, 1, 1], [], []>} : vector<8x64xf32>, vector<64x258xf32>, vector<8x258xf32> -> vector<8x258xf32>
    %11 = vector.extract_strided_slice %10 {offsets = [0, 256], sizes = [8, 2], strides = [1, 1]} : vector<8x258xf32> to vector<8x2xf32>
    %12 = arith.addf %9, %11 : vector<8x2xf32>
    %13 = vector.broadcast %5 : vector<1x2xf32> to vector<8x2xf32>
    %14 = arith.addf %12, %13 : vector<8x2xf32>
    %15 = arith.index_cast %c0_i32 : i32 to index
    %c0_15 = arith.constant 0 : index
    %c0_16 = arith.constant 0 : index
    %16 = vector.load %arg9[%15, %c0_15, %c0_16] : memref<9x8x2xf32, #tpu.memory_space<vmem>>, vector<1x8x2xf32>
    %17 = vector.shape_cast %16 : vector<1x8x2xf32> to vector<8x2xf32>
    %18 = vector.shape_cast %14 : vector<8x2xf32> to vector<1x8x2xf32>
    tpu.vector_store %arg9[%15, %c0_15, %c0_16], %18 {strides = array<i32>} : memref<9x8x2xf32, #tpu.memory_space<vmem>>, vector<1x8x2xf32>,
    %19 = vector.extract_strided_slice %14 {offsets = [0, 0], sizes = [8, 1], strides = [1, 1]} : vector<8x2xf32> to vector<8x1xf32>
    %20 = arith.index_cast %c0_i32 : i32 to index
    %c0_17 = arith.constant 0 : index
    %c0_18 = arith.constant 0 : index
    %21 = vector.load %arg2[%20, %c0_17, %c0_18] : memref<8x8x128xf32, #tpu.memory_space<vmem>>, vector<1x8x128xf32>
    %22 = vector.shape_cast %21 : vector<1x8x128xf32> to vector<8x128xf32>
    %23 = arith.index_cast %c0_i32 : i32 to index
    %c0_19 = arith.constant 0 : index
    %c0_20 = arith.constant 0 : index
    %24 = vector.load %arg1[%23, %c0_19, %c0_20] : memref<8x8x1xf32, #tpu.memory_space<vmem>>, vector<1x8x1xf32>
    %25 = vector.shape_cast %24 : vector<1x8x1xf32> to vector<8x1xf32>
    %26 = arith.mulf %25, %19 : vector<8x1xf32>
    %27 = vector.broadcast %26 : vector<8x1xf32> to vector<8x128xf32>
    %28 = vector.broadcast %0 : vector<1x128xf32> to vector<8x128xf32>
    %29 = arith.mulf %27, %28 : vector<8x128xf32>
    %30 = arith.addf %22, %29 : vector<8x128xf32>
    %31 = vector.extract_strided_slice %10 {offsets = [0, 0], sizes = [8, 128], strides = [1, 1]} : vector<8x258xf32> to vector<8x128xf32>
    %32 = arith.addf %30, %31 : vector<8x128xf32>
    %33 = math.tanh %32 : vector<8x128xf32>
    %cst_21 = arith.constant 1.000000e+00 : f32
    %34 = vector.broadcast %cst_21 : f32 to vector<8x128xf32>
    %35 = arith.addf %34, %33 : vector<8x128xf32>
    %cst_22 = arith.constant 5.000000e-01 : f32
    %36 = vector.broadcast %cst_22 : f32 to vector<8x128xf32>
    %37 = arith.mulf %36, %35 : vector<8x128xf32>
    %38 = vector.extract_strided_slice %37 {offsets = [0, 0], sizes = [8, 32], strides = [1, 1]} : vector<8x128xf32> to vector<8x32xf32>
    %39 = vector.extract_strided_slice %37 {offsets = [0, 32], sizes = [8, 32], strides = [1, 1]} : vector<8x128xf32> to vector<8x32xf32>
    %40 = vector.extract_strided_slice %33 {offsets = [0, 64], sizes = [8, 32], strides = [1, 1]} : vector<8x128xf32> to vector<8x32xf32>
    %41 = vector.extract_strided_slice %37 {offsets = [0, 96], sizes = [8, 32], strides = [1, 1]} : vector<8x128xf32> to vector<8x32xf32>
    %42 = arith.mulf %39, %7 : vector<8x32xf32>
    %43 = arith.mulf %38, %40 : vector<8x32xf32>
    %44 = arith.addf %42, %43 : vector<8x32xf32>
    %45 = math.tanh %44 : vector<8x32xf32>
    %46 = arith.mulf %41, %45 : vector<8x32xf32>
    %cst_23 = arith.constant dense<0.000000e+00> : vector<8x130xf32>
    %47 = tpu.matmul %46, %2, %cst_23 {dimension_numbers = #tpu.dot_dimension_numbers<[1], [0], [0], [1], [0, 0, 1, 1], [], []>} : vector<8x32xf32>, vector<32x130xf32>, vector<8x130xf32> -> vector<8x130xf32>
    %48 = vector.extract_strided_slice %47 {offsets = [0, 0], sizes = [8, 128], strides = [1, 1]} : vector<8x130xf32> to vector<8x128xf32>
    %49 = vector.extract_strided_slice %10 {offsets = [0, 128], sizes = [8, 128], strides = [1, 1]} : vector<8x258xf32> to vector<8x128xf32>
    %50 = arith.addf %48, %49 : vector<8x128xf32>
    %51 = vector.broadcast %3 : vector<1x128xf32> to vector<8x128xf32>
    %52 = arith.addf %50, %51 : vector<8x128xf32>
    %53 = math.tanh %52 : vector<8x128xf32>
    %cst_24 = arith.constant 1.000000e+00 : f32
    %54 = vector.broadcast %cst_24 : f32 to vector<8x128xf32>
    %55 = arith.addf %54, %53 : vector<8x128xf32>
    %cst_25 = arith.constant 5.000000e-01 : f32
    %56 = vector.broadcast %cst_25 : f32 to vector<8x128xf32>
    %57 = arith.mulf %56, %55 : vector<8x128xf32>
    %58 = vector.extract_strided_slice %57 {offsets = [0, 0], sizes = [8, 32], strides = [1, 1]} : vector<8x128xf32> to vector<8x32xf32>
    %59 = vector.extract_strided_slice %57 {offsets = [0, 32], sizes = [8, 32], strides = [1, 1]} : vector<8x128xf32> to vector<8x32xf32>
    %60 = vector.extract_strided_slice %53 {offsets = [0, 64], sizes = [8, 32], strides = [1, 1]} : vector<8x128xf32> to vector<8x32xf32>
    %61 = vector.extract_strided_slice %57 {offsets = [0, 96], sizes = [8, 32], strides = [1, 1]} : vector<8x128xf32> to vector<8x32xf32>
    %62 = arith.mulf %59, %8 : vector<8x32xf32>
    %63 = arith.mulf %58, %60 : vector<8x32xf32>
    %64 = arith.addf %62, %63 : vector<8x32xf32>
    %65 = math.tanh %64 : vector<8x32xf32>
    %66 = arith.mulf %61, %65 : vector<8x32xf32>
    %67 = tpu.concatenate %46, %66 in 1 : vector<8x32xf32>, vector<8x32xf32> -> vector<8x64xf32>
    %68 = vector.extract_strided_slice %47 {offsets = [0, 128], sizes = [8, 2], strides = [1, 1]} : vector<8x130xf32> to vector<8x2xf32>
    %c1_i32 = arith.constant 1 : i32
    %cst_26 = arith.constant dense<0.000000e+00> : vector<8x258xf32>
    %69 = tpu.matmul %67, %1, %cst_26 {dimension_numbers = #tpu.dot_dimension_numbers<[1], [0], [0], [1], [0, 0, 1, 1], [], []>} : vector<8x64xf32>, vector<64x258xf32>, vector<8x258xf32> -> vector<8x258xf32>
    %70 = vector.extract_strided_slice %69 {offsets = [0, 256], sizes = [8, 2], strides = [1, 1]} : vector<8x258xf32> to vector<8x2xf32>
    %71 = arith.addf %68, %70 : vector<8x2xf32>
    %72 = vector.broadcast %5 : vector<1x2xf32> to vector<8x2xf32>
    %73 = arith.addf %71, %72 : vector<8x2xf32>
    %74 = arith.index_cast %c1_i32 : i32 to index
    %c0_27 = arith.constant 0 : index
    %c0_28 = arith.constant 0 : index
    %75 = vector.load %arg9[%74, %c0_27, %c0_28] : memref<9x8x2xf32, #tpu.memory_space<vmem>>, vector<1x8x2xf32>
    %76 = vector.shape_cast %75 : vector<1x8x2xf32> to vector<8x2xf32>
    %77 = vector.shape_cast %73 : vector<8x2xf32> to vector<1x8x2xf32>
    tpu.vector_store %arg9[%74, %c0_27, %c0_28], %77 {strides = array<i32>} : memref<9x8x2xf32, #tpu.memory_space<vmem>>, vector<1x8x2xf32>,
    %78 = vector.extract_strided_slice %73 {offsets = [0, 0], sizes = [8, 1], strides = [1, 1]} : vector<8x2xf32> to vector<8x1xf32>
    %79 = arith.index_cast %c1_i32 : i32 to index
    %c0_29 = arith.constant 0 : index
    %c0_30 = arith.constant 0 : index
    %80 = vector.load %arg2[%79, %c0_29, %c0_30] : memref<8x8x128xf32, #tpu.memory_space<vmem>>, vector<1x8x128xf32>
    %81 = vector.shape_cast %80 : vector<1x8x128xf32> to vector<8x128xf32>
    %82 = arith.index_cast %c1_i32 : i32 to index
    %c0_31 = arith.constant 0 : index
    %c0_32 = arith.constant 0 : index
    %83 = vector.load %arg1[%82, %c0_31, %c0_32] : memref<8x8x1xf32, #tpu.memory_space<vmem>>, vector<1x8x1xf32>
    %84 = vector.shape_cast %83 : vector<1x8x1xf32> to vector<8x1xf32>
    %85 = arith.mulf %84, %78 : vector<8x1xf32>
    %86 = vector.broadcast %85 : vector<8x1xf32> to vector<8x128xf32>
    %87 = vector.broadcast %0 : vector<1x128xf32> to vector<8x128xf32>
    %88 = arith.mulf %86, %87 : vector<8x128xf32>
    %89 = arith.addf %81, %88 : vector<8x128xf32>
    %90 = vector.extract_strided_slice %69 {offsets = [0, 0], sizes = [8, 128], strides = [1, 1]} : vector<8x258xf32> to vector<8x128xf32>
    %91 = arith.addf %89, %90 : vector<8x128xf32>
    %92 = math.tanh %91 : vector<8x128xf32>
    %cst_33 = arith.constant 1.000000e+00 : f32
    %93 = vector.broadcast %cst_33 : f32 to vector<8x128xf32>
    %94 = arith.addf %93, %92 : vector<8x128xf32>
    %cst_34 = arith.constant 5.000000e-01 : f32
    %95 = vector.broadcast %cst_34 : f32 to vector<8x128xf32>
    %96 = arith.mulf %95, %94 : vector<8x128xf32>
    %97 = vector.extract_strided_slice %96 {offsets = [0, 0], sizes = [8, 32], strides = [1, 1]} : vector<8x128xf32> to vector<8x32xf32>
    %98 = vector.extract_strided_slice %96 {offsets = [0, 32], sizes = [8, 32], strides = [1, 1]} : vector<8x128xf32> to vector<8x32xf32>
    %99 = vector.extract_strided_slice %92 {offsets = [0, 64], sizes = [8, 32], strides = [1, 1]} : vector<8x128xf32> to vector<8x32xf32>
    %100 = vector.extract_strided_slice %96 {offsets = [0, 96], sizes = [8, 32], strides = [1, 1]} : vector<8x128xf32> to vector<8x32xf32>
    %101 = arith.mulf %98, %44 : vector<8x32xf32>
    %102 = arith.mulf %97, %99 : vector<8x32xf32>
    %103 = arith.addf %101, %102 : vector<8x32xf32>
    %104 = math.tanh %103 : vector<8x32xf32>
    %105 = arith.mulf %100, %104 : vector<8x32xf32>
    %cst_35 = arith.constant dense<0.000000e+00> : vector<8x130xf32>
    %106 = tpu.matmul %105, %2, %cst_35 {dimension_numbers = #tpu.dot_dimension_numbers<[1], [0], [0], [1], [0, 0, 1, 1], [], []>} : vector<8x32xf32>, vector<32x130xf32>, vector<8x130xf32> -> vector<8x130xf32>
    %107 = vector.extract_strided_slice %106 {offsets = [0, 0], sizes = [8, 128], strides = [1, 1]} : vector<8x130xf32> to vector<8x128xf32>
    %108 = vector.extract_strided_slice %69 {offsets = [0, 128], sizes = [8, 128], strides = [1, 1]} : vector<8x258xf32> to vector<8x128xf32>
    %109 = arith.addf %107, %108 : vector<8x128xf32>
    %110 = vector.broadcast %3 : vector<1x128xf32> to vector<8x128xf32>
    %111 = arith.addf %109, %110 : vector<8x128xf32>
    %112 = math.tanh %111 : vector<8x128xf32>
    %cst_36 = arith.constant 1.000000e+00 : f32
    %113 = vector.broadcast %cst_36 : f32 to vector<8x128xf32>
    %114 = arith.addf %113, %112 : vector<8x128xf32>
    %cst_37 = arith.constant 5.000000e-01 : f32
    %115 = vector.broadcast %cst_37 : f32 to vector<8x128xf32>
    %116 = arith.mulf %115, %114 : vector<8x128xf32>
    %117 = vector.extract_strided_slice %116 {offsets = [0, 0], sizes = [8, 32], strides = [1, 1]} : vector<8x128xf32> to vector<8x32xf32>
    %118 = vector.extract_strided_slice %116 {offsets = [0, 32], sizes = [8, 32], strides = [1, 1]} : vector<8x128xf32> to vector<8x32xf32>
    %119 = vector.extract_strided_slice %112 {offsets = [0, 64], sizes = [8, 32], strides = [1, 1]} : vector<8x128xf32> to vector<8x32xf32>
    %120 = vector.extract_strided_slice %116 {offsets = [0, 96], sizes = [8, 32], strides = [1, 1]} : vector<8x128xf32> to vector<8x32xf32>
    %121 = arith.mulf %118, %64 : vector<8x32xf32>
    %122 = arith.mulf %117, %119 : vector<8x32xf32>
    %123 = arith.addf %121, %122 : vector<8x32xf32>
    %124 = math.tanh %123 : vector<8x32xf32>
    %125 = arith.mulf %120, %124 : vector<8x32xf32>
    %126 = tpu.concatenate %105, %125 in 1 : vector<8x32xf32>, vector<8x32xf32> -> vector<8x64xf32>
    %127 = vector.extract_strided_slice %106 {offsets = [0, 128], sizes = [8, 2], strides = [1, 1]} : vector<8x130xf32> to vector<8x2xf32>
    %c2_i32 = arith.constant 2 : i32
    %cst_38 = arith.constant dense<0.000000e+00> : vector<8x258xf32>
    %128 = tpu.matmul %126, %1, %cst_38 {dimension_numbers = #tpu.dot_dimension_numbers<[1], [0], [0], [1], [0, 0, 1, 1], [], []>} : vector<8x64xf32>, vector<64x258xf32>, vector<8x258xf32> -> vector<8x258xf32>
    %129 = vector.extract_strided_slice %128 {offsets = [0, 256], sizes = [8, 2], strides = [1, 1]} : vector<8x258xf32> to vector<8x2xf32>
    %130 = arith.addf %127, %129 : vector<8x2xf32>
    %131 = vector.broadcast %5 : vector<1x2xf32> to vector<8x2xf32>
    %132 = arith.addf %130, %131 : vector<8x2xf32>
    %133 = arith.index_cast %c2_i32 : i32 to index
    %c0_39 = arith.constant 0 : index
    %c0_40 = arith.constant 0 : index
    %134 = vector.load %arg9[%133, %c0_39, %c0_40] : memref<9x8x2xf32, #tpu.memory_space<vmem>>, vector<1x8x2xf32>
    %135 = vector.shape_cast %134 : vector<1x8x2xf32> to vector<8x2xf32>
    %136 = vector.shape_cast %132 : vector<8x2xf32> to vector<1x8x2xf32>
    tpu.vector_store %arg9[%133, %c0_39, %c0_40], %136 {strides = array<i32>} : memref<9x8x2xf32, #tpu.memory_space<vmem>>, vector<1x8x2xf32>,
    %137 = vector.extract_strided_slice %132 {offsets = [0, 0], sizes = [8, 1], strides = [1, 1]} : vector<8x2xf32> to vector<8x1xf32>
    %138 = arith.index_cast %c2_i32 : i32 to index
    %c0_41 = arith.constant 0 : index
    %c0_42 = arith.constant 0 : index
    %139 = vector.load %arg2[%138, %c0_41, %c0_42] : memref<8x8x128xf32, #tpu.memory_space<vmem>>, vector<1x8x128xf32>
    %140 = vector.shape_cast %139 : vector<1x8x128xf32> to vector<8x128xf32>
    %141 = arith.index_cast %c2_i32 : i32 to index
    %c0_43 = arith.constant 0 : index
    %c0_44 = arith.constant 0 : index
    %142 = vector.load %arg1[%141, %c0_43, %c0_44] : memref<8x8x1xf32, #tpu.memory_space<vmem>>, vector<1x8x1xf32>
    %143 = vector.shape_cast %142 : vector<1x8x1xf32> to vector<8x1xf32>
    %144 = arith.mulf %143, %137 : vector<8x1xf32>
    %145 = vector.broadcast %144 : vector<8x1xf32> to vector<8x128xf32>
    %146 = vector.broadcast %0 : vector<1x128xf32> to vector<8x128xf32>
    %147 = arith.mulf %145, %146 : vector<8x128xf32>
    %148 = arith.addf %140, %147 : vector<8x128xf32>
    %149 = vector.extract_strided_slice %128 {offsets = [0, 0], sizes = [8, 128], strides = [1, 1]} : vector<8x258xf32> to vector<8x128xf32>
    %150 = arith.addf %148, %149 : vector<8x128xf32>
    %151 = math.tanh %150 : vector<8x128xf32>
    %cst_45 = arith.constant 1.000000e+00 : f32
    %152 = vector.broadcast %cst_45 : f32 to vector<8x128xf32>
    %153 = arith.addf %152, %151 : vector<8x128xf32>
    %cst_46 = arith.constant 5.000000e-01 : f32
    %154 = vector.broadcast %cst_46 : f32 to vector<8x128xf32>
    %155 = arith.mulf %154, %153 : vector<8x128xf32>
    %156 = vector.extract_strided_slice %155 {offsets = [0, 0], sizes = [8, 32], strides = [1, 1]} : vector<8x128xf32> to vector<8x32xf32>
    %157 = vector.extract_strided_slice %155 {offsets = [0, 32], sizes = [8, 32], strides = [1, 1]} : vector<8x128xf32> to vector<8x32xf32>
    %158 = vector.extract_strided_slice %151 {offsets = [0, 64], sizes = [8, 32], strides = [1, 1]} : vector<8x128xf32> to vector<8x32xf32>
    %159 = vector.extract_strided_slice %155 {offsets = [0, 96], sizes = [8, 32], strides = [1, 1]} : vector<8x128xf32> to vector<8x32xf32>
    %160 = arith.mulf %157, %103 : vector<8x32xf32>
    %161 = arith.mulf %156, %158 : vector<8x32xf32>
    %162 = arith.addf %160, %161 : vector<8x32xf32>
    %163 = math.tanh %162 : vector<8x32xf32>
    %164 = arith.mulf %159, %163 : vector<8x32xf32>
    %cst_47 = arith.constant dense<0.000000e+00> : vector<8x130xf32>
    %165 = tpu.matmul %164, %2, %cst_47 {dimension_numbers = #tpu.dot_dimension_numbers<[1], [0], [0], [1], [0, 0, 1, 1], [], []>} : vector<8x32xf32>, vector<32x130xf32>, vector<8x130xf32> -> vector<8x130xf32>
    %166 = vector.extract_strided_slice %165 {offsets = [0, 0], sizes = [8, 128], strides = [1, 1]} : vector<8x130xf32> to vector<8x128xf32>
    %167 = vector.extract_strided_slice %128 {offsets = [0, 128], sizes = [8, 128], strides = [1, 1]} : vector<8x258xf32> to vector<8x128xf32>
    %168 = arith.addf %166, %167 : vector<8x128xf32>
    %169 = vector.broadcast %3 : vector<1x128xf32> to vector<8x128xf32>
    %170 = arith.addf %168, %169 : vector<8x128xf32>
    %171 = math.tanh %170 : vector<8x128xf32>
    %cst_48 = arith.constant 1.000000e+00 : f32
    %172 = vector.broadcast %cst_48 : f32 to vector<8x128xf32>
    %173 = arith.addf %172, %171 : vector<8x128xf32>
    %cst_49 = arith.constant 5.000000e-01 : f32
    %174 = vector.broadcast %cst_49 : f32 to vector<8x128xf32>
    %175 = arith.mulf %174, %173 : vector<8x128xf32>
    %176 = vector.extract_strided_slice %175 {offsets = [0, 0], sizes = [8, 32], strides = [1, 1]} : vector<8x128xf32> to vector<8x32xf32>
    %177 = vector.extract_strided_slice %175 {offsets = [0, 32], sizes = [8, 32], strides = [1, 1]} : vector<8x128xf32> to vector<8x32xf32>
    %178 = vector.extract_strided_slice %171 {offsets = [0, 64], sizes = [8, 32], strides = [1, 1]} : vector<8x128xf32> to vector<8x32xf32>
    %179 = vector.extract_strided_slice %175 {offsets = [0, 96], sizes = [8, 32], strides = [1, 1]} : vector<8x128xf32> to vector<8x32xf32>
    %180 = arith.mulf %177, %123 : vector<8x32xf32>
    %181 = arith.mulf %176, %178 : vector<8x32xf32>
    %182 = arith.addf %180, %181 : vector<8x32xf32>
    %183 = math.tanh %182 : vector<8x32xf32>
    %184 = arith.mulf %179, %183 : vector<8x32xf32>
    %185 = tpu.concatenate %164, %184 in 1 : vector<8x32xf32>, vector<8x32xf32> -> vector<8x64xf32>
    %186 = vector.extract_strided_slice %165 {offsets = [0, 128], sizes = [8, 2], strides = [1, 1]} : vector<8x130xf32> to vector<8x2xf32>
    %c3_i32 = arith.constant 3 : i32
    %cst_50 = arith.constant dense<0.000000e+00> : vector<8x258xf32>
    %187 = tpu.matmul %185, %1, %cst_50 {dimension_numbers = #tpu.dot_dimension_numbers<[1], [0], [0], [1], [0, 0, 1, 1], [], []>} : vector<8x64xf32>, vector<64x258xf32>, vector<8x258xf32> -> vector<8x258xf32>
    %188 = vector.extract_strided_slice %187 {offsets = [0, 256], sizes = [8, 2], strides = [1, 1]} : vector<8x258xf32> to vector<8x2xf32>
    %189 = arith.addf %186, %188 : vector<8x2xf32>
    %190 = vector.broadcast %5 : vector<1x2xf32> to vector<8x2xf32>
    %191 = arith.addf %189, %190 : vector<8x2xf32>
    %192 = arith.index_cast %c3_i32 : i32 to index
    %c0_51 = arith.constant 0 : index
    %c0_52 = arith.constant 0 : index
    %193 = vector.load %arg9[%192, %c0_51, %c0_52] : memref<9x8x2xf32, #tpu.memory_space<vmem>>, vector<1x8x2xf32>
    %194 = vector.shape_cast %193 : vector<1x8x2xf32> to vector<8x2xf32>
    %195 = vector.shape_cast %191 : vector<8x2xf32> to vector<1x8x2xf32>
    tpu.vector_store %arg9[%192, %c0_51, %c0_52], %195 {strides = array<i32>} : memref<9x8x2xf32, #tpu.memory_space<vmem>>, vector<1x8x2xf32>,
    %196 = vector.extract_strided_slice %191 {offsets = [0, 0], sizes = [8, 1], strides = [1, 1]} : vector<8x2xf32> to vector<8x1xf32>
    %197 = arith.index_cast %c3_i32 : i32 to index
    %c0_53 = arith.constant 0 : index
    %c0_54 = arith.constant 0 : index
    %198 = vector.load %arg2[%197, %c0_53, %c0_54] : memref<8x8x128xf32, #tpu.memory_space<vmem>>, vector<1x8x128xf32>
    %199 = vector.shape_cast %198 : vector<1x8x128xf32> to vector<8x128xf32>
    %200 = arith.index_cast %c3_i32 : i32 to index
    %c0_55 = arith.constant 0 : index
    %c0_56 = arith.constant 0 : index
    %201 = vector.load %arg1[%200, %c0_55, %c0_56] : memref<8x8x1xf32, #tpu.memory_space<vmem>>, vector<1x8x1xf32>
    %202 = vector.shape_cast %201 : vector<1x8x1xf32> to vector<8x1xf32>
    %203 = arith.mulf %202, %196 : vector<8x1xf32>
    %204 = vector.broadcast %203 : vector<8x1xf32> to vector<8x128xf32>
    %205 = vector.broadcast %0 : vector<1x128xf32> to vector<8x128xf32>
    %206 = arith.mulf %204, %205 : vector<8x128xf32>
    %207 = arith.addf %199, %206 : vector<8x128xf32>
    %208 = vector.extract_strided_slice %187 {offsets = [0, 0], sizes = [8, 128], strides = [1, 1]} : vector<8x258xf32> to vector<8x128xf32>
    %209 = arith.addf %207, %208 : vector<8x128xf32>
    %210 = math.tanh %209 : vector<8x128xf32>
    %cst_57 = arith.constant 1.000000e+00 : f32
    %211 = vector.broadcast %cst_57 : f32 to vector<8x128xf32>
    %212 = arith.addf %211, %210 : vector<8x128xf32>
    %cst_58 = arith.constant 5.000000e-01 : f32
    %213 = vector.broadcast %cst_58 : f32 to vector<8x128xf32>
    %214 = arith.mulf %213, %212 : vector<8x128xf32>
    %215 = vector.extract_strided_slice %214 {offsets = [0, 0], sizes = [8, 32], strides = [1, 1]} : vector<8x128xf32> to vector<8x32xf32>
    %216 = vector.extract_strided_slice %214 {offsets = [0, 32], sizes = [8, 32], strides = [1, 1]} : vector<8x128xf32> to vector<8x32xf32>
    %217 = vector.extract_strided_slice %210 {offsets = [0, 64], sizes = [8, 32], strides = [1, 1]} : vector<8x128xf32> to vector<8x32xf32>
    %218 = vector.extract_strided_slice %214 {offsets = [0, 96], sizes = [8, 32], strides = [1, 1]} : vector<8x128xf32> to vector<8x32xf32>
    %219 = arith.mulf %216, %162 : vector<8x32xf32>
    %220 = arith.mulf %215, %217 : vector<8x32xf32>
    %221 = arith.addf %219, %220 : vector<8x32xf32>
    %222 = math.tanh %221 : vector<8x32xf32>
    %223 = arith.mulf %218, %222 : vector<8x32xf32>
    %cst_59 = arith.constant dense<0.000000e+00> : vector<8x130xf32>
    %224 = tpu.matmul %223, %2, %cst_59 {dimension_numbers = #tpu.dot_dimension_numbers<[1], [0], [0], [1], [0, 0, 1, 1], [], []>} : vector<8x32xf32>, vector<32x130xf32>, vector<8x130xf32> -> vector<8x130xf32>
    %225 = vector.extract_strided_slice %224 {offsets = [0, 0], sizes = [8, 128], strides = [1, 1]} : vector<8x130xf32> to vector<8x128xf32>
    %226 = vector.extract_strided_slice %187 {offsets = [0, 128], sizes = [8, 128], strides = [1, 1]} : vector<8x258xf32> to vector<8x128xf32>
    %227 = arith.addf %225, %226 : vector<8x128xf32>
    %228 = vector.broadcast %3 : vector<1x128xf32> to vector<8x128xf32>
    %229 = arith.addf %227, %228 : vector<8x128xf32>
    %230 = math.tanh %229 : vector<8x128xf32>
    %cst_60 = arith.constant 1.000000e+00 : f32
    %231 = vector.broadcast %cst_60 : f32 to vector<8x128xf32>
    %232 = arith.addf %231, %230 : vector<8x128xf32>
    %cst_61 = arith.constant 5.000000e-01 : f32
    %233 = vector.broadcast %cst_61 : f32 to vector<8x128xf32>
    %234 = arith.mulf %233, %232 : vector<8x128xf32>
    %235 = vector.extract_strided_slice %234 {offsets = [0, 0], sizes = [8, 32], strides = [1, 1]} : vector<8x128xf32> to vector<8x32xf32>
    %236 = vector.extract_strided_slice %234 {offsets = [0, 32], sizes = [8, 32], strides = [1, 1]} : vector<8x128xf32> to vector<8x32xf32>
    %237 = vector.extract_strided_slice %230 {offsets = [0, 64], sizes = [8, 32], strides = [1, 1]} : vector<8x128xf32> to vector<8x32xf32>
    %238 = vector.extract_strided_slice %234 {offsets = [0, 96], sizes = [8, 32], strides = [1, 1]} : vector<8x128xf32> to vector<8x32xf32>
    %239 = arith.mulf %236, %182 : vector<8x32xf32>
    %240 = arith.mulf %235, %237 : vector<8x32xf32>
    %241 = arith.addf %239, %240 : vector<8x32xf32>
    %242 = math.tanh %241 : vector<8x32xf32>
    %243 = arith.mulf %238, %242 : vector<8x32xf32>
    %244 = tpu.concatenate %223, %243 in 1 : vector<8x32xf32>, vector<8x32xf32> -> vector<8x64xf32>
    %245 = vector.extract_strided_slice %224 {offsets = [0, 128], sizes = [8, 2], strides = [1, 1]} : vector<8x130xf32> to vector<8x2xf32>
    %c4_i32 = arith.constant 4 : i32
    %cst_62 = arith.constant dense<0.000000e+00> : vector<8x258xf32>
    %246 = tpu.matmul %244, %1, %cst_62 {dimension_numbers = #tpu.dot_dimension_numbers<[1], [0], [0], [1], [0, 0, 1, 1], [], []>} : vector<8x64xf32>, vector<64x258xf32>, vector<8x258xf32> -> vector<8x258xf32>
    %247 = vector.extract_strided_slice %246 {offsets = [0, 256], sizes = [8, 2], strides = [1, 1]} : vector<8x258xf32> to vector<8x2xf32>
    %248 = arith.addf %245, %247 : vector<8x2xf32>
    %249 = vector.broadcast %5 : vector<1x2xf32> to vector<8x2xf32>
    %250 = arith.addf %248, %249 : vector<8x2xf32>
    %251 = arith.index_cast %c4_i32 : i32 to index
    %c0_63 = arith.constant 0 : index
    %c0_64 = arith.constant 0 : index
    %252 = vector.load %arg9[%251, %c0_63, %c0_64] : memref<9x8x2xf32, #tpu.memory_space<vmem>>, vector<1x8x2xf32>
    %253 = vector.shape_cast %252 : vector<1x8x2xf32> to vector<8x2xf32>
    %254 = vector.shape_cast %250 : vector<8x2xf32> to vector<1x8x2xf32>
    tpu.vector_store %arg9[%251, %c0_63, %c0_64], %254 {strides = array<i32>} : memref<9x8x2xf32, #tpu.memory_space<vmem>>, vector<1x8x2xf32>,
    %255 = vector.extract_strided_slice %250 {offsets = [0, 0], sizes = [8, 1], strides = [1, 1]} : vector<8x2xf32> to vector<8x1xf32>
    %256 = arith.index_cast %c4_i32 : i32 to index
    %c0_65 = arith.constant 0 : index
    %c0_66 = arith.constant 0 : index
    %257 = vector.load %arg2[%256, %c0_65, %c0_66] : memref<8x8x128xf32, #tpu.memory_space<vmem>>, vector<1x8x128xf32>
    %258 = vector.shape_cast %257 : vector<1x8x128xf32> to vector<8x128xf32>
    %259 = arith.index_cast %c4_i32 : i32 to index
    %c0_67 = arith.constant 0 : index
    %c0_68 = arith.constant 0 : index
    %260 = vector.load %arg1[%259, %c0_67, %c0_68] : memref<8x8x1xf32, #tpu.memory_space<vmem>>, vector<1x8x1xf32>
    %261 = vector.shape_cast %260 : vector<1x8x1xf32> to vector<8x1xf32>
    %262 = arith.mulf %261, %255 : vector<8x1xf32>
    %263 = vector.broadcast %262 : vector<8x1xf32> to vector<8x128xf32>
    %264 = vector.broadcast %0 : vector<1x128xf32> to vector<8x128xf32>
    %265 = arith.mulf %263, %264 : vector<8x128xf32>
    %266 = arith.addf %258, %265 : vector<8x128xf32>
    %267 = vector.extract_strided_slice %246 {offsets = [0, 0], sizes = [8, 128], strides = [1, 1]} : vector<8x258xf32> to vector<8x128xf32>
    %268 = arith.addf %266, %267 : vector<8x128xf32>
    %269 = math.tanh %268 : vector<8x128xf32>
    %cst_69 = arith.constant 1.000000e+00 : f32
    %270 = vector.broadcast %cst_69 : f32 to vector<8x128xf32>
    %271 = arith.addf %270, %269 : vector<8x128xf32>
    %cst_70 = arith.constant 5.000000e-01 : f32
    %272 = vector.broadcast %cst_70 : f32 to vector<8x128xf32>
    %273 = arith.mulf %272, %271 : vector<8x128xf32>
    %274 = vector.extract_strided_slice %273 {offsets = [0, 0], sizes = [8, 32], strides = [1, 1]} : vector<8x128xf32> to vector<8x32xf32>
    %275 = vector.extract_strided_slice %273 {offsets = [0, 32], sizes = [8, 32], strides = [1, 1]} : vector<8x128xf32> to vector<8x32xf32>
    %276 = vector.extract_strided_slice %269 {offsets = [0, 64], sizes = [8, 32], strides = [1, 1]} : vector<8x128xf32> to vector<8x32xf32>
    %277 = vector.extract_strided_slice %273 {offsets = [0, 96], sizes = [8, 32], strides = [1, 1]} : vector<8x128xf32> to vector<8x32xf32>
    %278 = arith.mulf %275, %221 : vector<8x32xf32>
    %279 = arith.mulf %274, %276 : vector<8x32xf32>
    %280 = arith.addf %278, %279 : vector<8x32xf32>
    %281 = math.tanh %280 : vector<8x32xf32>
    %282 = arith.mulf %277, %281 : vector<8x32xf32>
    %cst_71 = arith.constant dense<0.000000e+00> : vector<8x130xf32>
    %283 = tpu.matmul %282, %2, %cst_71 {dimension_numbers = #tpu.dot_dimension_numbers<[1], [0], [0], [1], [0, 0, 1, 1], [], []>} : vector<8x32xf32>, vector<32x130xf32>, vector<8x130xf32> -> vector<8x130xf32>
    %284 = vector.extract_strided_slice %283 {offsets = [0, 0], sizes = [8, 128], strides = [1, 1]} : vector<8x130xf32> to vector<8x128xf32>
    %285 = vector.extract_strided_slice %246 {offsets = [0, 128], sizes = [8, 128], strides = [1, 1]} : vector<8x258xf32> to vector<8x128xf32>
    %286 = arith.addf %284, %285 : vector<8x128xf32>
    %287 = vector.broadcast %3 : vector<1x128xf32> to vector<8x128xf32>
    %288 = arith.addf %286, %287 : vector<8x128xf32>
    %289 = math.tanh %288 : vector<8x128xf32>
    %cst_72 = arith.constant 1.000000e+00 : f32
    %290 = vector.broadcast %cst_72 : f32 to vector<8x128xf32>
    %291 = arith.addf %290, %289 : vector<8x128xf32>
    %cst_73 = arith.constant 5.000000e-01 : f32
    %292 = vector.broadcast %cst_73 : f32 to vector<8x128xf32>
    %293 = arith.mulf %292, %291 : vector<8x128xf32>
    %294 = vector.extract_strided_slice %293 {offsets = [0, 0], sizes = [8, 32], strides = [1, 1]} : vector<8x128xf32> to vector<8x32xf32>
    %295 = vector.extract_strided_slice %293 {offsets = [0, 32], sizes = [8, 32], strides = [1, 1]} : vector<8x128xf32> to vector<8x32xf32>
    %296 = vector.extract_strided_slice %289 {offsets = [0, 64], sizes = [8, 32], strides = [1, 1]} : vector<8x128xf32> to vector<8x32xf32>
    %297 = vector.extract_strided_slice %293 {offsets = [0, 96], sizes = [8, 32], strides = [1, 1]} : vector<8x128xf32> to vector<8x32xf32>
    %298 = arith.mulf %295, %241 : vector<8x32xf32>
    %299 = arith.mulf %294, %296 : vector<8x32xf32>
    %300 = arith.addf %298, %299 : vector<8x32xf32>
    %301 = math.tanh %300 : vector<8x32xf32>
    %302 = arith.mulf %297, %301 : vector<8x32xf32>
    %303 = tpu.concatenate %282, %302 in 1 : vector<8x32xf32>, vector<8x32xf32> -> vector<8x64xf32>
    %304 = vector.extract_strided_slice %283 {offsets = [0, 128], sizes = [8, 2], strides = [1, 1]} : vector<8x130xf32> to vector<8x2xf32>
    %c5_i32 = arith.constant 5 : i32
    %cst_74 = arith.constant dense<0.000000e+00> : vector<8x258xf32>
    %305 = tpu.matmul %303, %1, %cst_74 {dimension_numbers = #tpu.dot_dimension_numbers<[1], [0], [0], [1], [0, 0, 1, 1], [], []>} : vector<8x64xf32>, vector<64x258xf32>, vector<8x258xf32> -> vector<8x258xf32>
    %306 = vector.extract_strided_slice %305 {offsets = [0, 256], sizes = [8, 2], strides = [1, 1]} : vector<8x258xf32> to vector<8x2xf32>
    %307 = arith.addf %304, %306 : vector<8x2xf32>
    %308 = vector.broadcast %5 : vector<1x2xf32> to vector<8x2xf32>
    %309 = arith.addf %307, %308 : vector<8x2xf32>
    %310 = arith.index_cast %c5_i32 : i32 to index
    %c0_75 = arith.constant 0 : index
    %c0_76 = arith.constant 0 : index
    %311 = vector.load %arg9[%310, %c0_75, %c0_76] : memref<9x8x2xf32, #tpu.memory_space<vmem>>, vector<1x8x2xf32>
    %312 = vector.shape_cast %311 : vector<1x8x2xf32> to vector<8x2xf32>
    %313 = vector.shape_cast %309 : vector<8x2xf32> to vector<1x8x2xf32>
    tpu.vector_store %arg9[%310, %c0_75, %c0_76], %313 {strides = array<i32>} : memref<9x8x2xf32, #tpu.memory_space<vmem>>, vector<1x8x2xf32>,
    %314 = vector.extract_strided_slice %309 {offsets = [0, 0], sizes = [8, 1], strides = [1, 1]} : vector<8x2xf32> to vector<8x1xf32>
    %315 = arith.index_cast %c5_i32 : i32 to index
    %c0_77 = arith.constant 0 : index
    %c0_78 = arith.constant 0 : index
    %316 = vector.load %arg2[%315, %c0_77, %c0_78] : memref<8x8x128xf32, #tpu.memory_space<vmem>>, vector<1x8x128xf32>
    %317 = vector.shape_cast %316 : vector<1x8x128xf32> to vector<8x128xf32>
    %318 = arith.index_cast %c5_i32 : i32 to index
    %c0_79 = arith.constant 0 : index
    %c0_80 = arith.constant 0 : index
    %319 = vector.load %arg1[%318, %c0_79, %c0_80] : memref<8x8x1xf32, #tpu.memory_space<vmem>>, vector<1x8x1xf32>
    %320 = vector.shape_cast %319 : vector<1x8x1xf32> to vector<8x1xf32>
    %321 = arith.mulf %320, %314 : vector<8x1xf32>
    %322 = vector.broadcast %321 : vector<8x1xf32> to vector<8x128xf32>
    %323 = vector.broadcast %0 : vector<1x128xf32> to vector<8x128xf32>
    %324 = arith.mulf %322, %323 : vector<8x128xf32>
    %325 = arith.addf %317, %324 : vector<8x128xf32>
    %326 = vector.extract_strided_slice %305 {offsets = [0, 0], sizes = [8, 128], strides = [1, 1]} : vector<8x258xf32> to vector<8x128xf32>
    %327 = arith.addf %325, %326 : vector<8x128xf32>
    %328 = math.tanh %327 : vector<8x128xf32>
    %cst_81 = arith.constant 1.000000e+00 : f32
    %329 = vector.broadcast %cst_81 : f32 to vector<8x128xf32>
    %330 = arith.addf %329, %328 : vector<8x128xf32>
    %cst_82 = arith.constant 5.000000e-01 : f32
    %331 = vector.broadcast %cst_82 : f32 to vector<8x128xf32>
    %332 = arith.mulf %331, %330 : vector<8x128xf32>
    %333 = vector.extract_strided_slice %332 {offsets = [0, 0], sizes = [8, 32], strides = [1, 1]} : vector<8x128xf32> to vector<8x32xf32>
    %334 = vector.extract_strided_slice %332 {offsets = [0, 32], sizes = [8, 32], strides = [1, 1]} : vector<8x128xf32> to vector<8x32xf32>
    %335 = vector.extract_strided_slice %328 {offsets = [0, 64], sizes = [8, 32], strides = [1, 1]} : vector<8x128xf32> to vector<8x32xf32>
    %336 = vector.extract_strided_slice %332 {offsets = [0, 96], sizes = [8, 32], strides = [1, 1]} : vector<8x128xf32> to vector<8x32xf32>
    %337 = arith.mulf %334, %280 : vector<8x32xf32>
    %338 = arith.mulf %333, %335 : vector<8x32xf32>
    %339 = arith.addf %337, %338 : vector<8x32xf32>
    %340 = math.tanh %339 : vector<8x32xf32>
    %341 = arith.mulf %336, %340 : vector<8x32xf32>
    %cst_83 = arith.constant dense<0.000000e+00> : vector<8x130xf32>
    %342 = tpu.matmul %341, %2, %cst_83 {dimension_numbers = #tpu.dot_dimension_numbers<[1], [0], [0], [1], [0, 0, 1, 1], [], []>} : vector<8x32xf32>, vector<32x130xf32>, vector<8x130xf32> -> vector<8x130xf32>
    %343 = vector.extract_strided_slice %342 {offsets = [0, 0], sizes = [8, 128], strides = [1, 1]} : vector<8x130xf32> to vector<8x128xf32>
    %344 = vector.extract_strided_slice %305 {offsets = [0, 128], sizes = [8, 128], strides = [1, 1]} : vector<8x258xf32> to vector<8x128xf32>
    %345 = arith.addf %343, %344 : vector<8x128xf32>
    %346 = vector.broadcast %3 : vector<1x128xf32> to vector<8x128xf32>
    %347 = arith.addf %345, %346 : vector<8x128xf32>
    %348 = math.tanh %347 : vector<8x128xf32>
    %cst_84 = arith.constant 1.000000e+00 : f32
    %349 = vector.broadcast %cst_84 : f32 to vector<8x128xf32>
    %350 = arith.addf %349, %348 : vector<8x128xf32>
    %cst_85 = arith.constant 5.000000e-01 : f32
    %351 = vector.broadcast %cst_85 : f32 to vector<8x128xf32>
    %352 = arith.mulf %351, %350 : vector<8x128xf32>
    %353 = vector.extract_strided_slice %352 {offsets = [0, 0], sizes = [8, 32], strides = [1, 1]} : vector<8x128xf32> to vector<8x32xf32>
    %354 = vector.extract_strided_slice %352 {offsets = [0, 32], sizes = [8, 32], strides = [1, 1]} : vector<8x128xf32> to vector<8x32xf32>
    %355 = vector.extract_strided_slice %348 {offsets = [0, 64], sizes = [8, 32], strides = [1, 1]} : vector<8x128xf32> to vector<8x32xf32>
    %356 = vector.extract_strided_slice %352 {offsets = [0, 96], sizes = [8, 32], strides = [1, 1]} : vector<8x128xf32> to vector<8x32xf32>
    %357 = arith.mulf %354, %300 : vector<8x32xf32>
    %358 = arith.mulf %353, %355 : vector<8x32xf32>
    %359 = arith.addf %357, %358 : vector<8x32xf32>
    %360 = math.tanh %359 : vector<8x32xf32>
    %361 = arith.mulf %356, %360 : vector<8x32xf32>
    %362 = tpu.concatenate %341, %361 in 1 : vector<8x32xf32>, vector<8x32xf32> -> vector<8x64xf32>
    %363 = vector.extract_strided_slice %342 {offsets = [0, 128], sizes = [8, 2], strides = [1, 1]} : vector<8x130xf32> to vector<8x2xf32>
    %c6_i32 = arith.constant 6 : i32
    %cst_86 = arith.constant dense<0.000000e+00> : vector<8x258xf32>
    %364 = tpu.matmul %362, %1, %cst_86 {dimension_numbers = #tpu.dot_dimension_numbers<[1], [0], [0], [1], [0, 0, 1, 1], [], []>} : vector<8x64xf32>, vector<64x258xf32>, vector<8x258xf32> -> vector<8x258xf32>
    %365 = vector.extract_strided_slice %364 {offsets = [0, 256], sizes = [8, 2], strides = [1, 1]} : vector<8x258xf32> to vector<8x2xf32>
    %366 = arith.addf %363, %365 : vector<8x2xf32>
    %367 = vector.broadcast %5 : vector<1x2xf32> to vector<8x2xf32>
    %368 = arith.addf %366, %367 : vector<8x2xf32>
    %369 = arith.index_cast %c6_i32 : i32 to index
    %c0_87 = arith.constant 0 : index
    %c0_88 = arith.constant 0 : index
    %370 = vector.load %arg9[%369, %c0_87, %c0_88] : memref<9x8x2xf32, #tpu.memory_space<vmem>>, vector<1x8x2xf32>
    %371 = vector.shape_cast %370 : vector<1x8x2xf32> to vector<8x2xf32>
    %372 = vector.shape_cast %368 : vector<8x2xf32> to vector<1x8x2xf32>
    tpu.vector_store %arg9[%369, %c0_87, %c0_88], %372 {strides = array<i32>} : memref<9x8x2xf32, #tpu.memory_space<vmem>>, vector<1x8x2xf32>,
    %373 = vector.extract_strided_slice %368 {offsets = [0, 0], sizes = [8, 1], strides = [1, 1]} : vector<8x2xf32> to vector<8x1xf32>
    %374 = arith.index_cast %c6_i32 : i32 to index
    %c0_89 = arith.constant 0 : index
    %c0_90 = arith.constant 0 : index
    %375 = vector.load %arg2[%374, %c0_89, %c0_90] : memref<8x8x128xf32, #tpu.memory_space<vmem>>, vector<1x8x128xf32>
    %376 = vector.shape_cast %375 : vector<1x8x128xf32> to vector<8x128xf32>
    %377 = arith.index_cast %c6_i32 : i32 to index
    %c0_91 = arith.constant 0 : index
    %c0_92 = arith.constant 0 : index
    %378 = vector.load %arg1[%377, %c0_91, %c0_92] : memref<8x8x1xf32, #tpu.memory_space<vmem>>, vector<1x8x1xf32>
    %379 = vector.shape_cast %378 : vector<1x8x1xf32> to vector<8x1xf32>
    %380 = arith.mulf %379, %373 : vector<8x1xf32>
    %381 = vector.broadcast %380 : vector<8x1xf32> to vector<8x128xf32>
    %382 = vector.broadcast %0 : vector<1x128xf32> to vector<8x128xf32>
    %383 = arith.mulf %381, %382 : vector<8x128xf32>
    %384 = arith.addf %376, %383 : vector<8x128xf32>
    %385 = vector.extract_strided_slice %364 {offsets = [0, 0], sizes = [8, 128], strides = [1, 1]} : vector<8x258xf32> to vector<8x128xf32>
    %386 = arith.addf %384, %385 : vector<8x128xf32>
    %387 = math.tanh %386 : vector<8x128xf32>
    %cst_93 = arith.constant 1.000000e+00 : f32
    %388 = vector.broadcast %cst_93 : f32 to vector<8x128xf32>
    %389 = arith.addf %388, %387 : vector<8x128xf32>
    %cst_94 = arith.constant 5.000000e-01 : f32
    %390 = vector.broadcast %cst_94 : f32 to vector<8x128xf32>
    %391 = arith.mulf %390, %389 : vector<8x128xf32>
    %392 = vector.extract_strided_slice %391 {offsets = [0, 0], sizes = [8, 32], strides = [1, 1]} : vector<8x128xf32> to vector<8x32xf32>
    %393 = vector.extract_strided_slice %391 {offsets = [0, 32], sizes = [8, 32], strides = [1, 1]} : vector<8x128xf32> to vector<8x32xf32>
    %394 = vector.extract_strided_slice %387 {offsets = [0, 64], sizes = [8, 32], strides = [1, 1]} : vector<8x128xf32> to vector<8x32xf32>
    %395 = vector.extract_strided_slice %391 {offsets = [0, 96], sizes = [8, 32], strides = [1, 1]} : vector<8x128xf32> to vector<8x32xf32>
    %396 = arith.mulf %393, %339 : vector<8x32xf32>
    %397 = arith.mulf %392, %394 : vector<8x32xf32>
    %398 = arith.addf %396, %397 : vector<8x32xf32>
    %399 = math.tanh %398 : vector<8x32xf32>
    %400 = arith.mulf %395, %399 : vector<8x32xf32>
    %cst_95 = arith.constant dense<0.000000e+00> : vector<8x130xf32>
    %401 = tpu.matmul %400, %2, %cst_95 {dimension_numbers = #tpu.dot_dimension_numbers<[1], [0], [0], [1], [0, 0, 1, 1], [], []>} : vector<8x32xf32>, vector<32x130xf32>, vector<8x130xf32> -> vector<8x130xf32>
    %402 = vector.extract_strided_slice %401 {offsets = [0, 0], sizes = [8, 128], strides = [1, 1]} : vector<8x130xf32> to vector<8x128xf32>
    %403 = vector.extract_strided_slice %364 {offsets = [0, 128], sizes = [8, 128], strides = [1, 1]} : vector<8x258xf32> to vector<8x128xf32>
    %404 = arith.addf %402, %403 : vector<8x128xf32>
    %405 = vector.broadcast %3 : vector<1x128xf32> to vector<8x128xf32>
    %406 = arith.addf %404, %405 : vector<8x128xf32>
    %407 = math.tanh %406 : vector<8x128xf32>
    %cst_96 = arith.constant 1.000000e+00 : f32
    %408 = vector.broadcast %cst_96 : f32 to vector<8x128xf32>
    %409 = arith.addf %408, %407 : vector<8x128xf32>
    %cst_97 = arith.constant 5.000000e-01 : f32
    %410 = vector.broadcast %cst_97 : f32 to vector<8x128xf32>
    %411 = arith.mulf %410, %409 : vector<8x128xf32>
    %412 = vector.extract_strided_slice %411 {offsets = [0, 0], sizes = [8, 32], strides = [1, 1]} : vector<8x128xf32> to vector<8x32xf32>
    %413 = vector.extract_strided_slice %411 {offsets = [0, 32], sizes = [8, 32], strides = [1, 1]} : vector<8x128xf32> to vector<8x32xf32>
    %414 = vector.extract_strided_slice %407 {offsets = [0, 64], sizes = [8, 32], strides = [1, 1]} : vector<8x128xf32> to vector<8x32xf32>
    %415 = vector.extract_strided_slice %411 {offsets = [0, 96], sizes = [8, 32], strides = [1, 1]} : vector<8x128xf32> to vector<8x32xf32>
    %416 = arith.mulf %413, %359 : vector<8x32xf32>
    %417 = arith.mulf %412, %414 : vector<8x32xf32>
    %418 = arith.addf %416, %417 : vector<8x32xf32>
    %419 = math.tanh %418 : vector<8x32xf32>
    %420 = arith.mulf %415, %419 : vector<8x32xf32>
    %421 = tpu.concatenate %400, %420 in 1 : vector<8x32xf32>, vector<8x32xf32> -> vector<8x64xf32>
    %422 = vector.extract_strided_slice %401 {offsets = [0, 128], sizes = [8, 2], strides = [1, 1]} : vector<8x130xf32> to vector<8x2xf32>
    %c7_i32 = arith.constant 7 : i32
    %cst_98 = arith.constant dense<0.000000e+00> : vector<8x258xf32>
    %423 = tpu.matmul %421, %1, %cst_98 {dimension_numbers = #tpu.dot_dimension_numbers<[1], [0], [0], [1], [0, 0, 1, 1], [], []>} : vector<8x64xf32>, vector<64x258xf32>, vector<8x258xf32> -> vector<8x258xf32>
    %424 = vector.extract_strided_slice %423 {offsets = [0, 256], sizes = [8, 2], strides = [1, 1]} : vector<8x258xf32> to vector<8x2xf32>
    %425 = arith.addf %422, %424 : vector<8x2xf32>
    %426 = vector.broadcast %5 : vector<1x2xf32> to vector<8x2xf32>
    %427 = arith.addf %425, %426 : vector<8x2xf32>
    %428 = arith.index_cast %c7_i32 : i32 to index
    %c0_99 = arith.constant 0 : index
    %c0_100 = arith.constant 0 : index
    %429 = vector.load %arg9[%428, %c0_99, %c0_100] : memref<9x8x2xf32, #tpu.memory_space<vmem>>, vector<1x8x2xf32>
    %430 = vector.shape_cast %429 : vector<1x8x2xf32> to vector<8x2xf32>
    %431 = vector.shape_cast %427 : vector<8x2xf32> to vector<1x8x2xf32>
    tpu.vector_store %arg9[%428, %c0_99, %c0_100], %431 {strides = array<i32>} : memref<9x8x2xf32, #tpu.memory_space<vmem>>, vector<1x8x2xf32>,
    %432 = vector.extract_strided_slice %427 {offsets = [0, 0], sizes = [8, 1], strides = [1, 1]} : vector<8x2xf32> to vector<8x1xf32>
    %433 = arith.index_cast %c7_i32 : i32 to index
    %c0_101 = arith.constant 0 : index
    %c0_102 = arith.constant 0 : index
    %434 = vector.load %arg2[%433, %c0_101, %c0_102] : memref<8x8x128xf32, #tpu.memory_space<vmem>>, vector<1x8x128xf32>
    %435 = vector.shape_cast %434 : vector<1x8x128xf32> to vector<8x128xf32>
    %436 = arith.index_cast %c7_i32 : i32 to index
    %c0_103 = arith.constant 0 : index
    %c0_104 = arith.constant 0 : index
    %437 = vector.load %arg1[%436, %c0_103, %c0_104] : memref<8x8x1xf32, #tpu.memory_space<vmem>>, vector<1x8x1xf32>
    %438 = vector.shape_cast %437 : vector<1x8x1xf32> to vector<8x1xf32>
    %439 = arith.mulf %438, %432 : vector<8x1xf32>
    %440 = vector.broadcast %439 : vector<8x1xf32> to vector<8x128xf32>
    %441 = vector.broadcast %0 : vector<1x128xf32> to vector<8x128xf32>
    %442 = arith.mulf %440, %441 : vector<8x128xf32>
    %443 = arith.addf %435, %442 : vector<8x128xf32>
    %444 = vector.extract_strided_slice %423 {offsets = [0, 0], sizes = [8, 128], strides = [1, 1]} : vector<8x258xf32> to vector<8x128xf32>
    %445 = arith.addf %443, %444 : vector<8x128xf32>
    %446 = math.tanh %445 : vector<8x128xf32>
    %cst_105 = arith.constant 1.000000e+00 : f32
    %447 = vector.broadcast %cst_105 : f32 to vector<8x128xf32>
    %448 = arith.addf %447, %446 : vector<8x128xf32>
    %cst_106 = arith.constant 5.000000e-01 : f32
    %449 = vector.broadcast %cst_106 : f32 to vector<8x128xf32>
    %450 = arith.mulf %449, %448 : vector<8x128xf32>
    %451 = vector.extract_strided_slice %450 {offsets = [0, 0], sizes = [8, 32], strides = [1, 1]} : vector<8x128xf32> to vector<8x32xf32>
    %452 = vector.extract_strided_slice %450 {offsets = [0, 32], sizes = [8, 32], strides = [1, 1]} : vector<8x128xf32> to vector<8x32xf32>
    %453 = vector.extract_strided_slice %446 {offsets = [0, 64], sizes = [8, 32], strides = [1, 1]} : vector<8x128xf32> to vector<8x32xf32>
    %454 = vector.extract_strided_slice %450 {offsets = [0, 96], sizes = [8, 32], strides = [1, 1]} : vector<8x128xf32> to vector<8x32xf32>
    %455 = arith.mulf %452, %398 : vector<8x32xf32>
    %456 = arith.mulf %451, %453 : vector<8x32xf32>
    %457 = arith.addf %455, %456 : vector<8x32xf32>
    %458 = math.tanh %457 : vector<8x32xf32>
    %459 = arith.mulf %454, %458 : vector<8x32xf32>
    %cst_107 = arith.constant dense<0.000000e+00> : vector<8x130xf32>
    %460 = tpu.matmul %459, %2, %cst_107 {dimension_numbers = #tpu.dot_dimension_numbers<[1], [0], [0], [1], [0, 0, 1, 1], [], []>} : vector<8x32xf32>, vector<32x130xf32>, vector<8x130xf32> -> vector<8x130xf32>
    %461 = vector.extract_strided_slice %460 {offsets = [0, 0], sizes = [8, 128], strides = [1, 1]} : vector<8x130xf32> to vector<8x128xf32>
    %462 = vector.extract_strided_slice %423 {offsets = [0, 128], sizes = [8, 128], strides = [1, 1]} : vector<8x258xf32> to vector<8x128xf32>
    %463 = arith.addf %461, %462 : vector<8x128xf32>
    %464 = vector.broadcast %3 : vector<1x128xf32> to vector<8x128xf32>
    %465 = arith.addf %463, %464 : vector<8x128xf32>
    %466 = math.tanh %465 : vector<8x128xf32>
    %cst_108 = arith.constant 1.000000e+00 : f32
    %467 = vector.broadcast %cst_108 : f32 to vector<8x128xf32>
    %468 = arith.addf %467, %466 : vector<8x128xf32>
    %cst_109 = arith.constant 5.000000e-01 : f32
    %469 = vector.broadcast %cst_109 : f32 to vector<8x128xf32>
    %470 = arith.mulf %469, %468 : vector<8x128xf32>
    %471 = vector.extract_strided_slice %470 {offsets = [0, 0], sizes = [8, 32], strides = [1, 1]} : vector<8x128xf32> to vector<8x32xf32>
    %472 = vector.extract_strided_slice %470 {offsets = [0, 32], sizes = [8, 32], strides = [1, 1]} : vector<8x128xf32> to vector<8x32xf32>
    %473 = vector.extract_strided_slice %466 {offsets = [0, 64], sizes = [8, 32], strides = [1, 1]} : vector<8x128xf32> to vector<8x32xf32>
    %474 = vector.extract_strided_slice %470 {offsets = [0, 96], sizes = [8, 32], strides = [1, 1]} : vector<8x128xf32> to vector<8x32xf32>
    %475 = arith.mulf %472, %418 : vector<8x32xf32>
    %476 = arith.mulf %471, %473 : vector<8x32xf32>
    %477 = arith.addf %475, %476 : vector<8x32xf32>
    %478 = math.tanh %477 : vector<8x32xf32>
    %479 = arith.mulf %474, %478 : vector<8x32xf32>
    %480 = tpu.concatenate %459, %479 in 1 : vector<8x32xf32>, vector<8x32xf32> -> vector<8x64xf32>
    %481 = vector.extract_strided_slice %460 {offsets = [0, 128], sizes = [8, 2], strides = [1, 1]} : vector<8x130xf32> to vector<8x2xf32>
    %c8_i32 = arith.constant 8 : i32
    %482 = vector.extract_strided_slice %480 {offsets = [0, 32], sizes = [8, 32], strides = [1, 1]} : vector<8x64xf32> to vector<8x32xf32>
    %cst_110 = arith.constant dense<0.000000e+00> : vector<8x2xf32>
    %483 = tpu.matmul %482, %4, %cst_110 {dimension_numbers = #tpu.dot_dimension_numbers<[1], [0], [0], [1], [0, 0, 1, 1], [], []>} : vector<8x32xf32>, vector<32x2xf32>, vector<8x2xf32> -> vector<8x2xf32>
    %484 = arith.addf %481, %483 : vector<8x2xf32>
    %485 = vector.broadcast %5 : vector<1x2xf32> to vector<8x2xf32>
    %486 = arith.addf %484, %485 : vector<8x2xf32>
    %c8 = arith.constant 8 : index
    %c0_111 = arith.constant 0 : index
    %c0_112 = arith.constant 0 : index
    %487 = vector.load %arg9[%c8, %c0_111, %c0_112] : memref<9x8x2xf32, #tpu.memory_space<vmem>>, vector<1x8x2xf32>
    %488 = vector.shape_cast %487 : vector<1x8x2xf32> to vector<8x2xf32>
    %489 = vector.shape_cast %486 : vector<8x2xf32> to vector<1x8x2xf32>
    tpu.vector_store %arg9[%c8, %c0_111, %c0_112], %489 {strides = array<i32>} : memref<9x8x2xf32, #tpu.memory_space<vmem>>, vector<1x8x2xf32>,
    %c0_113 = arith.constant 0 : index
    %c0_114 = arith.constant 0 : index
    %c0_115 = arith.constant 0 : index
    %490 = vector.load %arg9[%c0_113, %c0_114, %c0_115] : memref<9x8x2xf32, #tpu.memory_space<vmem>>, vector<9x8x2xf32>
    %491 = vector.extract_strided_slice %490 {offsets = [0, 0, 0], sizes = [9, 8, 1], strides = [1, 1, 1]} : vector<9x8x2xf32> to vector<9x8x1xf32>
    %492 = vector.extract_strided_slice %490 {offsets = [0, 0, 1], sizes = [9, 8, 1], strides = [1, 1, 1]} : vector<9x8x2xf32> to vector<9x8x1xf32>
    %cst_116 = arith.constant 2.000000e+01 : f32
    %493 = vector.broadcast %cst_116 : f32 to vector<9x8x1xf32>
    %494 = arith.cmpf ogt, %492, %493 : vector<9x8x1xf32>
    %cst_117 = arith.constant 2.000000e+01 : f32
    %495 = vector.broadcast %cst_117 : f32 to vector<9x8x1xf32>
    %496 = arith.minimumf %492, %495 : vector<9x8x1xf32>
    %497 = math.exp %496 : vector<9x8x1xf32>
    %498 = math.log1p %497 : vector<9x8x1xf32>
    %499 = arith.select %494, %492, %498 : vector<9x8x1xi1>, vector<9x8x1xf32>
    %500 = tpu.concatenate %491, %499 in 2 : vector<9x8x1xf32>, vector<9x8x1xf32> -> vector<9x8x2xf32>
    %c0_118 = arith.constant 0 : index
    %c0_119 = arith.constant 0 : index
    %c0_120 = arith.constant 0 : index
    %501 = vector.load %arg9[%c0_118, %c0_119, %c0_120] : memref<9x8x2xf32, #tpu.memory_space<vmem>>, vector<9x8x2xf32>
    tpu.vector_store %arg9[%c0_118, %c0_119, %c0_120], %500 {strides = array<i32>} : memref<9x8x2xf32, #tpu.memory_space<vmem>>, vector<9x8x2xf32>,
    return
  }
  func.func @transform_0(%arg0: i32) -> (i32, i32, i32) {
    %c0_i32 = arith.constant 0 : i32
    %c0_i32_0 = arith.constant 0 : i32
    %c0_i32_1 = arith.constant 0 : i32
    return %c0_i32, %arg0, %c0_i32_0 : i32, i32, i32
  }
  func.func @transform_1(%arg0: i32) -> (i32, i32, i32) {
    %c0_i32 = arith.constant 0 : i32
    %c0_i32_0 = arith.constant 0 : i32
    %c0_i32_1 = arith.constant 0 : i32
    return %c0_i32, %arg0, %c0_i32_0 : i32, i32, i32
  }
  func.func @transform_2(%arg0: i32) -> (i32, i32) {
    %c0_i32 = arith.constant 0 : i32
    %c0_i32_0 = arith.constant 0 : i32
    %c0_i32_1 = arith.constant 0 : i32
    return %c0_i32, %c0_i32_0 : i32, i32
  }
  func.func @transform_3(%arg0: i32) -> (i32, i32) {
    %c0_i32 = arith.constant 0 : i32
    %c0_i32_0 = arith.constant 0 : i32
    %c0_i32_1 = arith.constant 0 : i32
    return %c0_i32, %c0_i32_0 : i32, i32
  }
  func.func @transform_4(%arg0: i32) -> (i32, i32) {
    %c0_i32 = arith.constant 0 : i32
    %c0_i32_0 = arith.constant 0 : i32
    %c0_i32_1 = arith.constant 0 : i32
    return %c0_i32, %c0_i32_0 : i32, i32
  }
  func.func @transform_5(%arg0: i32) -> (i32, i32) {
    %c0_i32 = arith.constant 0 : i32
    %c0_i32_0 = arith.constant 0 : i32
    %c0_i32_1 = arith.constant 0 : i32
    return %c0_i32, %c0_i32_0 : i32, i32
  }
  func.func @transform_6(%arg0: i32) -> (i32, i32) {
    %c0_i32 = arith.constant 0 : i32
    %c0_i32_0 = arith.constant 0 : i32
    %c0_i32_1 = arith.constant 0 : i32
    return %c0_i32, %c0_i32_0 : i32, i32
  }
  func.func @transform_7(%arg0: i32) -> (i32, i32) {
    %c0_i32 = arith.constant 0 : i32
    %c0_i32_0 = arith.constant 0 : i32
    %c0_i32_1 = arith.constant 0 : i32
    return %c0_i32, %c0_i32_0 : i32, i32
  }
  func.func @transform_8(%arg0: i32) -> (i32, i32, i32) {
    %c0_i32 = arith.constant 0 : i32
    %c0_i32_0 = arith.constant 0 : i32
    %c0_i32_1 = arith.constant 0 : i32
    return %c0_i32, %arg0, %c0_i32_0 : i32, i32, i32
  }
}

</mosaic_0001>

<bundles_post_ra>
// kernel: tpu_custom_call.1
= control target key start
LH: loop header
LB: loop body
LE: loop exit
PB: predicated region body
PF: predicated region fallthrough
CT: control target
= control target key end

     0   :  { %13 = vsyncpa [#allocation5], 0  ;;  %s4765_s0 = inlined_call_operand.vmem [shape: f32[8,16,1], index: 0, kind: input, shape index: {}]   ;;  %s4766_s1 = inlined_call_operand.vmem [shape: f32[8,16,128], index: 1, kind: input, shape index: {}]   ;;  %s4767_s2 = inlined_call_operand.vmem [shape: f32[1,128], index: 2, kind: input, shape index: {}]   ;;  %s4768_s3 = inlined_call_operand.hbm [shape: f32[64,258], index: 3, kind: input, shape index: {}]   ;;  %s4769_s4 = inlined_call_operand.hbm [shape: f32[32,130], index: 4, kind: input, shape index: {}]   ;;  %s4770_s5 = inlined_call_operand.vmem [shape: f32[1,128], index: 5, kind: input, shape index: {}]   ;;  %s4771_s6 = inlined_call_operand.vmem [shape: f32[32,2], index: 6, kind: input, shape index: {}]   ;;  %s4772_s7 = inlined_call_operand.vmem [shape: f32[1,2], index: 7, kind: input, shape index: {}]   ;;  %s4773_s8 = inlined_call_operand.vmem [shape: f32[9,16,2], index: 8, kind: output, shape index: {}]  }
   0x1   :  { %14 = vsyncpa [#allocation7], 0  ;;  %s3856_s27 = smov 0   ;;  %s3858_s28 = smov 0  }
   0x2   :  { %s3860_s29 = smov 0  }
   0x3 LB: > { %s3872_s30 = sadd.s32 4294967295, %s3797_s29   ;;  %s3875_s9 = sadd.s32 1, %s3797_s29   ;;  %s3797_s29 = sphi %s3860_s29, %s4786_s29   ;;  %s3793_s28 = sphi %s3858_s28, %s4785_s28   ;;  %s3789_s27 = sphi %s3856_s27, %s4784_s27  }
   0x4   : > { %s24_s10 = ssub.s32 %s3797_s29, %s3875_s9  ;;  %s27_s11 = sadd.s32 1, %s3793_s28 }
   0x5   : > { %p25_p0 = scmp.eq.s32.totalorder %s24_s10, 0  ;;  %p34_p1 = scmp.ne.s32.totalorder %s3793_s28, %s3789_s27 }
   0x6   : > { %p35_p2 = scmp.eq.s32.totalorder %s3797_s29, 0  ;;  %p216_p3 = scmp.eq.s32.totalorder %s3872_s30, 1 }
   0x7   : > { %s3885_s12 = scalar_select %p25_p0, %s3793_s28, %s27_s11  }
   0x8   : > { %p3887_p4 = por %p35_p2, %p34_p1  ;;  %p3891_p5 = por %p216_p3, %p34_p1 }
   0x9   : > { %p3218_p6 = scmp.ge.s32.totalorder %s3797_s29, 1  ;;  %p229_p7 = scmp.lt.s32.totalorder %s3797_s29, 3 }
   0xa   : > { %s4776_s14 = scalar_select %p3891_p5, 1, 0 }
   0xb   : > { %p4774_p8 = scmp.eq.s32.totalorder %s3872_s30, 0  ;;  %p3898_p9 = pnand %p3218_p6, %p229_p7 }
   0xc   : > { %s3799_s16 = smov [#allocation4]   ;;  %s3800_s19 = smov [#allocation6]  }
   0xd   : > { %s244_s17 = sshll.u32 %s3799_s16, 4  ;;  %p3531_p10 = pneg %p3898_p9  ;;  %s245_s17 = int_to_ptr.vmem [resolvable:$true] %s244_s17 }
   0xe   : > { %s257_s20 = sshll.u32 %s3800_s19, 4  ;;  %s3726_s21 = scalar_lea.vmem %s245_s17, 3072  ;;  %s258_s20 = int_to_ptr.vmem [resolvable:$true] %s257_s20 }
   0xf   : > { %p3906_p11 = pnand %p4774_p8, %p3531_p10  ;;  %p3727_p13 = scmp.ne.s32.totalorder %s245_s17, %s3726_s21 }
  0x10   : > { %p3734_p2 = scmp.lt.s32.totalorder %s245_s17, %s245_s17  ;;  %p3735_p3 = scmp.lt.s32.totalorder %s3726_s21, %s3726_s21 }
  0x11   : > { %p3717_p12 = pneg %p3906_p11 }
  0x12   : > { %p3736_p6 = por %p3735_p3, %p3734_p2 }
  0x13   : > { %p3729_p0 = pnand %p3727_p13, %p3717_p12 }
  0x15   : > { %p3730_p1 = pneg %p3729_p0 }
  0x17   : > { %p3737_p7 = pnand %p3736_p6, %p3730_p1 }
  0x19   : > { %3740 = shalt.err (!%p3737_p7)
}
  0x1a   : > { %s3801_s22 = smov 384   ;;  %s3802_s23 = smov 24  }
  0x1b   : > { %3534 = dma.hbm_to_vmem [thread:$0]  (!%p3906_p11), %s4768_s3, 3072, %s245_s17, [#allocation5], %s3801_s22, %s3801_s22, %s3802_s23  }
  0x1c   : > { %s3752_s26 = scalar_lea.vmem %s258_s20, 1024  ;;  %p3760_p8 = scmp.lt.s32.totalorder %s258_s20, %s258_s20 }
  0x1d   : > { %p3753_p10 = scmp.ne.s32.totalorder %s258_s20, %s3752_s26  ;;  %p3761_p5 = scmp.lt.s32.totalorder %s3752_s26, %s3752_s26 }
  0x1f   : > { %p3755_p13 = pnand %p3753_p10, %p3717_p12  ;;  %p3762_p2 = por %p3761_p5, %p3760_p8 }
  0x21   : > { %p3756_p0 = pneg %p3755_p13 }
  0x23   : > { %p3763_p1 = pnand %p3762_p2, %p3756_p0 }
  0x25   : > { %3766 = shalt.err (!%p3763_p1)
}
  0x26   : > { %s3803_s10 = smov 256   ;;  %s3804_s11 = smov 16  }
  0x27   : > { %3537 = dma.hbm_to_vmem [thread:$0]  (!%p3906_p11), %s4769_s4, 1024, %s258_s20, [#allocation7], %s3803_s10, %s3803_s10, %s3804_s11  }
  0x28   : > { %p3221_p3 = scmp.ge.s32.totalorder %s3797_s29, 2 }
  0x2a   : > { %276 = sbr.rel (%p3221_p3) target bundleno = 63 (0x3f), region = 40 }
  0x2f   : > { %279 = sbr.rel (!%p3887_p4) target bundleno = 55 (0x37), region = 44  ;;  %s281_s17 = sand.u32 (%p3887_p4), 1, %s3793_s28  }
  0x30   : > { %s3223_s21 = sshll.u32 (%p3887_p4), %s3797_s29, 3  ;;  %s3222_s22 = sshll.u32 (%p3887_p4), %s281_s17, 6 }
  0x31   : > { %s285_s25 = scalar_lea.vmem (%p3887_p4), %s4765_s0, %s3223_s21  ;;  %s283_s18 = scalar_lea.vmem (%p3887_p4), [#allocation2], %s3222_s22 }
  0x32   : > { %v328_v0 = vld [vmem:[%s285_s25] sm:$0xff] (%p3887_p4)  ;;  %v330_v1 = vld [vmem:[%s285_s25 + $0x10] sm:$0xff] (%p3887_p4) }
  0x33   : > { %v332_v2 = vld [vmem:[%s285_s25 + $0x20] sm:$0xff] (%p3887_p4)  ;;  %329 = vst [vmem:[%s283_s18] sm:$0xff] (%p3887_p4), %v328_v0  ;;  %331 = vst [vmem:[%s283_s18 + $0x8] sm:$0xff] (%p3887_p4), %v330_v1  ;;  %v334_v3 = vld [vmem:[%s285_s25 + $0x30] sm:$0xff] (%p3887_p4) }
  0x34   : > { %333 = vst [vmem:[%s283_s18 + $0x10] sm:$0xff] %v332_v2  ;;  %v336_v4 = vld [vmem:[%s285_s25 + $0x40] sm:$0xff]  ;;  %v338_v5 = vld [vmem:[%s285_s25 + $0x50] sm:$0xff]  ;;  %335 = vst [vmem:[%s283_s18 + $0x18] sm:$0xff] %v334_v3 }
  0x35   : > { %337 = vst [vmem:[%s283_s18 + $0x20] sm:$0xff] %v336_v4  ;;  %339 = vst [vmem:[%s283_s18 + $0x28] sm:$0xff] %v338_v5  ;;  %v340_v6 = vld [vmem:[%s285_s25 + $0x60] sm:$0xff]  ;;  %v342_v7 = vld [vmem:[%s285_s25 + $0x70] sm:$0xff] }
  0x36   : > { %341 = vst [vmem:[%s283_s18 + $0x30] sm:$0xff] %v340_v6  ;;  %343 = vst [vmem:[%s283_s18 + $0x38] sm:$0xff] %v342_v7 }
  0x37 PF: > { %349 = sbr.rel (!%p3887_p4) target bundleno = 63 (0x3f), region = 82  ;;  %s351_s20 = sand.u32 (%p3887_p4), 1, %s3793_s28  }
  0x38   : > { %s3225_s26 = sshll.u32 (%p3887_p4), %s3797_s29, 3  ;;  %s3224_s10 = sshll.u32 (%p3887_p4), %s351_s20, 6 }
  0x39   : > { %s355_s19 = scalar_lea.vmem (%p3887_p4), %s4766_s1, %s3225_s26  ;;  %s353_s17 = scalar_lea.vmem (%p3887_p4), [#allocation3], %s3224_s10 }
  0x3a   : > { %v398_v8 = vld [vmem:[%s355_s19] sm:$0xff] (%p3887_p4)  ;;  %v400_v9 = vld [vmem:[%s355_s19 + $0x10] sm:$0xff] (%p3887_p4) }
  0x3b   : > { %v402_v10 = vld [vmem:[%s355_s19 + $0x20] sm:$0xff] (%p3887_p4)  ;;  %399 = vst [vmem:[%s353_s17] sm:$0xff] (%p3887_p4), %v398_v8  ;;  %401 = vst [vmem:[%s353_s17 + $0x8] sm:$0xff] (%p3887_p4), %v400_v9  ;;  %v404_v11 = vld [vmem:[%s355_s19 + $0x30] sm:$0xff] (%p3887_p4) }
  0x3c   : > { %403 = vst [vmem:[%s353_s17 + $0x10] sm:$0xff] %v402_v10  ;;  %v406_v12 = vld [vmem:[%s355_s19 + $0x40] sm:$0xff]  ;;  %v408_v13 = vld [vmem:[%s355_s19 + $0x50] sm:$0xff]  ;;  %405 = vst [vmem:[%s353_s17 + $0x18] sm:$0xff] %v404_v11 }
  0x3d   : > { %407 = vst [vmem:[%s353_s17 + $0x20] sm:$0xff] %v406_v12  ;;  %409 = vst [vmem:[%s353_s17 + $0x28] sm:$0xff] %v408_v13  ;;  %v410_v14 = vld [vmem:[%s355_s19 + $0x60] sm:$0xff]  ;;  %v412_v15 = vld [vmem:[%s355_s19 + $0x70] sm:$0xff] }
  0x3e   : > { %411 = vst [vmem:[%s353_s17 + $0x30] sm:$0xff] %v410_v14  ;;  %413 = vst [vmem:[%s353_s17 + $0x38] sm:$0xff] %v412_v15 }
  0x3f PF: > { %422 = sbr.rel (%p3898_p9) target bundleno = 12575 (0x311f), region = 120  ;;  %s425_s29 = sand.u32 (!%p3898_p9), 1, %s3789_s27  }
  0x40   : > { %s3227_s13 = sshll.u32 (!%p3898_p9), %s425_s29, 6  ;;  %p4779_p4 = scmp.eq.s32.totalorder (!%p3898_p9), %s3872_s30, 0 }
  0x41   : > { %s3948_s21 = scalar_lea.vmem (!%p3898_p9), [#allocation2], %s3227_s13  ;;  %s3950_s22 = scalar_lea.vmem (!%p3898_p9), [#allocation3], %s3227_s13 }
  0x44   : > { %3780 = dma.done.wait (%p4779_p4), [#allocation5], 3072   ;;  %p4780_p5 = pmov %p4779_p4 }
  0x45   : > { %p4781_p8 = pmov %p4779_p4 }
  0x46   : > { %3782 = vsyncadd (%p4780_p5), [#allocation5], 4294964224 }
  0x47   : > { %3784 = dma.done.wait (%p4781_p8), [#allocation7], 1024   ;;  %p4782_p9 = pmov %p4779_p4 }
  0x48   : > { %v3805_v16 = vmov 0.0   ;;  %vm3806_vm0 = vmmov 0   ;;  %v3964_v17 = vld [vmem:[#allocation4 + $0xb8] sm:$0xff]  ;;  %v3966_v18 = vld [vmem:[#allocation4 + $0xa0] sm:$0xff]  ;;  %v3970_v19 = vld [vmem:[#allocation4 + $0x88] sm:$0xff]  ;;  %v3807_v41 = vmov 0  }
  0x49   : > { %3786 = vsyncadd (%p4782_p9), [#allocation7], 4294966272  ;;  %3359 = vmatprep.subr.mxu1 %v3805_v16  ;;  %3375 = vmatprep.mubr.msk.f32.mxu1 %vm3806_vm0, %v3805_v16  ;;  %v3972_v20 = vld [vmem:[#allocation4 + $0xb0] sm:$0xff]  ;;  %v3976_v21 = vld [vmem:[#allocation4 + $0xa8] sm:$0xff]  ;;  %s3522_s15 = smul.u32 72, %s425_s29  ;;  %vm668_vm1 = vcmask 15360  }
  0x4a   : > { %583 = vmatprep.mubr.f32.mxu0 %v3805_v16  ;;  %3360 = vmatpush3.msra.mxu1 %v3964_v17  ;;  %v3978_v22 = vld [vmem:[#allocation4 + $0x98] sm:$0xff]  ;;  %v3980_v23 = vld [vmem:[#allocation4 + $0x90] sm:$0xff]  ;;  %v3986_v25 = vld [vmem:[#allocation4 + $0x80] sm:$0xff]  ;;  %vm3027_vm3 = vcmask 7168   ;;  %s3808_s20 = smov 64   ;;  %s3809_s26 = smov 32  }
  0x4b   : > { %3361 = vmatprep.subr.mxu1 %v3805_v16  ;;  %535 = vmatprep.subr.mxu0 %v3972_v20  ;;  %v3983_v24 = vld [vmem:[#allocation4 + $0x70] sm:$0xff]  ;;  %v3990_v26 = vld [vmem:[#allocation4 + $0x78] sm:$0xff]  ;;  %v3996_v28 = vld [vmem:[#allocation4 + $0x68] sm:$0xff]  ;;  %s4072_s25 = scalar_lea.vmem [#allocation8], %s3522_s15  ;;  %vm710_vm5 = vcmask 261120   ;;  %vm515_vm6 = vcmask 523264  }
  0x4c   : > { %3362 = vmatpush3.msra.mxu1 %v3966_v18  ;;  %536 = vmatpush1.msra.mxu0 %v3976_v21  ;;  %v3993_v27 = vld [vmem:[#allocation4 + $0x58] sm:$0xff]  ;;  %v4000_v29 = vld [vmem:[#allocation4 + $0x60] sm:$0xff]  ;;  %v4006_v31 = vld [vmem:[#allocation4 + $0x50] sm:$0xff]  ;;  %s3810_s11 = smov 96   ;;  %p4783_p11 = scmp.ne.s32.totalorder %s4776_s14, 0 }
  0x4d   : > { %3363 = vmatprep.subr.mxu1 %v3805_v16  ;;  %537 = vmatprep.subr.mxu0 %v3978_v22  ;;  %v4003_v30 = vld [vmem:[#allocation4 + $0x40] sm:$0xff]  ;;  %v4010_v32 = vld [vmem:[#allocation4 + $0x48] sm:$0xff]  ;;  %v4016_v34 = vld [vmem:[#allocation4 + $0x38] sm:$0xff] }
  0x4e   : > { %3364 = vmatpush3.msra.mxu1 %v3970_v19  ;;  %538 = vmatpush1.msra.mxu0 %v3980_v23  ;;  %v4013_v33 = vld [vmem:[#allocation4 + $0x28] sm:$0xff]  ;;  %v4020_v35 = vld [vmem:[#allocation4 + $0x30] sm:$0xff]  ;;  %v4026_v37 = vld [vmem:[#allocation4 + $0x20] sm:$0xff] }
  0x4f   : > { %3365 = vmatprep.subr.mxu1 %v3805_v16  ;;  %539 = vmatprep.subr.mxu0 %v3986_v25  ;;  %v4023_v36 = vld [vmem:[#allocation4 + $0x10] sm:$0xff]  ;;  %v4030_v38 = vld [vmem:[#allocation4 + $0x18] sm:$0xff]  ;;  %v4034_v39 = vld [vmem:[#allocation4 + $0x8] sm:$0xff] }
  0x50   : > { %3366 = vmatpush3.msra.mxu1 %v3983_v24  ;;  %540 = vmatpush1.msra.mxu0 %v3990_v26  ;;  %v4038_v40 = vld [vmem:[#allocation4] sm:$0xff]  ;;  %v4092_v13 = vld [vmem:[#allocation6 + $0x38] sm:$0xff]  ;;  %v4094_v14 = vld [vmem:[#allocation6 + $0x30] sm:$0xff] }
  0x51   : > { %3367 = vmatprep.subr.mxu1 %v3805_v16  ;;  %541 = vmatprep.subr.mxu0 %v3996_v28  ;;  %v4068_v42 = vld [vmem:[%s4772_s7] ss:$0 sm:$0xff]  ;;  %v4096_v15 = vld [vmem:[#allocation6 + $0x28] sm:$0xff] }
  0x52   : > { %3368 = vmatpush3.msra.mxu1 %v3993_v27  ;;  %542 = vmatpush1.msra.mxu0 %v4000_v29  ;;  %v671_v44 = vld [vmem:[%s3948_s21] sm:$0xff] }
  0x53   : > { %3369 = vmatprep.subr.mxu1 %v3805_v16  ;;  %543 = vmatprep.subr.mxu0 %v4006_v31  ;;  %v4083_v62 = vld [vmem:[%s4767_s2] ss:$0 sm:$0xff] }
  0x54   : > { %3370 = vmatpush3.msra.mxu1 %v4003_v30  ;;  %544 = vmatpush1.msra.mxu0 %v4010_v32  ;;  %v670_v0 = vld [vmem:[%s3950_s22] sm:$0xff] }
  0x55   : > { %3371 = vmatprep.subr.mxu1 %v3805_v16  ;;  %545 = vmatprep.subr.mxu0 %v4016_v34 }
  0x56   : > { %3372 = vmatpush3.msra.mxu1 %v4013_v33  ;;  %546 = vmatpush1.msra.mxu0 %v4020_v35 }
  0x57   : > { %3373 = vmatprep.subr.mxu1 %v3805_v16  ;;  %547 = vmatprep.subr.mxu0 %v4026_v37 }
  0x58   : > { %3374 = vmatpush3.msra.mxu1 %v4023_v36  ;;  %548 = vmatpush1.msra.mxu0 %v4030_v38 }
  0x59   : > { %3376 = vmatmul.mubr.f32.vlgmr.msra.gmra.mxu1 %v3805_v16  ;;  %549 = vmatprep.subr.mxu0 %v4034_v39 }
  0x5a   : > { %837 = vmatprep.subr.mxu1 %v3972_v20  ;;  %550 = vmatpush1.msra.mxu0 %v4038_v40 }
  0x5b   : > { %838 = vmatpush1.msra.mxu1 %v3976_v21  ;;  %584 = vmatmul.mubr.f32.vlgmr.msra.gmra.mxu0 %v3805_v16 }
  0x5c   : > { %839 = vmatprep.subr.mxu1 %v3978_v22  ;;  %777 = vmatprep.mubr.f32.mxu0 %v3805_v16 }
  0x5d   : > { %840 = vmatpush1.msra.mxu1 %v3980_v23  ;;  %885 = vmatprep.mubr.f32.mxu1 %v3805_v16 }
  0x5e   : > { %841 = vmatprep.subr.mxu1 %v3986_v25  ;;  %3578 = vset.pattern.permute.xlu0 %v3807_v41 }
  0x5f   : > { %842 = vmatpush1.msra.mxu1 %v3990_v26  ;;  %3579 = vset.pattern.permute.xlu1 %v3807_v41  ;;  %v4099_v41 = vld [vmem:[#allocation6 + $0x20] sm:$0xff] }
  0x60   : > { %843 = vmatprep.subr.mxu1 %v3996_v28  ;;  %737 = vmatprep.subr.mxu0 %v4092_v13 }
  0x61   : > { %844 = vmatpush1.msra.mxu1 %v4000_v29  ;;  %738 = vmatpush1.msra.mxu0 %v4094_v14 }
  0x62   : > { %845 = vmatprep.subr.mxu1 %v4006_v31  ;;  %739 = vmatprep.subr.mxu0 %v4096_v15 }
  0x63   : > { %846 = vmatpush1.msra.mxu1 %v4010_v32  ;;  %740 = vmatpush1.msra.mxu0 %v4099_v41 }
  0x64   : > { %847 = vmatprep.subr.mxu1 %v4016_v34 }
  0x65   : > { %848 = vmatpush1.msra.mxu1 %v4020_v35 }
  0x66   : > { %849 = vmatprep.subr.mxu1 %v4026_v37 }
  0x67   : > { %850 = vmatpush1.msra.mxu1 %v4030_v38 }
  0x68   : > { %851 = vmatprep.subr.mxu1 %v4034_v39 }
  0x69   : > { %852 = vmatpush1.msra.mxu1 %v4038_v40 }
  0x6a   : > { %1028 = vmatprep.subr.mxu1 %v4092_v13 }
 0x119   : > { %v656_v43 = vpop.f32.mrf.mxu1 }
 0x11a   : > { %v667_v45 = vadd.f32 %v4068_v42, %v656_v43  ;;  %v4103_v43 = vld [vmem:[#allocation6 + $0x18] sm:$0xff] }
 0x11b   : > { %v3377_v46 = vpop.f32.mrf.mxu1  ;;  %v585_v3 = vpop.f32.mrf.mxu0  ;;  %741 = vmatprep.subr.mxu0 %v4103_v43 }
 0x11c   : > { %669 = vst.msk [vmem:[%s4072_s25] sm:$0xff] %vm668_vm1, %v667_v45  ;;  %v672_v47 = vmul.f32 %v671_v44, %v667_v45  ;;  %v4106_v44 = vld [vmem:[#allocation6 + $0x10] sm:$0xff]  ;;  %v4109_v45 = vld [vmem:[#allocation6 + $0x8] sm:$0xff]  ;;  %v4112_v46 = vld [vmem:[#allocation6] sm:$0xff] }
 0x11d   : > { %742 = vmatpush1.msra.mxu0 %v4106_v44 }
 0x11e   : > { %675 = vperm.xlu0 %3578, %v672_v47   ;;  %743 = vmatprep.subr.mxu0 %v4109_v45 }
 0x11f   : > { %744 = vmatpush1.msra.mxu0 %v4112_v46 }
 0x120   : > { %3378 = vmatprep.subr.mxu0 %v3805_v16 }
 0x123   : > { %v2892_v48 = vld [vmem:[%s4072_s25] sm:$0xff] }
 0x124   : > { %v2910_v49 = vmin.f32 %v2892_v48, 20.0  ;;  %vm2901_vm4 = vcmp.gt.f32.partialorder %v2892_v48, 20.0 }
 0x126   : > { %v2919_v50 = vmul.f32 1.442695, %v2910_v49 }
 0x128   : > { %3580 = vpow2.f32 %v2919_v50 }
 0x135   : > { %v3581_v51 = vpop.eup %3580 }
 0x136   : > { %v2937_v52 = vadd.f32 1.0, %v3581_v51  ;;  %v2940_v53 = vmul.f32 -0.5, %v3581_v51  ;;  %v2943_v55 = vand.u32 2147483647, %v3581_v51 }
 0x138   : > { %3582 = vlog2.f32 %v2937_v52  ;;  %v2941_v54 = vadd.f32 1.0, %v2940_v53  ;;  %vm2944_vm2 = vcmp.lt.f32.partialorder %v2943_v55, 0.0004427343  ;;  %v4142_v52 = vld [vmem:[%s4770_s5] ss:$0 sm:$0xff] }
 0x13a   : > { %v2942_v58 = vmul.f32 %v3581_v51, %v2941_v54  ;;  %v587_v51 = vpop.f32.mrf.mxu0 }
 0x145   : > { %v3583_v56 = vpop.eup %3582 }
 0x146   : > { %v2939_v57 = vmul.f32 0.6931472, %v3583_v56 }
 0x148   : > { %v2945_v59 = vsel %vm2944_vm2, %v2942_v58, %v2939_v57 }
 0x149   : > { %v3018_v60 = vsel %vm2901_vm4, %v2892_v48, %v2945_v59 }
 0x14a   : > { %v3028_v61 = vsel %vm3027_vm3, %v2892_v48, %v3018_v60 }
 0x14b   : > { %3037 = vst.msk [vmem:[%s4072_s25] sm:$0xff] %vm668_vm1, %v3028_v61 }
 0x199   : > { %v676_v63 = vpop.permute.xlu0 %675 }
 0x19a   : > { %v684_v1 = vmul.f32 %v4083_v62, %v676_v63 }
 0x19c   : > { %v685_v2 = vadd.f32 %v684_v1, %v670_v0 }
 0x19e   : > { %v686_v4 = vadd.f32 %v685_v2, %v585_v3 }
 0x1a0   : > { %3584 = vtanh.f32 %v686_v4 }
 0x1ad   : > { %v3585_v5 = vpop.eup %3584 }
 0x1ae   : > { %692 = vrot.lane.b32.xlu0 %v3585_v5, %s3808_s20  ;;  %v688_v6 = vadd.f32 1.0, %v3585_v5 }
 0x1b0   : > { %v689_v7 = vmul.f32 0.5, %v688_v6 }
 0x1b2   : > { %v690_v10 = vmul.f32 0.0, %v689_v7 }
 0x220   : > { %v693_v8 = vpop.permute.xlu0 %692 }
 0x221   : > { %v695_v9 = vmul.f32 %v693_v8, %v689_v7 }
 0x223   : > { %697 = vrot.lane.b32.xlu1 %v695_v9, %s3809_s26 }
 0x295   : > { %v698_v11 = vpop.permute.xlu1 %697 }
 0x296   : > { %v4089_v12 = vadd.f32 %v698_v11, %v690_v10  ;;  %v3239_v10 = vld [vmem:[%s3948_s21 + $0x8] sm:$0xff] }
 0x298   : > { %3586 = vtanh.f32 %v4089_v12 }
 0x2a5   : > { %v3587_v47 = vpop.eup %3586 }
 0x2a6   : > { %703 = vrot.lane.b32.xlu1 %v3587_v47, %s3808_s20 }
 0x318   : > { %v704_v48 = vpop.permute.xlu1 %703 }
 0x319   : > { %v706_v49 = vmul.f32 %v704_v48, %v689_v7 }
 0x31b   : > { %708 = vrot.lane.b32.xlu0 %v706_v49, %s3809_s26 }
 0x38d   : > { %v709_v50 = vpop.permute.xlu0 %708 }
 0x38e   : > { %3233 = vmatmul.mubr.msk.f32.vlgmr.msra.gmra.mxu0 %vm710_vm5, %v709_v50 }
 0x38f   : > { %3379 = vmatpush3.msra.mxu0 %v3964_v17  ;;  %3394 = vmatprep.mubr.msk.f32.mxu0 %vm3806_vm0, %v3805_v16 }
 0x390   : > { %3380 = vmatprep.subr.mxu0 %v3805_v16 }
 0x391   : > { %3381 = vmatpush3.msra.mxu0 %v3966_v18 }
 0x392   : > { %3382 = vmatprep.subr.mxu0 %v3805_v16 }
 0x393   : > { %3383 = vmatpush3.msra.mxu0 %v3970_v19 }
 0x394   : > { %3384 = vmatprep.subr.mxu0 %v3805_v16 }
 0x395   : > { %3385 = vmatpush3.msra.mxu0 %v3983_v24 }
 0x396   : > { %3386 = vmatprep.subr.mxu0 %v3805_v16 }
 0x397   : > { %3387 = vmatpush3.msra.mxu0 %v3993_v27 }
 0x398   : > { %3388 = vmatprep.subr.mxu0 %v3805_v16 }
 0x399   : > { %3389 = vmatpush3.msra.mxu0 %v4003_v30 }
 0x39a   : > { %3390 = vmatprep.subr.mxu0 %v3805_v16 }
 0x39b   : > { %3391 = vmatpush3.msra.mxu0 %v4013_v33 }
 0x39c   : > { %3392 = vmatprep.subr.mxu0 %v3805_v16 }
 0x39d   : > { %3393 = vmatpush3.msra.mxu0 %v4023_v36 }
 0x39e   : > { %1122 = vmatprep.subr.mxu0 %v3972_v20 }
 0x44e   : > { %v779_v53 = vpop.f32.mrf.mxu0 }
 0x44f   : > { %v784_v54 = vadd.f32 %v779_v53, %v587_v51 }
 0x450   : > { %v781_v6 = vpop.f32.mrf.mxu0 }
 0x451   : > { %v791_v55 = vadd.f32 %v4142_v52, %v784_v54 }
 0x453   : > { %3588 = vtanh.f32 %v791_v55 }
 0x460   : > { %v3589_v56 = vpop.eup %3588 }
 0x461   : > { %797 = vrot.lane.b32.xlu1 %v3589_v56, %s3808_s20  ;;  %v793_v57 = vadd.f32 1.0, %v3589_v56 }
 0x463   : > { %v794_v58 = vmul.f32 0.5, %v793_v57 }
 0x465   : > { %v795_v61 = vmul.f32 0.0, %v794_v58 }
 0x4d3   : > { %v798_v59 = vpop.permute.xlu1 %797 }
 0x4d4   : > { %v800_v60 = vmul.f32 %v798_v59, %v794_v58 }
 0x4d6   : > { %802 = vrot.lane.b32.xlu0 %v800_v60, %s3809_s26 }
 0x548   : > { %v803_v63 = vpop.permute.xlu0 %802 }
 0x549   : > { %v4147_v0 = vadd.f32 %v803_v63, %v795_v61 }
 0x54b   : > { %3590 = vtanh.f32 %v4147_v0 }
 0x558   : > { %v3591_v1 = vpop.eup %3590 }
 0x559   : > { %808 = vrot.lane.b32.xlu1 %v3591_v1, %s3808_s20  ;;  %v3238_v1 = vld [vmem:[%s3950_s22 + $0x8] sm:$0xff] }
 0x5cb   : > { %v809_v2 = vpop.permute.xlu1 %808 }
 0x5cc   : > { %v811_v3 = vmul.f32 %v809_v2, %v794_v58 }
 0x5ce   : > { %814 = vrot.lane.b32.xlu0 %v811_v3, %s3808_s20 }
 0x640   : > { %v815_v4 = vpop.permute.xlu0 %814 }
 0x641   : > { %v817_v5 = vsel %vm710_vm5, %v709_v50, %v815_v4 }
 0x642   : > { %3235 = vmatmul.mubr.msk.f32.vlgmr.msra.gmra.mxu1 %vm515_vm6, %v817_v5  ;;  %3395 = vmatmul.mubr.msk.f32.vlgmr.msra.gmra.mxu0 %vm515_vm6, %v817_v5 }
 0x643   : > { %1029 = vmatpush1.msra.mxu1 %v4094_v14  ;;  %1068 = vmatprep.mubr.f32.mxu1 %v3805_v16 }
 0x644   : > { %1030 = vmatprep.subr.mxu1 %v4096_v15  ;;  %1123 = vmatpush1.msra.mxu0 %v3976_v21 }
 0x645   : > { %1031 = vmatpush1.msra.mxu1 %v4099_v41  ;;  %1124 = vmatprep.subr.mxu0 %v3978_v22 }
 0x646   : > { %1032 = vmatprep.subr.mxu1 %v4103_v43  ;;  %1125 = vmatpush1.msra.mxu0 %v3980_v23 }
 0x647   : > { %1033 = vmatpush1.msra.mxu1 %v4106_v44  ;;  %1126 = vmatprep.subr.mxu0 %v3986_v25 }
 0x648   : > { %1034 = vmatprep.subr.mxu1 %v4109_v45  ;;  %1127 = vmatpush1.msra.mxu0 %v3990_v26 }
 0x649   : > { %1035 = vmatpush1.msra.mxu1 %v4112_v46  ;;  %1128 = vmatprep.subr.mxu0 %v3996_v28 }
 0x64a   : > { %3397 = vmatprep.subr.mxu1 %v3805_v16  ;;  %1129 = vmatpush1.msra.mxu0 %v4000_v29 }
 0x64b   : > { %1130 = vmatprep.subr.mxu0 %v4006_v31  ;;  %1170 = vmatprep.mubr.f32.mxu0 %v3805_v16 }
 0x64c   : > { %1131 = vmatpush1.msra.mxu0 %v4010_v32 }
 0x64d   : > { %1132 = vmatprep.subr.mxu0 %v4016_v34 }
 0x64e   : > { %1133 = vmatpush1.msra.mxu0 %v4020_v35 }
 0x64f   : > { %1134 = vmatprep.subr.mxu0 %v4026_v37 }
 0x650   : > { %1135 = vmatpush1.msra.mxu0 %v4030_v38 }
 0x651   : > { %1136 = vmatprep.subr.mxu0 %v4034_v39 }
 0x652   : > { %1137 = vmatpush1.msra.mxu0 %v4038_v40 }
 0x653   : > { %1313 = vmatprep.subr.mxu0 %v4092_v13 }
 0x702   : > { %v958_v7 = vpop.f32.mrf.mxu0  ;;  %v887_v5 = vpop.f32.mrf.mxu1 }
 0x703   : > { %v962_v8 = vadd.f32 %v958_v7, %v781_v6 }
 0x704   : > { %v3396_v9 = vpop.f32.mrf.mxu0 }
 0x705   : > { %v963_v11 = vadd.f32 %v4068_v42, %v962_v8 }
 0x707   : > { %3237 = vst.msk [vmem:[%s4072_s25 + $0x8] sm:$0xff] %vm668_vm1, %v963_v11  ;;  %v970_v47 = vmul.f32 %v3239_v10, %v963_v11 }
 0x709   : > { %973 = vperm.xlu1 %3579, %v970_v47  }
 0x70e   : > { %v2893_v48 = vld [vmem:[%s4072_s25 + $0x8] sm:$0xff] }
 0x70f   : > { %v2911_v49 = vmin.f32 %v2893_v48, 20.0  ;;  %vm2902_vm8 = vcmp.gt.f32.partialorder %v2893_v48, 20.0 }
 0x711   : > { %v2921_v50 = vmul.f32 1.442695, %v2911_v49 }
 0x713   : > { %3592 = vpow2.f32 %v2921_v50 }
 0x720   : > { %v3593_v51 = vpop.eup %3592 }
 0x721   : > { %v2946_v53 = vadd.f32 1.0, %v3593_v51  ;;  %v2949_v54 = vmul.f32 -0.5, %v3593_v51  ;;  %v2952_v56 = vand.u32 2147483647, %v3593_v51 }
 0x723   : > { %3594 = vlog2.f32 %v2946_v53  ;;  %v2950_v55 = vadd.f32 1.0, %v2949_v54  ;;  %vm2953_vm7 = vcmp.lt.f32.partialorder %v2952_v56, 0.0004427343 }
 0x725   : > { %v2951_v59 = vmul.f32 %v3593_v51, %v2950_v55 }
 0x730   : > { %v3595_v57 = vpop.eup %3594 }
 0x731   : > { %v2948_v58 = vmul.f32 0.6931472, %v3595_v57 }
 0x733   : > { %v2954_v60 = vsel %vm2953_vm7, %v2951_v59, %v2948_v58 }
 0x734   : > { %v3019_v61 = vsel %vm2902_vm8, %v2893_v48, %v2954_v60 }
 0x735   : > { %v3029_v63 = vsel %vm3027_vm3, %v2893_v48, %v3019_v61 }
 0x736   : > { %3038 = vst.msk [vmem:[%s4072_s25 + $0x8] sm:$0xff] %vm668_vm1, %v3029_v63 }
 0x784   : > { %v974_v2 = vpop.permute.xlu1 %973 }
 0x785   : > { %v976_v3 = vmul.f32 %v4083_v62, %v974_v2 }
 0x787   : > { %v977_v4 = vadd.f32 %v3238_v1, %v976_v3 }
 0x789   : > { %v978_v6 = vadd.f32 %v977_v4, %v887_v5 }
 0x78b   : > { %3596 = vtanh.f32 %v978_v6 }
 0x798   : > { %v3597_v7 = vpop.eup %3596 }
 0x799   : > { %984 = vrot.lane.b32.xlu0 %v3597_v7, %s3808_s20  ;;  %v980_v8 = vadd.f32 1.0, %v3597_v7 }
 0x79b   : > { %v981_v9 = vmul.f32 0.5, %v980_v8 }
 0x79d   : > { %v982_v47 = vmul.f32 %v981_v9, %v4089_v12  ;;  %v889_v12 = vpop.f32.mrf.mxu1 }
 0x80b   : > { %v985_v10 = vpop.permute.xlu0 %984 }
 0x80c   : > { %v987_v11 = vmul.f32 %v985_v10, %v981_v9 }
 0x80e   : > { %989 = vrot.lane.b32.xlu1 %v987_v11, %s3809_s26 }
 0x880   : > { %v990_v48 = vpop.permute.xlu1 %989 }
 0x881   : > { %v4194_v49 = vadd.f32 %v990_v48, %v982_v47  ;;  %v3245_v47 = vld [vmem:[%s3948_s21 + $0x10] sm:$0xff] }
 0x883   : > { %3598 = vtanh.f32 %v4194_v49 }
 0x890   : > { %v3599_v50 = vpop.eup %3598 }
 0x891   : > { %995 = vrot.lane.b32.xlu0 %v3599_v50, %s3808_s20 }
 0x903   : > { %v996_v51 = vpop.permute.xlu0 %995 }
 0x904   : > { %v998_v53 = vmul.f32 %v996_v51, %v981_v9 }
 0x906   : > { %1000 = vrot.lane.b32.xlu1 %v998_v53, %s3809_s26 }
 0x978   : > { %v1001_v54 = vpop.permute.xlu1 %1000 }
 0x979   : > { %3240 = vmatmul.mubr.msk.f32.vlgmr.msra.gmra.mxu1 %vm710_vm5, %v1001_v54 }
 0x97a   : > { %3398 = vmatpush3.msra.mxu1 %v3964_v17  ;;  %3413 = vmatprep.mubr.msk.f32.mxu1 %vm3806_vm0, %v3805_v16 }
 0x97b   : > { %3399 = vmatprep.subr.mxu1 %v3805_v16 }
 0x97c   : > { %3400 = vmatpush3.msra.mxu1 %v3966_v18 }
 0x97d   : > { %3401 = vmatprep.subr.mxu1 %v3805_v16 }
 0x97e   : > { %3402 = vmatpush3.msra.mxu1 %v3970_v19 }
 0x97f   : > { %3403 = vmatprep.subr.mxu1 %v3805_v16 }
 0x980   : > { %3404 = vmatpush3.msra.mxu1 %v3983_v24 }
 0x981   : > { %3405 = vmatprep.subr.mxu1 %v3805_v16 }
 0x982   : > { %3406 = vmatpush3.msra.mxu1 %v3993_v27 }
 0x983   : > { %3407 = vmatprep.subr.mxu1 %v3805_v16 }
 0x984   : > { %3408 = vmatpush3.msra.mxu1 %v4003_v30 }
 0x985   : > { %3409 = vmatprep.subr.mxu1 %v3805_v16 }
 0x986   : > { %3410 = vmatpush3.msra.mxu1 %v4013_v33 }
 0x987   : > { %3411 = vmatprep.subr.mxu1 %v3805_v16 }
 0x988   : > { %3412 = vmatpush3.msra.mxu1 %v4023_v36 }
 0x989   : > { %1407 = vmatprep.subr.mxu1 %v3972_v20 }
 0xa39   : > { %v1070_v55 = vpop.f32.mrf.mxu1 }
 0xa3a   : > { %v1075_v56 = vadd.f32 %v1070_v55, %v889_v12 }
 0xa3c   : > { %v1076_v57 = vadd.f32 %v4142_v52, %v1075_v56 }
 0xa3e   : > { %3600 = vtanh.f32 %v1076_v57 }
 0xa4b   : > { %v3601_v58 = vpop.eup %3600 }
 0xa4c   : > { %1082 = vrot.lane.b32.xlu0 %v3601_v58, %s3808_s20  ;;  %v1078_v59 = vadd.f32 1.0, %v3601_v58 }
 0xa4e   : > { %v1079_v60 = vmul.f32 0.5, %v1078_v59 }
 0xa50   : > { %v1080_v1 = vmul.f32 %v1079_v60, %v4147_v0  ;;  %v1072_v0 = vpop.f32.mrf.mxu1 }
 0xabe   : > { %v1083_v61 = vpop.permute.xlu0 %1082 }
 0xabf   : > { %v1085_v63 = vmul.f32 %v1083_v61, %v1079_v60 }
 0xac1   : > { %1087 = vrot.lane.b32.xlu1 %v1085_v63, %s3809_s26 }
 0xb33   : > { %v1088_v2 = vpop.permute.xlu1 %1087 }
 0xb34   : > { %v4222_v3 = vadd.f32 %v1088_v2, %v1080_v1 }
 0xb36   : > { %3602 = vtanh.f32 %v4222_v3 }
 0xb43   : > { %v3603_v4 = vpop.eup %3602 }
 0xb44   : > { %1093 = vrot.lane.b32.xlu0 %v3603_v4, %s3808_s20  ;;  %v3244_v4 = vld [vmem:[%s3950_s22 + $0x10] sm:$0xff] }
 0xbb6   : > { %v1094_v5 = vpop.permute.xlu0 %1093 }
 0xbb7   : > { %v1096_v6 = vmul.f32 %v1094_v5, %v1079_v60 }
 0xbb9   : > { %1099 = vrot.lane.b32.xlu1 %v1096_v6, %s3808_s20 }
 0xc2b   : > { %v1100_v7 = vpop.permute.xlu1 %1099 }
 0xc2c   : > { %v1102_v8 = vsel %vm710_vm5, %v1001_v54, %v1100_v7 }
 0xc2d   : > { %3241 = vmatmul.mubr.msk.f32.vlgmr.msra.gmra.mxu0 %vm515_vm6, %v1102_v8  ;;  %3414 = vmatmul.mubr.msk.f32.vlgmr.msra.gmra.mxu1 %vm515_vm6, %v1102_v8 }
 0xc2e   : > { %1314 = vmatpush1.msra.mxu0 %v4094_v14  ;;  %1353 = vmatprep.mubr.f32.mxu0 %v3805_v16 }
 0xc2f   : > { %1315 = vmatprep.subr.mxu0 %v4096_v15  ;;  %1408 = vmatpush1.msra.mxu1 %v3976_v21 }
 0xc30   : > { %1316 = vmatpush1.msra.mxu0 %v4099_v41  ;;  %1409 = vmatprep.subr.mxu1 %v3978_v22 }
 0xc31   : > { %1317 = vmatprep.subr.mxu0 %v4103_v43  ;;  %1410 = vmatpush1.msra.mxu1 %v3980_v23 }
 0xc32   : > { %1318 = vmatpush1.msra.mxu0 %v4106_v44  ;;  %1411 = vmatprep.subr.mxu1 %v3986_v25 }
 0xc33   : > { %1319 = vmatprep.subr.mxu0 %v4109_v45  ;;  %1412 = vmatpush1.msra.mxu1 %v3990_v26 }
 0xc34   : > { %1320 = vmatpush1.msra.mxu0 %v4112_v46  ;;  %1413 = vmatprep.subr.mxu1 %v3996_v28 }
 0xc35   : > { %3416 = vmatprep.subr.mxu0 %v3805_v16  ;;  %1414 = vmatpush1.msra.mxu1 %v4000_v29 }
 0xc36   : > { %1415 = vmatprep.subr.mxu1 %v4006_v31  ;;  %1455 = vmatprep.mubr.f32.mxu1 %v3805_v16 }
 0xc37   : > { %1416 = vmatpush1.msra.mxu1 %v4010_v32 }
 0xc38   : > { %1417 = vmatprep.subr.mxu1 %v4016_v34 }
 0xc39   : > { %1418 = vmatpush1.msra.mxu1 %v4020_v35 }
 0xc3a   : > { %1419 = vmatprep.subr.mxu1 %v4026_v37 }
 0xc3b   : > { %1420 = vmatpush1.msra.mxu1 %v4030_v38 }
 0xc3c   : > { %1421 = vmatprep.subr.mxu1 %v4034_v39 }
 0xc3d   : > { %1422 = vmatpush1.msra.mxu1 %v4038_v40 }
 0xc3e   : > { %1598 = vmatprep.subr.mxu1 %v4092_v13 }
 0xced   : > { %v1243_v9 = vpop.f32.mrf.mxu1  ;;  %v1172_v8 = vpop.f32.mrf.mxu0 }
 0xcee   : > { %v1247_v10 = vadd.f32 %v1243_v9, %v1072_v0 }
 0xcef   : > { %v3415_v11 = vpop.f32.mrf.mxu1 }
 0xcf0   : > { %v1248_v48 = vadd.f32 %v4068_v42, %v1247_v10 }
 0xcf2   : > { %3243 = vst.msk [vmem:[%s4072_s25 + $0x10] sm:$0xff] %vm668_vm1, %v1248_v48  ;;  %v1255_v50 = vmul.f32 %v3245_v47, %v1248_v48 }
 0xcf4   : > { %1258 = vperm.xlu0 %3578, %v1255_v50  }
 0xcf9   : > { %v2894_v51 = vld [vmem:[%s4072_s25 + $0x10] sm:$0xff] }
 0xcfa   : > { %v2912_v53 = vmin.f32 %v2894_v51, 20.0  ;;  %vm2903_vm10 = vcmp.gt.f32.partialorder %v2894_v51, 20.0 }
 0xcfc   : > { %v2923_v54 = vmul.f32 1.442695, %v2912_v53 }
 0xcfe   : > { %3604 = vpow2.f32 %v2923_v54 }
 0xd0b   : > { %v3605_v12 = vpop.eup %3604 }
 0xd0c   : > { %v2955_v55 = vadd.f32 1.0, %v3605_v12  ;;  %v2958_v56 = vmul.f32 -0.5, %v3605_v12  ;;  %v2961_v58 = vand.u32 2147483647, %v3605_v12 }
 0xd0e   : > { %3606 = vlog2.f32 %v2955_v55  ;;  %v2959_v57 = vadd.f32 1.0, %v2958_v56  ;;  %vm2962_vm9 = vcmp.lt.f32.partialorder %v2961_v58, 0.0004427343 }
 0xd10   : > { %v2960_v61 = vmul.f32 %v3605_v12, %v2959_v57 }
 0xd1b   : > { %v3607_v59 = vpop.eup %3606 }
 0xd1c   : > { %v2957_v60 = vmul.f32 0.6931472, %v3607_v59 }
 0xd1e   : > { %v2963_v63 = vsel %vm2962_vm9, %v2960_v61, %v2957_v60 }
 0xd1f   : > { %v3020_v1 = vsel %vm2903_vm10, %v2894_v51, %v2963_v63 }
 0xd20   : > { %v3030_v2 = vsel %vm3027_vm3, %v2894_v51, %v3020_v1 }
 0xd21   : > { %3039 = vst.msk [vmem:[%s4072_s25 + $0x10] sm:$0xff] %vm668_vm1, %v3030_v2 }
 0xd6f   : > { %v1259_v5 = vpop.permute.xlu0 %1258 }
 0xd70   : > { %v1261_v6 = vmul.f32 %v4083_v62, %v1259_v5 }
 0xd72   : > { %v1262_v7 = vadd.f32 %v3244_v4, %v1261_v6 }
 0xd74   : > { %v1263_v0 = vadd.f32 %v1262_v7, %v1172_v8 }
 0xd76   : > { %3608 = vtanh.f32 %v1263_v0 }
 0xd83   : > { %v3609_v9 = vpop.eup %3608 }
 0xd84   : > { %1269 = vrot.lane.b32.xlu1 %v3609_v9, %s3808_s20  ;;  %v1265_v10 = vadd.f32 1.0, %v3609_v9 }
 0xd86   : > { %v1266_v11 = vmul.f32 0.5, %v1265_v10  ;;  %v3250_v10 = vld [vmem:[%s3950_s22 + $0x18] sm:$0xff] }
 0xd88   : > { %v1267_v50 = vmul.f32 %v1266_v11, %v4194_v49 }
 0xdf6   : > { %v1270_v47 = vpop.permute.xlu1 %1269 }
 0xdf7   : > { %v1272_v48 = vmul.f32 %v1270_v47, %v1266_v11 }
 0xdf9   : > { %1274 = vrot.lane.b32.xlu0 %v1272_v48, %s3809_s26 }
 0xe6b   : > { %v1275_v51 = vpop.permute.xlu0 %1274 }
 0xe6c   : > { %v4269_v53 = vadd.f32 %v1275_v51, %v1267_v50 }
 0xe6e   : > { %3610 = vtanh.f32 %v4269_v53 }
 0xe7b   : > { %v3611_v54 = vpop.eup %3610 }
 0xe7c   : > { %1280 = vrot.lane.b32.xlu1 %v3611_v54, %s3808_s20 }
 0xeee   : > { %v1281_v12 = vpop.permute.xlu1 %1280 }
 0xeef   : > { %v1283_v55 = vmul.f32 %v1281_v12, %v1266_v11 }
 0xef1   : > { %1285 = vrot.lane.b32.xlu0 %v1283_v55, %s3809_s26 }
 0xf63   : > { %v1286_v56 = vpop.permute.xlu0 %1285 }
 0xf64   : > { %3246 = vmatmul.mubr.msk.f32.vlgmr.msra.gmra.mxu0 %vm710_vm5, %v1286_v56 }
 0xf65   : > { %3417 = vmatpush3.msra.mxu0 %v3964_v17  ;;  %3432 = vmatprep.mubr.msk.f32.mxu0 %vm3806_vm0, %v3805_v16  ;;  %v1174_v17 = vpop.f32.mrf.mxu0 }
 0xf66   : > { %3418 = vmatprep.subr.mxu0 %v3805_v16 }
 0xf67   : > { %3419 = vmatpush3.msra.mxu0 %v3966_v18 }
 0xf68   : > { %3420 = vmatprep.subr.mxu0 %v3805_v16 }
 0xf69   : > { %3421 = vmatpush3.msra.mxu0 %v3970_v19 }
 0xf6a   : > { %3422 = vmatprep.subr.mxu0 %v3805_v16 }
 0xf6b   : > { %3423 = vmatpush3.msra.mxu0 %v3983_v24 }
 0xf6c   : > { %3424 = vmatprep.subr.mxu0 %v3805_v16 }
 0xf6d   : > { %3425 = vmatpush3.msra.mxu0 %v3993_v27 }
 0xf6e   : > { %3426 = vmatprep.subr.mxu0 %v3805_v16 }
 0xf6f   : > { %3427 = vmatpush3.msra.mxu0 %v4003_v30 }
 0xf70   : > { %3428 = vmatprep.subr.mxu0 %v3805_v16 }
 0xf71   : > { %3429 = vmatpush3.msra.mxu0 %v4013_v33 }
 0xf72   : > { %3430 = vmatprep.subr.mxu0 %v3805_v16 }
 0xf73   : > { %3431 = vmatpush3.msra.mxu0 %v4023_v36 }
 0xf74   : > { %1692 = vmatprep.subr.mxu0 %v3972_v20 }
0x1024   : > { %v1355_v18 = vpop.f32.mrf.mxu0 }
0x1025   : > { %v1360_v19 = vadd.f32 %v1355_v18, %v1174_v17 }
0x1027   : > { %v1361_v24 = vadd.f32 %v4142_v52, %v1360_v19 }
0x1029   : > { %3612 = vtanh.f32 %v1361_v24 }
0x1036   : > { %v3613_v49 = vpop.eup %3612 }
0x1037   : > { %1367 = vrot.lane.b32.xlu1 %v3613_v49, %s3808_s20  ;;  %v1363_v57 = vadd.f32 1.0, %v3613_v49 }
0x1039   : > { %v1364_v58 = vmul.f32 0.5, %v1363_v57 }
0x103b   : > { %v1365_v61 = vmul.f32 %v1364_v58, %v4222_v3 }
0x10a9   : > { %v1368_v59 = vpop.permute.xlu1 %1367 }
0x10aa   : > { %v1370_v60 = vmul.f32 %v1368_v59, %v1364_v58 }
0x10ac   : > { %1372 = vrot.lane.b32.xlu0 %v1370_v60, %s3809_s26  ;;  %v4350_v60 = vld [vmem:[#allocation4 + $0xb8] sm:$0xff] }
0x111e   : > { %v1373_v63 = vpop.permute.xlu0 %1372 }
0x111f   : > { %v4297_v1 = vadd.f32 %v1373_v63, %v1365_v61  ;;  %v4360_v61 = vld [vmem:[#allocation4 + $0x88] sm:$0xff]  ;;  %v4364_v63 = vld [vmem:[#allocation4 + $0x70] sm:$0xff] }
0x1121   : > { %3614 = vtanh.f32 %v4297_v1 }
0x112e   : > { %v3615_v20 = vpop.eup %3614 }
0x112f   : > { %1378 = vrot.lane.b32.xlu1 %v3615_v20, %s3808_s20  ;;  %v4375_v20 = vld [vmem:[#allocation4 + $0xb0] sm:$0xff] }
0x11a1   : > { %v1379_v2 = vpop.permute.xlu1 %1378 }
0x11a2   : > { %v1381_v4 = vmul.f32 %v1379_v2, %v1364_v58 }
0x11a4   : > { %1384 = vrot.lane.b32.xlu0 %v1381_v4, %s3808_s20 }
0x1216   : > { %v1385_v5 = vpop.permute.xlu0 %1384 }
0x1217   : > { %v1387_v6 = vsel %vm710_vm5, %v1286_v56, %v1385_v5 }
0x1218   : > { %3247 = vmatmul.mubr.msk.f32.vlgmr.msra.gmra.mxu1 %vm515_vm6, %v1387_v6  ;;  %3433 = vmatmul.mubr.msk.f32.vlgmr.msra.gmra.mxu0 %vm515_vm6, %v1387_v6 }
0x1219   : > { %1599 = vmatpush1.msra.mxu1 %v4094_v14  ;;  %1638 = vmatprep.mubr.f32.mxu1 %v3805_v16 }
0x121a   : > { %1600 = vmatprep.subr.mxu1 %v4096_v15  ;;  %1693 = vmatpush1.msra.mxu0 %v3976_v21  ;;  %v1357_v21 = vpop.f32.mrf.mxu0 }
0x121b   : > { %1601 = vmatpush1.msra.mxu1 %v4099_v41  ;;  %1694 = vmatprep.subr.mxu0 %v3978_v22 }
0x121c   : > { %1602 = vmatprep.subr.mxu1 %v4103_v43  ;;  %1695 = vmatpush1.msra.mxu0 %v3980_v23 }
0x121d   : > { %1603 = vmatpush1.msra.mxu1 %v4106_v44  ;;  %1696 = vmatprep.subr.mxu0 %v3986_v25 }
0x121e   : > { %1604 = vmatprep.subr.mxu1 %v4109_v45  ;;  %1697 = vmatpush1.msra.mxu0 %v3990_v26  ;;  %v3251_v26 = vld [vmem:[%s3948_s21 + $0x18] sm:$0xff] }
0x121f   : > { %1605 = vmatpush1.msra.mxu1 %v4112_v46  ;;  %1698 = vmatprep.subr.mxu0 %v3996_v28 }
0x1220   : > { %3435 = vmatprep.subr.mxu1 %v3805_v16  ;;  %1699 = vmatpush1.msra.mxu0 %v4000_v29 }
0x1221   : > { %1700 = vmatprep.subr.mxu0 %v4006_v31  ;;  %1740 = vmatprep.mubr.f32.mxu0 %v3805_v16 }
0x1222   : > { %1701 = vmatpush1.msra.mxu0 %v4010_v32 }
0x1223   : > { %1702 = vmatprep.subr.mxu0 %v4016_v34 }
0x1224   : > { %1703 = vmatpush1.msra.mxu0 %v4020_v35 }
0x1225   : > { %1704 = vmatprep.subr.mxu0 %v4026_v37 }
0x1226   : > { %1705 = vmatpush1.msra.mxu0 %v4030_v38 }
0x1227   : > { %1706 = vmatprep.subr.mxu0 %v4034_v39 }
0x1228   : > { %1707 = vmatpush1.msra.mxu0 %v4038_v40 }
0x1229   : > { %1883 = vmatprep.subr.mxu0 %v4092_v13 }
0x12d8   : > { %v1528_v22 = vpop.f32.mrf.mxu0  ;;  %v1457_v50 = vpop.f32.mrf.mxu1 }
0x12d9   : > { %v1532_v23 = vadd.f32 %v1528_v22, %v1357_v21 }
0x12da   : > { %v3434_v25 = vpop.f32.mrf.mxu0  ;;  %v1459_v2 = vpop.f32.mrf.mxu1 }
0x12db   : > { %v1533_v28 = vadd.f32 %v4068_v42, %v1532_v23 }
0x12dd   : > { %3249 = vst.msk [vmem:[%s4072_s25 + $0x18] sm:$0xff] %vm668_vm1, %v1533_v28  ;;  %v1540_v29 = vmul.f32 %v3251_v26, %v1533_v28 }
0x12df   : > { %1543 = vperm.xlu1 %3579, %v1540_v29  }
0x12e4   : > { %v2895_v31 = vld [vmem:[%s4072_s25 + $0x18] sm:$0xff] }
0x12e5   : > { %v2913_v32 = vmin.f32 %v2895_v31, 20.0  ;;  %vm2904_vm12 = vcmp.gt.f32.partialorder %v2895_v31, 20.0 }
0x12e7   : > { %v2925_v34 = vmul.f32 1.442695, %v2913_v32 }
0x12e9   : > { %3616 = vpow2.f32 %v2925_v34  ;;  %v4397_v34 = vld [vmem:[#allocation4 + $0x98] sm:$0xff] }
0x12f6   : > { %v3617_v35 = vpop.eup %3616 }
0x12f7   : > { %v2964_v37 = vadd.f32 1.0, %v3617_v35  ;;  %v2967_v38 = vmul.f32 -0.5, %v3617_v35  ;;  %v2970_v40 = vand.u32 2147483647, %v3617_v35 }
0x12f9   : > { %3618 = vlog2.f32 %v2964_v37  ;;  %v2968_v39 = vadd.f32 1.0, %v2967_v38  ;;  %vm2971_vm11 = vcmp.lt.f32.partialorder %v2970_v40, 0.0004427343  ;;  %v4430_v37 = vld [vmem:[#allocation4 + $0x30] sm:$0xff]  ;;  %v4433_v38 = vld [vmem:[#allocation4 + $0x20] sm:$0xff]  ;;  %v4439_v40 = vld [vmem:[#allocation4 + $0x8] sm:$0xff] }
0x12fb   : > { %v2969_v8 = vmul.f32 %v3617_v35, %v2968_v39  ;;  %v4401_v35 = vld [vmem:[#allocation4 + $0x90] sm:$0xff]  ;;  %v4436_v39 = vld [vmem:[#allocation4 + $0x18] sm:$0xff] }
0x1306   : > { %v3619_v3 = vpop.eup %3618 }
0x1307   : > { %v2966_v7 = vmul.f32 0.6931472, %v3619_v3  ;;  %v4442_v3 = vld [vmem:[#allocation4] sm:$0xff] }
0x1309   : > { %v2972_v42 = vsel %vm2971_vm11, %v2969_v8, %v2966_v7 }
0x130a   : > { %v3021_v0 = vsel %vm2904_vm12, %v2895_v31, %v2972_v42 }
0x130b   : > { %v3031_v9 = vsel %vm3027_vm3, %v2895_v31, %v3021_v0 }
0x130c   : > { %3040 = vst.msk [vmem:[%s4072_s25 + $0x18] sm:$0xff] %vm668_vm1, %v3031_v9  ;;  %v3257_v9 = vld [vmem:[%s3948_s21 + $0x20] sm:$0xff] }
0x135a   : > { %v1544_v11 = vpop.permute.xlu1 %1543 }
0x135b   : > { %v1546_v47 = vmul.f32 %v4083_v62, %v1544_v11 }
0x135d   : > { %v1547_v48 = vadd.f32 %v3250_v10, %v1546_v47  ;;  %v4450_v10 = vld [vmem:[%s4772_s7] ss:$0 sm:$0xff] }
0x135f   : > { %v1548_v51 = vadd.f32 %v1547_v48, %v1457_v50 }
0x1361   : > { %3620 = vtanh.f32 %v1548_v51 }
0x136e   : > { %v3621_v54 = vpop.eup %3620 }
0x136f   : > { %1554 = vrot.lane.b32.xlu0 %v3621_v54, %s3808_s20  ;;  %v1550_v12 = vadd.f32 1.0, %v3621_v54 }
0x1371   : > { %v1551_v55 = vmul.f32 0.5, %v1550_v12 }
0x1373   : > { %v1552_v18 = vmul.f32 %v1551_v55, %v4269_v53  ;;  %v4356_v53 = vld [vmem:[#allocation4 + $0xa0] sm:$0xff] }
0x13e1   : > { %v1555_v56 = vpop.permute.xlu0 %1554 }
0x13e2   : > { %v1557_v17 = vmul.f32 %v1555_v56, %v1551_v55 }
0x13e4   : > { %1559 = vrot.lane.b32.xlu1 %v1557_v17, %s3809_s26 }
0x1456   : > { %v1560_v19 = vpop.permute.xlu1 %1559 }
0x1457   : > { %v4344_v24 = vadd.f32 %v1560_v19, %v1552_v18 }
0x1459   : > { %3622 = vtanh.f32 %v4344_v24 }
0x1466   : > { %v3623_v49 = vpop.eup %3622 }
0x1467   : > { %1565 = vrot.lane.b32.xlu0 %v3623_v49, %s3808_s20 }
0x14d9   : > { %v1566_v57 = vpop.permute.xlu0 %1565 }
0x14da   : > { %v1568_v58 = vmul.f32 %v1566_v57, %v1551_v55 }
0x14dc   : > { %1570 = vrot.lane.b32.xlu1 %v1568_v58, %s3809_s26 }
0x154e   : > { %v1571_v59 = vpop.permute.xlu1 %1570 }
0x154f   : > { %3252 = vmatmul.mubr.msk.f32.vlgmr.msra.gmra.mxu1 %vm710_vm5, %v1571_v59 }
0x1550   : > { %3436 = vmatpush3.msra.mxu1 %v4350_v60  ;;  %3451 = vmatprep.mubr.msk.f32.mxu1 %vm3806_vm0, %v3805_v16 }
0x1551   : > { %3437 = vmatprep.subr.mxu1 %v3805_v16 }
0x1552   : > { %3438 = vmatpush3.msra.mxu1 %v4356_v53 }
0x1553   : > { %3439 = vmatprep.subr.mxu1 %v3805_v16 }
0x1554   : > { %3440 = vmatpush3.msra.mxu1 %v4360_v61 }
0x1555   : > { %3441 = vmatprep.subr.mxu1 %v3805_v16 }
0x1556   : > { %3442 = vmatpush3.msra.mxu1 %v4364_v63 }
0x1557   : > { %3443 = vmatprep.subr.mxu1 %v3805_v16 }
0x1558   : > { %3444 = vmatpush3.msra.mxu1 %v3993_v27 }
0x1559   : > { %3445 = vmatprep.subr.mxu1 %v3805_v16 }
0x155a   : > { %3446 = vmatpush3.msra.mxu1 %v4003_v30 }
0x155b   : > { %3447 = vmatprep.subr.mxu1 %v3805_v16 }
0x155c   : > { %3448 = vmatpush3.msra.mxu1 %v4013_v33 }
0x155d   : > { %3449 = vmatprep.subr.mxu1 %v3805_v16 }
0x155e   : > { %3450 = vmatpush3.msra.mxu1 %v4023_v36 }
0x155f   : > { %1977 = vmatprep.subr.mxu1 %v4375_v20 }
0x160f   : > { %v1640_v4 = vpop.f32.mrf.mxu1 }
0x1610   : > { %v1645_v5 = vadd.f32 %v1640_v4, %v1459_v2 }
0x1611   : > { %v1642_v7 = vpop.f32.mrf.mxu1 }
0x1612   : > { %v1646_v27 = vadd.f32 %v4142_v52, %v1645_v5 }
0x1614   : > { %3624 = vtanh.f32 %v1646_v27 }
0x1621   : > { %v3625_v6 = vpop.eup %3624 }
0x1622   : > { %1652 = vrot.lane.b32.xlu0 %v3625_v6, %s3808_s20  ;;  %v1648_v30 = vadd.f32 1.0, %v3625_v6 }
0x1624   : > { %v1649_v21 = vmul.f32 0.5, %v1648_v30 }
0x1626   : > { %v1650_v36 = vmul.f32 %v1649_v21, %v4297_v1  ;;  %v4393_v1 = vld [vmem:[#allocation4 + $0xa8] sm:$0xff] }
0x1694   : > { %v1653_v33 = vpop.permute.xlu0 %1652 }
0x1695   : > { %v1655_v22 = vmul.f32 %v1653_v33, %v1649_v21 }
0x1697   : > { %1657 = vrot.lane.b32.xlu1 %v1655_v22, %s3809_s26 }
0x1709   : > { %v1658_v23 = vpop.permute.xlu1 %1657 }
0x170a   : > { %v4382_v25 = vadd.f32 %v1658_v23, %v1650_v36 }
0x170c   : > { %3626 = vtanh.f32 %v4382_v25 }
0x1719   : > { %v3627_v26 = vpop.eup %3626 }
0x171a   : > { %1663 = vrot.lane.b32.xlu0 %v3627_v26, %s3808_s20 }
0x178c   : > { %v1664_v28 = vpop.permute.xlu0 %1663 }
0x178d   : > { %v1666_v29 = vmul.f32 %v1664_v28, %v1649_v21 }
0x178f   : > { %1669 = vrot.lane.b32.xlu1 %v1666_v29, %s3808_s20 }
0x1801   : > { %v1670_v31 = vpop.permute.xlu1 %1669 }
0x1802   : > { %v1672_v32 = vsel %vm710_vm5, %v1571_v59, %v1670_v31  ;;  %v3256_v59 = vld [vmem:[%s3950_s22 + $0x20] sm:$0xff] }
0x1803   : > { %3253 = vmatmul.mubr.msk.f32.vlgmr.msra.gmra.mxu0 %vm515_vm6, %v1672_v32  ;;  %3452 = vmatmul.mubr.msk.f32.vlgmr.msra.gmra.mxu1 %vm515_vm6, %v1672_v32 }
0x1804   : > { %1884 = vmatpush1.msra.mxu0 %v4094_v14  ;;  %1923 = vmatprep.mubr.f32.mxu0 %v3805_v16  ;;  %v4405_v14 = vld [vmem:[#allocation4 + $0x80] sm:$0xff] }
0x1805   : > { %1885 = vmatprep.subr.mxu0 %v4096_v15  ;;  %1978 = vmatpush1.msra.mxu1 %v4393_v1  ;;  %v4409_v15 = vld [vmem:[#allocation4 + $0x78] sm:$0xff] }
0x1806   : > { %1886 = vmatpush1.msra.mxu0 %v4099_v41  ;;  %1979 = vmatprep.subr.mxu1 %v4397_v34  ;;  %v4413_v41 = vld [vmem:[#allocation4 + $0x68] sm:$0xff] }
0x1807   : > { %1887 = vmatprep.subr.mxu0 %v4103_v43  ;;  %1980 = vmatpush1.msra.mxu1 %v4401_v35  ;;  %v4417_v43 = vld [vmem:[#allocation4 + $0x60] sm:$0xff] }
0x1808   : > { %1888 = vmatpush1.msra.mxu0 %v4106_v44  ;;  %1981 = vmatprep.subr.mxu1 %v4405_v14  ;;  %v4420_v44 = vld [vmem:[#allocation4 + $0x50] sm:$0xff] }
0x1809   : > { %1889 = vmatprep.subr.mxu0 %v4109_v45  ;;  %1982 = vmatpush1.msra.mxu1 %v4409_v15  ;;  %v4424_v45 = vld [vmem:[#allocation4 + $0x48] sm:$0xff] }
0x180a   : > { %1890 = vmatpush1.msra.mxu0 %v4112_v46  ;;  %1983 = vmatprep.subr.mxu1 %v4413_v41  ;;  %v4427_v46 = vld [vmem:[#allocation4 + $0x38] sm:$0xff] }
0x180b   : > { %3454 = vmatprep.subr.mxu0 %v3805_v16  ;;  %1984 = vmatpush1.msra.mxu1 %v4417_v43 }
0x180c   : > { %1985 = vmatprep.subr.mxu1 %v4420_v44  ;;  %2025 = vmatprep.mubr.f32.mxu1 %v3805_v16 }
0x180d   : > { %1986 = vmatpush1.msra.mxu1 %v4424_v45 }
0x180e   : > { %1987 = vmatprep.subr.mxu1 %v4427_v46 }
0x180f   : > { %1988 = vmatpush1.msra.mxu1 %v4430_v37 }
0x1810   : > { %1989 = vmatprep.subr.mxu1 %v4433_v38 }
0x1811   : > { %1990 = vmatpush1.msra.mxu1 %v4436_v39 }
0x1812   : > { %1991 = vmatprep.subr.mxu1 %v4439_v40 }
0x1813   : > { %1992 = vmatpush1.msra.mxu1 %v4442_v3 }
0x1814   : > { %2168 = vmatprep.subr.mxu1 %v4092_v13 }
0x18c3   : > { %v1813_v8 = vpop.f32.mrf.mxu1  ;;  %v1742_v27 = vpop.f32.mrf.mxu0 }
0x18c4   : > { %v1817_v42 = vadd.f32 %v1813_v8, %v1642_v7  ;;  %v4484_v7 = vld [vmem:[#allocation4 + $0x40] sm:$0xff]  ;;  %v4488_v8 = vld [vmem:[#allocation4 + $0x28] sm:$0xff] }
0x18c5   : > { %v3453_v0 = vpop.f32.mrf.mxu1 }
0x18c6   : > { %v1818_v11 = vadd.f32 %v4450_v10, %v1817_v42  ;;  %v4492_v42 = vld [vmem:[#allocation4 + $0x10] sm:$0xff]  ;;  %v1744_v0 = vpop.f32.mrf.mxu0 }
0x18c8   : > { %3255 = vst.msk [vmem:[%s4072_s25 + $0x20] sm:$0xff] %vm668_vm1, %v1818_v11  ;;  %v1825_v47 = vmul.f32 %v3257_v9, %v1818_v11 }
0x18ca   : > { %1828 = vperm.xlu0 %3578, %v1825_v47  }
0x18cf   : > { %v2896_v48 = vld [vmem:[%s4072_s25 + $0x20] sm:$0xff] }
0x18d0   : > { %v2914_v50 = vmin.f32 %v2896_v48, 20.0  ;;  %vm2905_vm14 = vcmp.gt.f32.partialorder %v2896_v48, 20.0 }
0x18d2   : > { %v2927_v51 = vmul.f32 1.442695, %v2914_v50 }
0x18d4   : > { %3628 = vpow2.f32 %v2927_v51 }
0x18e1   : > { %v3629_v13 = vpop.eup %3628 }
0x18e2   : > { %v2973_v54 = vadd.f32 1.0, %v3629_v13  ;;  %v2976_v12 = vmul.f32 -0.5, %v3629_v13  ;;  %v2979_v56 = vand.u32 2147483647, %v3629_v13 }
0x18e4   : > { %3630 = vlog2.f32 %v2973_v54  ;;  %v2977_v55 = vadd.f32 1.0, %v2976_v12  ;;  %vm2980_vm13 = vcmp.lt.f32.partialorder %v2979_v56, 0.0004427343 }
0x18e6   : > { %v2978_v19 = vmul.f32 %v3629_v13, %v2977_v55 }
0x18f1   : > { %v3631_v17 = vpop.eup %3630 }
0x18f2   : > { %v2975_v18 = vmul.f32 0.6931472, %v3631_v17 }
0x18f4   : > { %v2981_v49 = vsel %vm2980_vm13, %v2978_v19, %v2975_v18 }
0x18f5   : > { %v3022_v57 = vsel %vm2905_vm14, %v2896_v48, %v2981_v49 }
0x18f6   : > { %v3032_v58 = vsel %vm3027_vm3, %v2896_v48, %v3022_v57  ;;  %v4512_v57 = vld [vmem:[#allocation6 + $0x28] sm:$0xff] }
0x18f7   : > { %3041 = vst.msk [vmem:[%s4072_s25 + $0x20] sm:$0xff] %vm668_vm1, %v3032_v58  ;;  %v4516_v58 = vld [vmem:[#allocation6 + $0x20] sm:$0xff] }
0x1945   : > { %v1829_v2 = vpop.permute.xlu0 %1828 }
0x1946   : > { %v1831_v4 = vmul.f32 %v4083_v62, %v1829_v2  ;;  %v4524_v2 = vld [vmem:[#allocation6 + $0x10] sm:$0xff] }
0x1948   : > { %v1832_v5 = vadd.f32 %v3256_v59, %v1831_v4  ;;  %v4520_v59 = vld [vmem:[#allocation6 + $0x18] sm:$0xff]  ;;  %v4528_v4 = vld [vmem:[#allocation6 + $0x8] sm:$0xff] }
0x194a   : > { %v1833_v6 = vadd.f32 %v1832_v5, %v1742_v27  ;;  %v4532_v5 = vld [vmem:[#allocation6] sm:$0xff]  ;;  %v4547_v27 = vld [vmem:[#allocation6 + $0x38] sm:$0xff] }
0x194c   : > { %3632 = vtanh.f32 %v1833_v6 }
0x1959   : > { %v3633_v30 = vpop.eup %3632 }
0x195a   : > { %1839 = vrot.lane.b32.xlu1 %v3633_v30, %s3808_s20  ;;  %v1835_v21 = vadd.f32 1.0, %v3633_v30 }
0x195c   : > { %v1836_v33 = vmul.f32 0.5, %v1835_v21 }
0x195e   : > { %v1837_v23 = vmul.f32 %v1836_v33, %v4344_v24  ;;  %v4480_v24 = vld [vmem:[#allocation4 + $0x58] sm:$0xff] }
0x19cc   : > { %v1840_v22 = vpop.permute.xlu1 %1839 }
0x19cd   : > { %v1842_v36 = vmul.f32 %v1840_v22, %v1836_v33  ;;  %v3263_v22 = vld [vmem:[%s3948_s21 + $0x28] sm:$0xff] }
0x19cf   : > { %1844 = vrot.lane.b32.xlu0 %v1842_v36, %s3809_s26 }
0x1a41   : > { %v1845_v26 = vpop.permute.xlu0 %1844 }
0x1a42   : > { %v4464_v28 = vadd.f32 %v1845_v26, %v1837_v23 }
0x1a44   : > { %3634 = vtanh.f32 %v4464_v28 }
0x1a51   : > { %v3635_v62 = vpop.eup %3634 }
0x1a52   : > { %1850 = vrot.lane.b32.xlu1 %v3635_v62, %s3808_s20 }
0x1ac4   : > { %v1851_v29 = vpop.permute.xlu1 %1850 }
0x1ac5   : > { %v1853_v31 = vmul.f32 %v1851_v29, %v1836_v33 }
0x1ac7   : > { %1855 = vrot.lane.b32.xlu0 %v1853_v31, %s3809_s26 }
0x1b39   : > { %v1856_v32 = vpop.permute.xlu0 %1855 }
0x1b3a   : > { %3258 = vmatmul.mubr.msk.f32.vlgmr.msra.gmra.mxu0 %vm710_vm5, %v1856_v32 }
0x1b3b   : > { %3455 = vmatpush3.msra.mxu0 %v4350_v60  ;;  %3470 = vmatprep.mubr.msk.f32.mxu0 %vm3806_vm0, %v3805_v16 }
0x1b3c   : > { %3456 = vmatprep.subr.mxu0 %v3805_v16 }
0x1b3d   : > { %3457 = vmatpush3.msra.mxu0 %v4356_v53 }
0x1b3e   : > { %3458 = vmatprep.subr.mxu0 %v3805_v16 }
0x1b3f   : > { %3459 = vmatpush3.msra.mxu0 %v4360_v61 }
0x1b40   : > { %3460 = vmatprep.subr.mxu0 %v3805_v16 }
0x1b41   : > { %3461 = vmatpush3.msra.mxu0 %v4364_v63 }
0x1b42   : > { %3462 = vmatprep.subr.mxu0 %v3805_v16 }
0x1b43   : > { %3463 = vmatpush3.msra.mxu0 %v4480_v24 }
0x1b44   : > { %3464 = vmatprep.subr.mxu0 %v3805_v16 }
0x1b45   : > { %3465 = vmatpush3.msra.mxu0 %v4484_v7 }
0x1b46   : > { %3466 = vmatprep.subr.mxu0 %v3805_v16 }
0x1b47   : > { %3467 = vmatpush3.msra.mxu0 %v4488_v8 }
0x1b48   : > { %3468 = vmatprep.subr.mxu0 %v3805_v16 }
0x1b49   : > { %3469 = vmatpush3.msra.mxu0 %v4492_v42 }
0x1b4a   : > { %2262 = vmatprep.subr.mxu0 %v4375_v20 }
0x1bfa   : > { %v1925_v9 = vpop.f32.mrf.mxu0 }
0x1bfb   : > { %v1930_v11 = vadd.f32 %v1925_v9, %v1744_v0 }
0x1bfc   : > { %v1927_v6 = vpop.f32.mrf.mxu0 }
0x1bfd   : > { %v1931_v47 = vadd.f32 %v4142_v52, %v1930_v11 }
0x1bff   : > { %3636 = vtanh.f32 %v1931_v47 }
0x1c0c   : > { %v3637_v48 = vpop.eup %3636 }
0x1c0d   : > { %1937 = vrot.lane.b32.xlu1 %v3637_v48, %s3808_s20  ;;  %v1933_v50 = vadd.f32 1.0, %v3637_v48 }
0x1c0f   : > { %v1934_v51 = vmul.f32 0.5, %v1933_v50 }
0x1c11   : > { %v1935_v12 = vmul.f32 %v1934_v51, %v4382_v25  ;;  %v4508_v25 = vld [vmem:[#allocation6 + $0x30] sm:$0xff] }
0x1c7f   : > { %v1938_v13 = vpop.permute.xlu1 %1937 }
0x1c80   : > { %v1940_v54 = vmul.f32 %v1938_v13, %v1934_v51 }
0x1c82   : > { %1942 = vrot.lane.b32.xlu0 %v1940_v54, %s3809_s26 }
0x1cf4   : > { %v1943_v55 = vpop.permute.xlu0 %1942 }
0x1cf5   : > { %v4500_v56 = vadd.f32 %v1943_v55, %v1935_v12  ;;  %v3262_v12 = vld [vmem:[%s3950_s22 + $0x28] sm:$0xff] }
0x1cf7   : > { %3638 = vtanh.f32 %v4500_v56 }
0x1d04   : > { %v3639_v17 = vpop.eup %3638 }
0x1d05   : > { %1948 = vrot.lane.b32.xlu1 %v3639_v17, %s3808_s20  ;;  %v4562_v17 = vld [vmem:[%s4767_s2] ss:$0 sm:$0xff] }
0x1d77   : > { %v1949_v52 = vpop.permute.xlu1 %1948 }
0x1d78   : > { %v1951_v18 = vmul.f32 %v1949_v52, %v1934_v51 }
0x1d7a   : > { %1954 = vrot.lane.b32.xlu0 %v1951_v18, %s3808_s20 }
0x1dec   : > { %v1955_v19 = vpop.permute.xlu0 %1954 }
0x1ded   : > { %v1957_v49 = vsel %vm710_vm5, %v1856_v32, %v1955_v19 }
0x1dee   : > { %3259 = vmatmul.mubr.msk.f32.vlgmr.msra.gmra.mxu1 %vm515_vm6, %v1957_v49  ;;  %3471 = vmatmul.mubr.msk.f32.vlgmr.msra.gmra.mxu0 %vm515_vm6, %v1957_v49 }
0x1def   : > { %2169 = vmatpush1.msra.mxu1 %v4508_v25  ;;  %2208 = vmatprep.mubr.f32.mxu1 %v3805_v16 }
0x1df0   : > { %2170 = vmatprep.subr.mxu1 %v4512_v57  ;;  %2263 = vmatpush1.msra.mxu0 %v4393_v1 }
0x1df1   : > { %2171 = vmatpush1.msra.mxu1 %v4516_v58  ;;  %2264 = vmatprep.subr.mxu0 %v4397_v34 }
0x1df2   : > { %2172 = vmatprep.subr.mxu1 %v4520_v59  ;;  %2265 = vmatpush1.msra.mxu0 %v4401_v35 }
0x1df3   : > { %2173 = vmatpush1.msra.mxu1 %v4524_v2  ;;  %2266 = vmatprep.subr.mxu0 %v4405_v14 }
0x1df4   : > { %2174 = vmatprep.subr.mxu1 %v4528_v4  ;;  %2267 = vmatpush1.msra.mxu0 %v4409_v15 }
0x1df5   : > { %2175 = vmatpush1.msra.mxu1 %v4532_v5  ;;  %2268 = vmatprep.subr.mxu0 %v4413_v41 }
0x1df6   : > { %3473 = vmatprep.subr.mxu1 %v3805_v16  ;;  %2269 = vmatpush1.msra.mxu0 %v4417_v43 }
0x1df7   : > { %2270 = vmatprep.subr.mxu0 %v4420_v44  ;;  %2310 = vmatprep.mubr.f32.mxu0 %v3805_v16 }
0x1df8   : > { %2271 = vmatpush1.msra.mxu0 %v4424_v45 }
0x1df9   : > { %2272 = vmatprep.subr.mxu0 %v4427_v46 }
0x1dfa   : > { %2273 = vmatpush1.msra.mxu0 %v4430_v37 }
0x1dfb   : > { %2274 = vmatprep.subr.mxu0 %v4433_v38 }
0x1dfc   : > { %2275 = vmatpush1.msra.mxu0 %v4436_v39 }
0x1dfd   : > { %2276 = vmatprep.subr.mxu0 %v4439_v40 }
0x1dfe   : > { %2277 = vmatpush1.msra.mxu0 %v4442_v3 }
0x1dff   : > { %2453 = vmatprep.subr.mxu0 %v4547_v27 }
0x1eae   : > { %v2098_v30 = vpop.f32.mrf.mxu0  ;;  %v2027_v19 = vpop.f32.mrf.mxu1 }
0x1eaf   : > { %v2102_v21 = vadd.f32 %v2098_v30, %v1927_v6 }
0x1eb0   : > { %v3472_v33 = vpop.f32.mrf.mxu0 }
0x1eb1   : > { %v2103_v36 = vadd.f32 %v4450_v10, %v2102_v21 }
0x1eb3   : > { %3261 = vst.msk [vmem:[%s4072_s25 + $0x28] sm:$0xff] %vm668_vm1, %v2103_v36  ;;  %v2110_v23 = vmul.f32 %v3263_v22, %v2103_v36 }
0x1eb5   : > { %2113 = vperm.xlu1 %3579, %v2110_v23  }
0x1eba   : > { %v2897_v26 = vld [vmem:[%s4072_s25 + $0x28] sm:$0xff] }
0x1ebb   : > { %v2915_v62 = vmin.f32 %v2897_v26, 20.0  ;;  %vm2906_vm2 = vcmp.gt.f32.partialorder %v2897_v26, 20.0 }
0x1ebd   : > { %v2929_v29 = vmul.f32 1.442695, %v2915_v62 }
0x1ebf   : > { %3640 = vpow2.f32 %v2929_v29 }
0x1ecc   : > { %v3641_v31 = vpop.eup %3640 }
0x1ecd   : > { %v2982_v32 = vadd.f32 1.0, %v3641_v31  ;;  %v2985_v0 = vmul.f32 -0.5, %v3641_v31  ;;  %v2988_v11 = vand.u32 2147483647, %v3641_v31 }
0x1ecf   : > { %3642 = vlog2.f32 %v2982_v32  ;;  %v2986_v9 = vadd.f32 1.0, %v2985_v0  ;;  %vm2989_vm15 = vcmp.lt.f32.partialorder %v2988_v11, 0.0004427343  ;;  %v4595_v11 = vld [vmem:[%s4770_s5] ss:$0 sm:$0xff] }
0x1ed1   : > { %v2987_v50 = vmul.f32 %v3641_v31, %v2986_v9 }
0x1edc   : > { %v3643_v47 = vpop.eup %3642 }
0x1edd   : > { %v2984_v48 = vmul.f32 0.6931472, %v3643_v47 }
0x1edf   : > { %v2990_v51 = vsel %vm2989_vm15, %v2987_v50, %v2984_v48 }
0x1ee0   : > { %v3023_v13 = vsel %vm2906_vm2, %v2897_v26, %v2990_v51 }
0x1ee1   : > { %v3033_v54 = vsel %vm3027_vm3, %v2897_v26, %v3023_v13 }
0x1ee2   : > { %3042 = vst.msk [vmem:[%s4072_s25 + $0x28] sm:$0xff] %vm668_vm1, %v3033_v54 }
0x1f30   : > { %v2114_v55 = vpop.permute.xlu1 %2113 }
0x1f31   : > { %v2116_v52 = vmul.f32 %v4562_v17, %v2114_v55 }
0x1f33   : > { %v2117_v18 = vadd.f32 %v3262_v12, %v2116_v52 }
0x1f35   : > { %v2118_v49 = vadd.f32 %v2117_v18, %v2027_v19 }
0x1f37   : > { %3644 = vtanh.f32 %v2118_v49 }
0x1f44   : > { %v3645_v6 = vpop.eup %3644 }
0x1f45   : > { %2124 = vrot.lane.b32.xlu0 %v3645_v6, %s3808_s20  ;;  %v2120_v30 = vadd.f32 1.0, %v3645_v6 }
0x1f47   : > { %v2121_v21 = vmul.f32 0.5, %v2120_v30 }
0x1f49   : > { %v2122_v36 = vmul.f32 %v2121_v21, %v4464_v28  ;;  %v2029_v28 = vpop.f32.mrf.mxu1 }
0x1fb7   : > { %v2125_v33 = vpop.permute.xlu0 %2124 }
0x1fb8   : > { %v2127_v22 = vmul.f32 %v2125_v33, %v2121_v21 }
0x1fba   : > { %2129 = vrot.lane.b32.xlu1 %v2127_v22, %s3809_s26 }
0x202c   : > { %v2130_v23 = vpop.permute.xlu1 %2129 }
0x202d   : > { %v4568_v26 = vadd.f32 %v2130_v23, %v2122_v36  ;;  %v3268_v36 = vld [vmem:[%s3950_s22 + $0x30] sm:$0xff] }
0x202f   : > { %3646 = vtanh.f32 %v4568_v26 }
0x203c   : > { %v3647_v62 = vpop.eup %3646 }
0x203d   : > { %2135 = vrot.lane.b32.xlu0 %v3647_v62, %s3808_s20 }
0x20af   : > { %v2136_v29 = vpop.permute.xlu0 %2135 }
0x20b0   : > { %v2138_v31 = vmul.f32 %v2136_v29, %v2121_v21 }
0x20b2   : > { %2140 = vrot.lane.b32.xlu1 %v2138_v31, %s3809_s26 }
0x2124   : > { %v2141_v32 = vpop.permute.xlu1 %2140 }
0x2125   : > { %3264 = vmatmul.mubr.msk.f32.vlgmr.msra.gmra.mxu1 %vm710_vm5, %v2141_v32 }
0x2126   : > { %3474 = vmatpush3.msra.mxu1 %v4350_v60  ;;  %3489 = vmatprep.mubr.msk.f32.mxu1 %vm3806_vm0, %v3805_v16 }
0x2127   : > { %3475 = vmatprep.subr.mxu1 %v3805_v16 }
0x2128   : > { %3476 = vmatpush3.msra.mxu1 %v4356_v53 }
0x2129   : > { %3477 = vmatprep.subr.mxu1 %v3805_v16 }
0x212a   : > { %3478 = vmatpush3.msra.mxu1 %v4360_v61 }
0x212b   : > { %3479 = vmatprep.subr.mxu1 %v3805_v16 }
0x212c   : > { %3480 = vmatpush3.msra.mxu1 %v4364_v63 }
0x212d   : > { %3481 = vmatprep.subr.mxu1 %v3805_v16 }
0x212e   : > { %3482 = vmatpush3.msra.mxu1 %v4480_v24 }
0x212f   : > { %3483 = vmatprep.subr.mxu1 %v3805_v16 }
0x2130   : > { %3484 = vmatpush3.msra.mxu1 %v4484_v7 }
0x2131   : > { %3485 = vmatprep.subr.mxu1 %v3805_v16 }
0x2132   : > { %3486 = vmatpush3.msra.mxu1 %v4488_v8 }
0x2133   : > { %3487 = vmatprep.subr.mxu1 %v3805_v16 }
0x2134   : > { %3488 = vmatpush3.msra.mxu1 %v4492_v42 }
0x2135   : > { %2547 = vmatprep.subr.mxu1 %v4375_v20 }
0x21e5   : > { %v2210_v0 = vpop.f32.mrf.mxu1 }
0x21e6   : > { %v2215_v9 = vadd.f32 %v2210_v0, %v2029_v28 }
0x21e8   : > { %v2216_v47 = vadd.f32 %v4595_v11, %v2215_v9 }
0x21ea   : > { %3648 = vtanh.f32 %v2216_v47 }
0x21f7   : > { %v3649_v48 = vpop.eup %3648 }
0x21f8   : > { %2222 = vrot.lane.b32.xlu0 %v3649_v48, %s3808_s20  ;;  %v2218_v50 = vadd.f32 1.0, %v3649_v48 }
0x21fa   : > { %v2219_v51 = vmul.f32 0.5, %v2218_v50 }
0x21fc   : > { %v2220_v20 = vmul.f32 %v2219_v51, %v4500_v56 }
0x226a   : > { %v2223_v13 = vpop.permute.xlu0 %2222 }
0x226b   : > { %v2225_v54 = vmul.f32 %v2223_v13, %v2219_v51 }
0x226d   : > { %2227 = vrot.lane.b32.xlu1 %v2225_v54, %s3809_s26 }
0x22df   : > { %v2228_v12 = vpop.permute.xlu1 %2227 }
0x22e0   : > { %v4601_v55 = vadd.f32 %v2228_v12, %v2220_v20 }
0x22e2   : > { %3650 = vtanh.f32 %v4601_v55 }
0x22ef   : > { %v3651_v52 = vpop.eup %3650 }
0x22f0   : > { %2233 = vrot.lane.b32.xlu0 %v3651_v52, %s3808_s20 }
0x2362   : > { %v2234_v18 = vpop.permute.xlu0 %2233 }
0x2363   : > { %v2236_v19 = vmul.f32 %v2234_v18, %v2219_v51 }
0x2365   : > { %2239 = vrot.lane.b32.xlu1 %v2236_v19, %s3808_s20 }
0x23d7   : > { %v2240_v49 = vpop.permute.xlu1 %2239 }
0x23d8   : > { %v2242_v6 = vsel %vm710_vm5, %v2141_v32, %v2240_v49 }
0x23d9   : > { %3265 = vmatmul.mubr.msk.f32.vlgmr.msra.gmra.mxu0 %vm515_vm6, %v2242_v6  ;;  %3490 = vmatmul.mubr.msk.f32.vlgmr.msra.gmra.mxu1 %vm515_vm6, %v2242_v6 }
0x23da   : > { %2454 = vmatpush1.msra.mxu0 %v4508_v25  ;;  %2493 = vmatprep.mubr.f32.mxu0 %v3805_v16 }
0x23db   : > { %2455 = vmatprep.subr.mxu0 %v4512_v57  ;;  %2548 = vmatpush1.msra.mxu1 %v4393_v1  ;;  %v2212_v1 = vpop.f32.mrf.mxu1 }
0x23dc   : > { %2456 = vmatpush1.msra.mxu0 %v4516_v58  ;;  %2549 = vmatprep.subr.mxu1 %v4397_v34 }
0x23dd   : > { %2457 = vmatprep.subr.mxu0 %v4520_v59  ;;  %2550 = vmatpush1.msra.mxu1 %v4401_v35 }
0x23de   : > { %2458 = vmatpush1.msra.mxu0 %v4524_v2  ;;  %2551 = vmatprep.subr.mxu1 %v4405_v14 }
0x23df   : > { %2459 = vmatprep.subr.mxu0 %v4528_v4  ;;  %2552 = vmatpush1.msra.mxu1 %v4409_v15  ;;  %v3269_v15 = vld [vmem:[%s3948_s21 + $0x30] sm:$0xff] }
0x23e0   : > { %2460 = vmatpush1.msra.mxu0 %v4532_v5  ;;  %2553 = vmatprep.subr.mxu1 %v4413_v41 }
0x23e1   : > { %3492 = vmatprep.subr.mxu0 %v3805_v16  ;;  %2554 = vmatpush1.msra.mxu1 %v4417_v43 }
0x23e2   : > { %2555 = vmatprep.subr.mxu1 %v4420_v44  ;;  %2595 = vmatprep.mubr.f32.mxu1 %v3805_v16 }
0x23e3   : > { %2556 = vmatpush1.msra.mxu1 %v4424_v45 }
0x23e4   : > { %2557 = vmatprep.subr.mxu1 %v4427_v46 }
0x23e5   : > { %2558 = vmatpush1.msra.mxu1 %v4430_v37 }
0x23e6   : > { %2559 = vmatprep.subr.mxu1 %v4433_v38 }
0x23e7   : > { %2560 = vmatpush1.msra.mxu1 %v4436_v39 }
0x23e8   : > { %2561 = vmatprep.subr.mxu1 %v4439_v40 }
0x23e9   : > { %2562 = vmatpush1.msra.mxu1 %v4442_v3 }
0x23ea   : > { %2738 = vmatprep.subr.mxu1 %v4547_v27 }
0x2499   : > { %v2383_v34 = vpop.f32.mrf.mxu1  ;;  %v2312_v31 = vpop.f32.mrf.mxu0 }
0x249a   : > { %v2387_v35 = vadd.f32 %v2383_v34, %v2212_v1 }
0x249b   : > { %v3491_v14 = vpop.f32.mrf.mxu1 }
0x249c   : > { %v2388_v41 = vadd.f32 %v4450_v10, %v2387_v35 }
0x249e   : > { %3267 = vst.msk [vmem:[%s4072_s25 + $0x30] sm:$0xff] %vm668_vm1, %v2388_v41  ;;  %v2395_v43 = vmul.f32 %v3269_v15, %v2388_v41 }
0x24a0   : > { %2398 = vperm.xlu0 %3578, %v2395_v43   ;;  %v3275_v43 = vld [vmem:[%s3948_s21 + $0x38] sm:$0xff] }
0x24a5   : > { %v2898_v44 = vld [vmem:[%s4072_s25 + $0x30] sm:$0xff] }
0x24a6   : > { %v2916_v45 = vmin.f32 %v2898_v44, 20.0  ;;  %vm2907_vm7 = vcmp.gt.f32.partialorder %v2898_v44, 20.0 }
0x24a8   : > { %v2931_v46 = vmul.f32 1.442695, %v2916_v45 }
0x24aa   : > { %3652 = vpow2.f32 %v2931_v46 }
0x24b7   : > { %v3653_v37 = vpop.eup %3652 }
0x24b8   : > { %v2991_v38 = vadd.f32 1.0, %v3653_v37  ;;  %v2994_v39 = vmul.f32 -0.5, %v3653_v37  ;;  %v2997_v3 = vand.u32 2147483647, %v3653_v37 }
0x24ba   : > { %3654 = vlog2.f32 %v2991_v38  ;;  %v2995_v40 = vadd.f32 1.0, %v2994_v39  ;;  %vm2998_vm4 = vcmp.lt.f32.partialorder %v2997_v3, 0.0004427343 }
0x24bc   : > { %v2996_v30 = vmul.f32 %v3653_v37, %v2995_v40 }
0x24c7   : > { %v3655_v56 = vpop.eup %3654 }
0x24c8   : > { %v2993_v27 = vmul.f32 0.6931472, %v3655_v56 }
0x24ca   : > { %v2999_v21 = vsel %vm2998_vm4, %v2996_v30, %v2993_v27  ;;  %v3274_v30 = vld [vmem:[%s3950_s22 + $0x38] sm:$0xff] }
0x24cb   : > { %v3024_v33 = vsel %vm2907_vm7, %v2898_v44, %v2999_v21 }
0x24cc   : > { %v3034_v22 = vsel %vm3027_vm3, %v2898_v44, %v3024_v33 }
0x24cd   : > { %3043 = vst.msk [vmem:[%s4072_s25 + $0x30] sm:$0xff] %vm668_vm1, %v3034_v22 }
0x251b   : > { %v2399_v23 = vpop.permute.xlu0 %2398 }
0x251c   : > { %v2401_v62 = vmul.f32 %v4562_v17, %v2399_v23 }
0x251e   : > { %v2402_v29 = vadd.f32 %v3268_v36, %v2401_v62 }
0x2520   : > { %v2403_v32 = vadd.f32 %v2402_v29, %v2312_v31 }
0x2522   : > { %3656 = vtanh.f32 %v2403_v32 }
0x252f   : > { %v3657_v28 = vpop.eup %3656 }
0x2530   : > { %2409 = vrot.lane.b32.xlu1 %v3657_v28, %s3808_s20  ;;  %v2405_v0 = vadd.f32 1.0, %v3657_v28 }
0x2532   : > { %v2406_v9 = vmul.f32 0.5, %v2405_v0 }
0x2534   : > { %v2407_v50 = vmul.f32 %v2406_v9, %v4568_v26 }
0x25a2   : > { %v2410_v47 = vpop.permute.xlu1 %2409 }
0x25a3   : > { %v2412_v48 = vmul.f32 %v2410_v47, %v2406_v9 }
0x25a5   : > { %2414 = vrot.lane.b32.xlu0 %v2412_v48, %s3809_s26 }
0x2617   : > { %v2415_v51 = vpop.permute.xlu0 %2414 }
0x2618   : > { %v4648_v13 = vadd.f32 %v2415_v51, %v2407_v50 }
0x261a   : > { %3658 = vtanh.f32 %v4648_v13 }
0x2627   : > { %v3659_v54 = vpop.eup %3658 }
0x2628   : > { %2420 = vrot.lane.b32.xlu1 %v3659_v54, %s3808_s20 }
0x269a   : > { %v2421_v20 = vpop.permute.xlu1 %2420 }
0x269b   : > { %v2423_v12 = vmul.f32 %v2421_v20, %v2406_v9 }
0x269d   : > { %2425 = vrot.lane.b32.xlu0 %v2423_v12, %s3809_s26 }
0x270f   : > { %v2426_v52 = vpop.permute.xlu0 %2425 }
0x2710   : > { %3270 = vmatmul.mubr.msk.f32.vlgmr.msra.gmra.mxu0 %vm710_vm5, %v2426_v52 }
0x2711   : > { %3493 = vmatpush3.msra.mxu0 %v4350_v60  ;;  %3508 = vmatprep.mubr.msk.f32.mxu0 %vm3806_vm0, %v3805_v16  ;;  %v2314_v60 = vpop.f32.mrf.mxu0 }
0x2712   : > { %3494 = vmatprep.subr.mxu0 %v3805_v16 }
0x2713   : > { %3495 = vmatpush3.msra.mxu0 %v4356_v53 }
0x2714   : > { %3496 = vmatprep.subr.mxu0 %v3805_v16 }
0x2715   : > { %3497 = vmatpush3.msra.mxu0 %v4360_v61 }
0x2716   : > { %3498 = vmatprep.subr.mxu0 %v3805_v16 }
0x2717   : > { %3499 = vmatpush3.msra.mxu0 %v4364_v63 }
0x2718   : > { %3500 = vmatprep.subr.mxu0 %v3805_v16 }
0x2719   : > { %3501 = vmatpush3.msra.mxu0 %v4480_v24 }
0x271a   : > { %3502 = vmatprep.subr.mxu0 %v3805_v16 }
0x271b   : > { %3503 = vmatpush3.msra.mxu0 %v4484_v7 }
0x271c   : > { %3504 = vmatprep.subr.mxu0 %v3805_v16 }
0x271d   : > { %3505 = vmatpush3.msra.mxu0 %v4488_v8 }
0x271e   : > { %3506 = vmatprep.subr.mxu0 %v3805_v16 }
0x271f   : > { %3507 = vmatpush3.msra.mxu0 %v4492_v42 }
0x2720   : > { %3511 = vmatprep.subr.mxu0 %v3805_v16 }
0x27d0   : > { %v2495_v53 = vpop.f32.mrf.mxu0 }
0x27d1   : > { %v2500_v61 = vadd.f32 %v2495_v53, %v2314_v60 }
0x27d3   : > { %v2501_v63 = vadd.f32 %v4595_v11, %v2500_v61 }
0x27d5   : > { %3660 = vtanh.f32 %v2501_v63 }
0x27e2   : > { %v3661_v24 = vpop.eup %3660 }
0x27e3   : > { %2507 = vrot.lane.b32.xlu1 %v3661_v24, %s3808_s20  ;;  %v2503_v7 = vadd.f32 1.0, %v3661_v24 }
0x27e5   : > { %v2504_v26 = vmul.f32 0.5, %v2503_v7 }
0x27e7   : > { %v2505_v8 = vmul.f32 %v2504_v26, %v4601_v55  ;;  %v2497_v55 = vpop.f32.mrf.mxu0 }
0x2855   : > { %v2508_v18 = vpop.permute.xlu1 %2507 }
0x2856   : > { %v2510_v19 = vmul.f32 %v2508_v18, %v2504_v26 }
0x2858   : > { %2512 = vrot.lane.b32.xlu0 %v2510_v19, %s3809_s26  ;;  %v512_v19 = vld [vmem:[%s4771_s6 + $0x10] sm:$0xff] }
0x28ca   : > { %v2513_v42 = vpop.permute.xlu0 %2512 }
0x28cb   : > { %v4676_v49 = vadd.f32 %v2513_v42, %v2505_v8  ;;  %v511_v8 = vld [vmem:[%s4771_s6 + $0x8] sm:$0xff]  ;;  %v510_v42 = vld [vmem:[%s4771_s6] sm:$0xff] }
0x28cd   : > { %3662 = vtanh.f32 %v4676_v49 }
0x28da   : > { %v3663_v6 = vpop.eup %3662 }
0x28db   : > { %2518 = vrot.lane.b32.xlu1 %v3663_v6, %s3808_s20 }
0x294d   : > { %v2519_v1 = vpop.permute.xlu1 %2518 }
0x294e   : > { %v2521_v34 = vmul.f32 %v2519_v1, %v2504_v26 }
0x2950   : > { %2524 = vrot.lane.b32.xlu0 %v2521_v34, %s3808_s20 }
0x29c2   : > { %v2525_v35 = vpop.permute.xlu0 %2524 }
0x29c3   : > { %v2527_v14 = vsel %vm710_vm5, %v2426_v52, %v2525_v35 }
0x29c4   : > { %3271 = vmatmul.mubr.msk.f32.vlgmr.msra.gmra.mxu1 %vm515_vm6, %v2527_v14  ;;  %3509 = vmatmul.mubr.msk.f32.vlgmr.msra.gmra.mxu0 %vm515_vm6, %v2527_v14 }
0x29c5   : > { %2739 = vmatpush1.msra.mxu1 %v4508_v25  ;;  %2778 = vmatprep.mubr.f32.mxu1 %v3805_v16 }
0x29c6   : > { %2740 = vmatprep.subr.mxu1 %v4512_v57  ;;  %3519 = vmatprep.mubr.msk.f32.mxu0 %vm3806_vm0, %v3805_v16 }
0x29c7   : > { %2741 = vmatpush1.msra.mxu1 %v4516_v58 }
0x29c8   : > { %2742 = vmatprep.subr.mxu1 %v4520_v59 }
0x29c9   : > { %2743 = vmatpush1.msra.mxu1 %v4524_v2 }
0x29ca   : > { %2744 = vmatprep.subr.mxu1 %v4528_v4 }
0x29cb   : > { %2745 = vmatpush1.msra.mxu1 %v4532_v5 }
0x2a84   : > { %v2668_v25 = vpop.f32.mrf.mxu0  ;;  %v2597_v36 = vpop.f32.mrf.mxu1 }
0x2a85   : > { %v2672_v15 = vadd.f32 %v2668_v25, %v2497_v55 }
0x2a86   : > { %v3510_v41 = vpop.f32.mrf.mxu0  ;;  %v2599_v54 = vpop.f32.mrf.mxu1 }
0x2a87   : > { %v2673_v57 = vadd.f32 %v4450_v10, %v2672_v15 }
0x2a89   : > { %3273 = vst.msk [vmem:[%s4072_s25 + $0x38] sm:$0xff] %vm668_vm1, %v2673_v57  ;;  %v2680_v44 = vmul.f32 %v3275_v43, %v2673_v57 }
0x2a8b   : > { %2683 = vperm.xlu1 %3579, %v2680_v44  }
0x2a90   : > { %v2899_v58 = vld [vmem:[%s4072_s25 + $0x38] sm:$0xff] }
0x2a91   : > { %v2917_v45 = vmin.f32 %v2899_v58, 20.0  ;;  %vm2908_vm6 = vcmp.gt.f32.partialorder %v2899_v58, 20.0 }
0x2a93   : > { %v2933_v59 = vmul.f32 1.442695, %v2917_v45 }
0x2a95   : > { %3664 = vpow2.f32 %v2933_v59 }
0x2aa2   : > { %v3665_v2 = vpop.eup %3664 }
0x2aa3   : > { %v3000_v4 = vadd.f32 1.0, %v3665_v2  ;;  %v3003_v5 = vmul.f32 -0.5, %v3665_v2  ;;  %v3006_v37 = vand.u32 2147483647, %v3665_v2 }
0x2aa5   : > { %3666 = vlog2.f32 %v3000_v4  ;;  %v3004_v46 = vadd.f32 1.0, %v3003_v5  ;;  %vm3007_vm0 = vcmp.lt.f32.partialorder %v3006_v37, 0.0004427343 }
0x2aa7   : > { %v3005_v40 = vmul.f32 %v3665_v2, %v3004_v46 }
0x2ab2   : > { %v3667_v38 = vpop.eup %3666 }
0x2ab3   : > { %v3002_v39 = vmul.f32 0.6931472, %v3667_v38 }
0x2ab5   : > { %v3008_v3 = vsel %vm3007_vm0, %v3005_v40, %v3002_v39  ;;  %v3099_v39 = vld [vmem:[%s4072_s25] sm:$0xff] (%p4783_p11)  ;;  %v3101_v40 = vld [vmem:[%s4072_s25 + $0x8] sm:$0xff] (%p4783_p11) }
0x2ab6   : > { %v3025_v56 = vsel %vm2908_vm6, %v2899_v58, %v3008_v3  ;;  %v3103_v3 = vld [vmem:[%s4072_s25 + $0x10] sm:$0xff] (%p4783_p11) }
0x2ab7   : > { %v3035_v27 = vsel %vm3027_vm3, %v2899_v58, %v3025_v56  ;;  %v3105_v56 = vld [vmem:[%s4072_s25 + $0x18] sm:$0xff] (%p4783_p11) }
0x2ab8   : > { %3044 = vst.msk [vmem:[%s4072_s25 + $0x38] sm:$0xff] %vm668_vm1, %v3035_v27  ;;  %v3107_v27 = vld [vmem:[%s4072_s25 + $0x20] sm:$0xff] (%p4783_p11) }
0x2b06   : > { %v2684_v21 = vpop.permute.xlu1 %2683 }
0x2b07   : > { %v2686_v33 = vmul.f32 %v4562_v17, %v2684_v21  ;;  %v3111_v21 = vld [vmem:[%s4072_s25 + $0x30] sm:$0xff] (%p4783_p11) }
0x2b09   : > { %v2687_v22 = vadd.f32 %v3274_v30, %v2686_v33  ;;  %v3109_v30 = vld [vmem:[%s4072_s25 + $0x28] sm:$0xff] (%p4783_p11)  ;;  %v3113_v33 = vld [vmem:[%s4072_s25 + $0x38] sm:$0xff] (%p4783_p11) }
0x2b0b   : > { %v2688_v23 = vadd.f32 %v2687_v22, %v2597_v36 }
0x2b0d   : > { %3668 = vtanh.f32 %v2688_v23 }
0x2b1a   : > { %v3669_v62 = vpop.eup %3668 }
0x2b1b   : > { %2694 = vrot.lane.b32.xlu0 %v3669_v62, %s3808_s20  ;;  %v2690_v29 = vadd.f32 1.0, %v3669_v62 }
0x2b1d   : > { %v2691_v31 = vmul.f32 0.5, %v2690_v29 }
0x2b1f   : > { %v2692_v0 = vmul.f32 %v2691_v31, %v4648_v13 }
0x2b8d   : > { %v2695_v32 = vpop.permute.xlu0 %2694 }
0x2b8e   : > { %v2697_v28 = vmul.f32 %v2695_v32, %v2691_v31 }
0x2b90   : > { %2699 = vrot.lane.b32.xlu1 %v2697_v28, %s3809_s26 }
0x2c02   : > { %v2700_v9 = vpop.permute.xlu1 %2699 }
0x2c03   : > { %v2702_v47 = vadd.f32 %v2700_v9, %v2692_v0 }
0x2c05   : > { %3670 = vtanh.f32 %v2702_v47 }
0x2c12   : > { %v3671_v48 = vpop.eup %3670 }
0x2c13   : > { %2705 = vrot.lane.b32.xlu0 %v3671_v48, %s3808_s20 }
0x2c85   : > { %v2706_v17 = vpop.permute.xlu0 %2705 }
0x2c86   : > { %v2708_v50 = vmul.f32 %v2706_v17, %v2691_v31 }
0x2c88   : > { %2710 = vrot.lane.b32.xlu1 %v2708_v50, %s3809_s26 }
0x2cfa   : > { %v2711_v51 = vpop.permute.xlu1 %2710 }
0x2cfb   : > { %3276 = vmatmul.mubr.msk.f32.vlgmr.msra.gmra.mxu1 %vm710_vm5, %v2711_v51 }
0x2dbb   : > { %v2780_v20 = vpop.f32.mrf.mxu1 }
0x2dbc   : > { %v2785_v12 = vadd.f32 %v2780_v20, %v2599_v54 }
0x2dbd   : > { %v2782_v14 = vpop.f32.mrf.mxu1 }
0x2dbe   : > { %v2786_v52 = vadd.f32 %v4595_v11, %v2785_v12  ;;  %v513_v11 = vld [vmem:[%s4771_s6 + $0x18] sm:$0xff] }
0x2dbf   : > { %3512 = vmatpush3.msra.mxu0 %v513_v11 }
0x2dc0   : > { %3672 = vtanh.f32 %v2786_v52  ;;  %3513 = vmatprep.subr.mxu0 %v3805_v16 }
0x2dc1   : > { %3514 = vmatpush3.msra.mxu0 %v512_v19 }
0x2dc2   : > { %3515 = vmatprep.subr.mxu0 %v3805_v16 }
0x2dc3   : > { %3516 = vmatpush3.msra.mxu0 %v511_v8 }
0x2dc4   : > { %3517 = vmatprep.subr.mxu0 %v3805_v16 }
0x2dc5   : > { %3518 = vmatpush3.msra.mxu0 %v510_v42 }
0x2dcd   : > { %v3673_v13 = vpop.eup %3672 }
0x2dce   : > { %2792 = vrot.lane.b32.xlu0 %v3673_v13, %s3808_s20  ;;  %v2788_v60 = vadd.f32 1.0, %v3673_v13 }
0x2dd0   : > { %v2789_v53 = vmul.f32 0.5, %v2788_v60 }
0x2dd2   : > { %v2790_v24 = vmul.f32 %v2789_v53, %v4676_v49 }
0x2e40   : > { %v2793_v61 = vpop.permute.xlu0 %2792 }
0x2e41   : > { %v2795_v63 = vmul.f32 %v2793_v61, %v2789_v53 }
0x2e43   : > { %2797 = vrot.lane.b32.xlu1 %v2795_v63, %s3809_s26 }
0x2eb5   : > { %v2798_v7 = vpop.permute.xlu1 %2797 }
0x2eb6   : > { %v2800_v26 = vadd.f32 %v2798_v7, %v2790_v24 }
0x2eb8   : > { %3674 = vtanh.f32 %v2800_v26 }
0x2ec5   : > { %v3675_v18 = vpop.eup %3674 }
0x2ec6   : > { %2803 = vrot.lane.b32.xlu0 %v3675_v18, %s3808_s20 }
0x2f38   : > { %v2804_v49 = vpop.permute.xlu0 %2803 }
0x2f39   : > { %v2806_v6 = vmul.f32 %v2804_v49, %v2789_v53 }
0x2f3b   : > { %2809 = vrot.lane.b32.xlu1 %v2806_v6, %s3808_s20  ;;  %s3279_s20 = sshll.u32 (%p4783_p11), %s3872_s30, 3 }
0x2f3c   : > { %s3054_s17 = scalar_lea.vmem (%p4783_p11), %s4773_s8, %s3279_s20 }
0x2f3d   : > { %3100 = vst [vmem:[%s3054_s17] sm:$0xff] (%p4783_p11), %v3099_v39  ;;  %3102 = vst [vmem:[%s3054_s17 + $0x10] sm:$0xff] (%p4783_p11), %v3101_v40 }
0x2f3e   : > { %3104 = vst [vmem:[%s3054_s17 + $0x20] sm:$0xff] (%p4783_p11), %v3103_v3  ;;  %3106 = vst [vmem:[%s3054_s17 + $0x30] sm:$0xff] (%p4783_p11), %v3105_v56 }
0x2f3f   : > { %3108 = vst [vmem:[%s3054_s17 + $0x40] sm:$0xff] (%p4783_p11), %v3107_v27  ;;  %3110 = vst [vmem:[%s3054_s17 + $0x50] sm:$0xff] (%p4783_p11), %v3109_v30 }
0x2f40   : > { %3112 = vst [vmem:[%s3054_s17 + $0x60] sm:$0xff] (%p4783_p11), %v3111_v21  ;;  %3114 = vst [vmem:[%s3054_s17 + $0x70] sm:$0xff] (%p4783_p11), %v3113_v33 }
0x2fad   : > { %v2810_v1 = vpop.permute.xlu1 %2809 }
0x2fae   : > { %v2812_v34 = vsel %vm710_vm5, %v2711_v51, %v2810_v1 }
0x2faf   : > { %2814 = vrot.lane.b32.xlu0 %v2812_v34, %s3810_s11 }
0x3021   : > { %v2815_v35 = vpop.permute.xlu0 %2814 }
0x3022   : > { %3520 = vmatmul.mubr.msk.f32.vlgmr.msra.gmra.mxu0 %vm710_vm5, %v2815_v35 }
0x30e2   : > { %v2884_v55 = vpop.f32.mrf.mxu0 }
0x30e3   : > { %v2888_v25 = vadd.f32 %v2884_v55, %v2782_v14 }
0x30e4   : > { %v3521_v15 = vpop.f32.mrf.mxu0 }
0x30e5   : > { %v2889_v16 = vadd.f32 %v4450_v10, %v2888_v25 }
0x30e7   : > { %3278 = vst.msk [vmem:[%s4072_s25 + $0x40] sm:$0xff] %vm668_vm1, %v2889_v16 }
0x30ee   : > { %v2900_v41 = vld [vmem:[%s4072_s25 + $0x40] sm:$0xff] }
0x30ef   : > { %v2918_v43 = vmin.f32 %v2900_v41, 20.0  ;;  %vm2909_vm8 = vcmp.gt.f32.partialorder %v2900_v41, 20.0 }
0x30f1   : > { %v2935_v57 = vmul.f32 1.442695, %v2918_v43 }
0x30f3   : > { %3676 = vpow2.f32 %v2935_v57 }
0x3100   : > { %v3677_v44 = vpop.eup %3676 }
0x3101   : > { %v3009_v58 = vadd.f32 1.0, %v3677_v44  ;;  %v3012_v45 = vmul.f32 -0.5, %v3677_v44  ;;  %v3015_v2 = vand.u32 2147483647, %v3677_v44 }
0x3103   : > { %3678 = vlog2.f32 %v3009_v58  ;;  %v3013_v59 = vadd.f32 1.0, %v3012_v45  ;;  %vm3016_vm5 = vcmp.lt.f32.partialorder %v3015_v2, 0.0004427343 }
0x3105   : > { %v3014_v46 = vmul.f32 %v3677_v44, %v3013_v59 }
0x3110   : > { %v3679_v4 = vpop.eup %3678 }
0x3111   : > { %v3011_v5 = vmul.f32 0.6931472, %v3679_v4 }
0x3112   : > { %3052 = sbr.rel (!%p4783_p11) target bundleno = 12575 (0x311f), region = 140 }
0x3113   : > { %v3017_v37 = vsel %vm3016_vm5, %v3014_v46, %v3011_v5 }
0x3114   : > { %v3026_v10 = vsel %vm2909_vm8, %v2900_v41, %v3017_v37 }
0x3115   : > { %v3036_v38 = vsel %vm3027_vm3, %v2900_v41, %v3026_v10 }
0x3116   : > { %3045 = vst.msk [vmem:[%s4072_s25 + $0x40] sm:$0xff] %vm668_vm1, %v3036_v38 }
0x311d   : > { %v3115_v22 = vld [vmem:[%s4072_s25 + $0x40] sm:$0xff] }
0x311e   : > { %3116 = vst [vmem:[%s3054_s17 + $0x80] sm:$0xff] %v3115_v22 }
0x311f PF: > { %p17_p12 = scmp.ge.s32.totalorder %s3875_s9, 4   ;;  %s4784_s27 = smov %s3793_s28 }
0x3120   : > { %s4785_s28 = smov %s3885_s12  ;;  %s4786_s29 = smov %s3875_s9 }
0x3121   :  { %19 = sbr.rel (!%p17_p12) target bundleno = 3 (0x3), region = 240 }
0x3126   :  { %3132 = vsyncpa [#allocation5], 1 }
0x3127   :  { %3134 = vsyncpa [#allocation5 + $0x1], 1 }
0x3128   :  { %3135 = vsyncpa [#allocation7], 1 }

</bundles_post_ra>
